<compile_context>
chip_gen: v7x
topology: tpu7x:2x2x1
jax: 0.10.0
libtpu: 0.0.40
codegen_flags: <defaults>
</compile_context>

<pallas_src>
import functools

import jax
import jax.numpy as jnp
from jax import lax
from jax.experimental import pallas as pl
from jax.experimental.pallas import tpu as pltpu

OUTPUT_SEQ_LEN = 4  # stands in for config.OUTPUT_SEQ_LEN


# ----------------------------- shared math helpers -----------------------------
def _layer_norm(x, w, b, eps=1e-5):
    mu = jnp.mean(x, axis=-1, keepdims=True)
    var = jnp.mean(jnp.square(x - mu), axis=-1, keepdims=True)
    return (x - mu) * lax.rsqrt(var + eps) * w + b


def _leaky_relu(x, slope=0.01):
    return jnp.where(x >= 0, x, slope * x)


def _cell_update(gates, c, H):
    # PyTorch gate order: i, f, g, o.  Transcendentals are evaluated on the
    # full 4H-lane vector (one EUP pass each) before slicing.
    sg = jax.nn.sigmoid(gates)
    tg = jnp.tanh(gates)
    c_new = sg[:, H:2 * H] * c + sg[:, 0:H] * tg[:, 2 * H:3 * H]
    h_new = sg[:, 3 * H:4 * H] * jnp.tanh(c_new)
    return h_new, c_new


def _lstm_step(xt, h, c, w_ih, w_hh, b, H):
    # Reference-path LSTM step (per-timestep input projection).
    gates = (jnp.dot(xt, w_ih, preferred_element_type=jnp.float32)
             + jnp.dot(h, w_hh, preferred_element_type=jnp.float32) + b)
    return _cell_update(gates, c, H)


# ----------------------------- Pallas kernel -----------------------------
def pure_lstm_kernel(
    x_ref,                        # (T*B, I) f32, time-major rows
    ln_in_w, ln_in_b,             # (1, I)
    wih_fb, b_fb,                 # (I, 8H) bf16, (1, 8H) f32 (fused fwd|bwd)
    whh_f, whh_b,                 # (H, 4H) bf16
    ln1_wf, ln1_bf, ln1_wb, ln1_bb,   # (1, H) each (split halves of LN(2H))
    wih2_f, wih2_b, b2, whh2,     # (H, 4H) x3 bf16, (1, 4H) f32
    ln2_w, ln2_b,                 # (1, H)
    w1, bb1, lnm1_w, lnm1_b,      # MLP stage 1
    w2, bb2, lnm2_w, lnm2_b,      # MLP stage 2
    w3, bb3,                      # MLP stage 3
    out_ref,                      # (B, K*O)
    gxf_scr, gxb_scr,             # (T*B, 4H) hoisted lstm1 input gates
    seqf_scr, seqb_scr,           # (T*B, H)  lstm1 hidden sequences
    g2_scr,                       # (T*B, 4H) hoisted lstm2 input gates
    *, T, B,
):
    H = whh_f.shape[0]
    f32 = jnp.float32

    # ---- input LayerNorm (noise / Dropout2d are eval-mode no-ops) ----
    xn = _layer_norm(x_ref[...], ln_in_w[...], ln_in_b[...])          # (T*B, I)

    # ---- hoisted lstm1 input projection, both directions in one matmul ----
    gx = jnp.dot(xn, wih_fb[...].astype(f32),
                 preferred_element_type=f32) + b_fb[...]              # (T*B, 8H)
    gxf_scr[...] = gx[:, :4 * H]
    gxb_scr[...] = gx[:, 4 * H:]

    zeros = jnp.zeros((B, H), f32)
    Wf = whh_f[...].astype(f32)      # loaded / cast once, loop-invariant
    Wb = whh_b[...].astype(f32)

    # ---- merged fwd + bwd lstm1 recurrence; (h, c) kept in loop carries ----
    def lstm1_body(t, carry):
        hf, cf, hb, cb = carry
        tb = T - 1 - t
        gf = gxf_scr[pl.ds(t * B, B), :] + jnp.dot(hf, Wf, preferred_element_type=f32)
        gb = gxb_scr[pl.ds(tb * B, B), :] + jnp.dot(hb, Wb, preferred_element_type=f32)
        hf, cf = _cell_update(gf, cf, H)
        hb, cb = _cell_update(gb, cb, H)
        seqf_scr[pl.ds(t * B, B), :] = hf
        seqb_scr[pl.ds(tb * B, B), :] = hb
        return hf, cf, hb, cb

    lax.fori_loop(0, T, lstm1_body, (zeros, zeros, zeros, zeros), unroll=True)

    # ---- lstm1 LayerNorm over concat([fwd, bwd]) without materializing it ----
    sf = seqf_scr[...]
    sb = seqb_scr[...]
    scale = 1.0 / (2 * H)
    mu = (jnp.sum(sf, axis=-1, keepdims=True)
          + jnp.sum(sb, axis=-1, keepdims=True)) * scale
    df = sf - mu
    db = sb - mu
    var = (jnp.sum(df * df, axis=-1, keepdims=True)
           + jnp.sum(db * db, axis=-1, keepdims=True)) * scale
    inv = lax.rsqrt(var + 1e-5)
    y1f = df * inv * ln1_wf[...] + ln1_bf[...]
    y1b = db * inv * ln1_wb[...] + ln1_bb[...]
    # (inter_dropout is identity in eval mode)

    # ---- hoisted lstm2 input projection ----
    g2_scr[...] = (jnp.dot(y1f, wih2_f[...].astype(f32), preferred_element_type=f32)
                   + jnp.dot(y1b, wih2_b[...].astype(f32), preferred_element_type=f32)
                   + b2[...])

    W2 = whh2[...].astype(f32)

    def lstm2_body(t, carry):
        h, c = carry
        g = g2_scr[pl.ds(t * B, B), :] + jnp.dot(h, W2, preferred_element_type=f32)
        return _cell_update(g, c, H)

    h2, _ = lax.fori_loop(0, T, lstm2_body, (zeros, zeros), unroll=True)

    # ---- lstm2 LayerNorm on last step (== final h2) + output MLP ----
    z = _layer_norm(h2, ln2_w[...], ln2_b[...])
    a1 = jnp.dot(z, w1[...].astype(f32), preferred_element_type=f32) + bb1[...]
    a1 = _leaky_relu(_layer_norm(a1, lnm1_w[...], lnm1_b[...]))
    a2 = jnp.dot(a1, w2[...].astype(f32), preferred_element_type=f32) + bb2[...]
    a2 = _leaky_relu(_layer_norm(a2, lnm2_w[...], lnm2_b[...]))
    out_ref[...] = jnp.dot(a2, w3[...].astype(f32), preferred_element_type=f32) + bb3[...]


# ----------------------------- wrapper -----------------------------
def pure_lstm_forward(x, params):
    """x: (B, T, input_size) float32 -> (B, OUTPUT_SEQ_LEN, output_size)."""
    B, T, I = x.shape
    H = params["whh_f"].shape[0]
    KO = params["w3"].shape[1]

    # time-major, folded to (T*B, I) rows for sublane-dense bulk stages
    x_tb = jnp.transpose(x, (1, 0, 2)).reshape(T * B, I).astype(jnp.float32)

    # host-side weight plumbing: fuse fwd/bwd input projections, split lstm2
    # input weights and the lstm1 LayerNorm params into fwd/bwd halves.
    wih_fb = jnp.concatenate([params["wih_f"], params["wih_b"]], axis=1)   # (I, 8H)
    b_fb = jnp.concatenate([params["b_f"], params["b_b"]], axis=1)         # (1, 8H)
    wih2_f = params["wih2"][:H]
    wih2_b = params["wih2"][H:]
    ln1_wf = params["ln1_w"][:, :H]
    ln1_bf = params["ln1_b"][:, :H]
    ln1_wb = params["ln1_w"][:, H:]
    ln1_bb = params["ln1_b"][:, H:]

    args = [
        x_tb,
        params["ln_in_w"], params["ln_in_b"],
        wih_fb, b_fb,
        params["whh_f"], params["whh_b"],
        ln1_wf, ln1_bf, ln1_wb, ln1_bb,
        wih2_f, wih2_b, params["b2"], params["whh2"],
        params["ln2_w"], params["ln2_b"],
        params["w1"], params["bb1"], params["lnm1_w"], params["lnm1_b"],
        params["w2"], params["bb2"], params["lnm2_w"], params["lnm2_b"],
        params["w3"], params["bb3"],
    ]
    vmem = pl.BlockSpec(memory_space=pltpu.MemorySpace.VMEM)

    # TODO(synk): at production T/B/H the whole-sequence-resident scratch would
    # need a time-chunked pipeline (and vmem_limit_bytes) to fit v7x's 64 MiB
    # VMEM; at these shapes everything is far below the default limit.
    out = pl.pallas_call(
        functools.partial(pure_lstm_kernel, T=T, B=B),
        out_shape=jax.ShapeDtypeStruct((B, KO), jnp.float32),
        in_specs=[vmem] * len(args),
        out_specs=vmem,
        scratch_shapes=[
            pltpu.VMEM((T * B, 4 * H), jnp.float32),   # gxf (hoisted gates, fwd)
            pltpu.VMEM((T * B, 4 * H), jnp.float32),   # gxb (hoisted gates, bwd)
            pltpu.VMEM((T * B, H), jnp.float32),       # lstm1 fwd hidden sequence
            pltpu.VMEM((T * B, H), jnp.float32),       # lstm1 bwd hidden sequence
            pltpu.VMEM((T * B, 4 * H), jnp.float32),   # hoisted lstm2 gates
        ],
    )(*args)
    return out.reshape(B, OUTPUT_SEQ_LEN, KO // OUTPUT_SEQ_LEN)


# ----------------------------- deterministic parameter init -----------------------------
def init_params(key, input_size, hidden_size, dense_units, output_size, output_seq_len):
    H = hidden_size
    D = dense_units
    D2 = dense_units // 2
    KO = output_seq_len * output_size
    ks = jax.random.split(key, 9)

    def nrm(k, shape, scale):
        # Matmul weights are stored in bfloat16 (halves weight VMEM/DMA); both
        # the kernel and the pure-JAX reference consume these same values with
        # f32 accumulation, so the comparison stays tight.
        return (scale * jax.random.normal(k, shape)).astype(jnp.bfloat16)

    p = {
        # LayerNorms: weight=1, bias=0 (matches the PyTorch init)
        "ln_in_w": jnp.ones((1, input_size), jnp.float32),
        "ln_in_b": jnp.zeros((1, input_size), jnp.float32),
        "ln1_w": jnp.ones((1, 2 * H), jnp.float32),
        "ln1_b": jnp.zeros((1, 2 * H), jnp.float32),
        "ln2_w": jnp.ones((1, H), jnp.float32),
        "ln2_b": jnp.zeros((1, H), jnp.float32),
        "lnm1_w": jnp.ones((1, D), jnp.float32),
        "lnm1_b": jnp.zeros((1, D), jnp.float32),
        "lnm2_w": jnp.ones((1, D2), jnp.float32),
        "lnm2_b": jnp.zeros((1, D2), jnp.float32),
        # LSTM1 (bidirectional), weights stored pre-transposed (in_features, 4H)
        "wih_f": nrm(ks[0], (input_size, 4 * H), 0.2),
        "whh_f": nrm(ks[1], (H, 4 * H), 0.2),
        "b_f": jnp.zeros((1, 4 * H), jnp.float32),      # bias_ih + bias_hh == 0
        "wih_b": nrm(ks[2], (input_size, 4 * H), 0.2),
        "whh_b": nrm(ks[3], (H, 4 * H), 0.2),
        "b_b": jnp.zeros((1, 4 * H), jnp.float32),
        # LSTM2
        "wih2": nrm(ks[4], (2 * H, 4 * H), 0.15),
        "whh2": nrm(ks[5], (H, 4 * H), 0.2),
        "b2": jnp.zeros((1, 4 * H), jnp.float32),
        # output MLP
        "w1": nrm(ks[6], (H, D), 0.2),
        "bb1": jnp.zeros((1, D), jnp.float32),
        "w2": nrm(ks[7], (D, D2), 0.2),
        "bb2": jnp.zeros((1, D2), jnp.float32),
        "w3": nrm(ks[8], (D2, KO), 0.2),
        "bb3": jnp.zeros((1, KO), jnp.float32),
    }
    return p


# ----------------------------- pure-JAX reference (for verification) -----------------------------
def reference_forward(x, p):
    B, T, _ = x.shape
    H = p["whh_f"].shape[0]
    xn = _layer_norm(x.astype(jnp.float32), p["ln_in_w"], p["ln_in_b"])

    def run_lstm(seq, wih, whh, b, reverse=False):
        h = jnp.zeros((B, H), jnp.float32)
        c = jnp.zeros((B, H), jnp.float32)
        outs = [None] * T
        ts = range(T - 1, -1, -1) if reverse else range(T)
        for t in ts:
            h, c = _lstm_step(seq[:, t, :], h, c, wih, whh, b, H)
            outs[t] = h
        return jnp.stack(outs, axis=1)

    yf = run_lstm(xn, p["wih_f"], p["whh_f"], p["b_f"])
    yb = run_lstm(xn, p["wih_b"], p["whh_b"], p["b_b"], reverse=True)
    y1 = _layer_norm(jnp.concatenate([yf, yb], axis=-1), p["ln1_w"], p["ln1_b"])
    y2 = run_lstm(y1, p["wih2"], p["whh2"], p["b2"])
    z = _layer_norm(y2[:, -1, :], p["ln2_w"], p["ln2_b"])
    a1 = _leaky_relu(_layer_norm(jnp.dot(z, p["w1"], preferred_element_type=jnp.float32) + p["bb1"],
                                 p["lnm1_w"], p["lnm1_b"]))
    a2 = _leaky_relu(_layer_norm(jnp.dot(a1, p["w2"], preferred_element_type=jnp.float32) + p["bb2"],
                                 p["lnm2_w"], p["lnm2_b"]))
    out = jnp.dot(a2, p["w3"], preferred_element_type=jnp.float32) + p["bb3"]
    return out.reshape(B, OUTPUT_SEQ_LEN, -1)


if __name__ == "__main__":
    # small shapes implied by the module's forward
    B, T = 2, 8
    input_size, hidden_size, num_layers = 8, 32, 2
    output_size, dense_units = 3, 32
    # TODO(synk): training-mode noise / Dropout2d / Dropout are identity in eval
    # and are intentionally omitted; lstm2 is implemented for num_layers == 2.

    key = jax.random.PRNGKey(0)
    kx, kp = jax.random.split(key)
    x = jax.random.normal(kx, (B, T, input_size), dtype=jnp.float32)
    params = init_params(kp, input_size, hidden_size, dense_units,
                         output_size, OUTPUT_SEQ_LEN)

    out = jax.jit(pure_lstm_forward)(x, params)
    out = jax.block_until_ready(out)

    ref = reference_forward(x, params)
    assert out.shape == (B, OUTPUT_SEQ_LEN, output_size), out.shape
    assert bool(jnp.all(jnp.isfinite(out)))
    assert jnp.allclose(out, ref, atol=1e-3, rtol=1e-3), float(jnp.max(jnp.abs(out - ref)))
    print("KERNEL_OK")
</pallas_src>

<mosaic_0001>
module attributes {stable_mosaic.version = 11 : i64} {
  func.func @pure_lstm_kernel(%arg0: memref<16x8xf32, #tpu.memory_space<vmem>>, %arg1: memref<1x8xf32, #tpu.memory_space<vmem>>, %arg2: memref<1x8xf32, #tpu.memory_space<vmem>>, %arg3: memref<8x256xbf16, #tpu.memory_space<vmem>>, %arg4: memref<1x256xf32, #tpu.memory_space<vmem>>, %arg5: memref<32x128xbf16, #tpu.memory_space<vmem>>, %arg6: memref<32x128xbf16, #tpu.memory_space<vmem>>, %arg7: memref<1x32xf32, #tpu.memory_space<vmem>>, %arg8: memref<1x32xf32, #tpu.memory_space<vmem>>, %arg9: memref<1x32xf32, #tpu.memory_space<vmem>>, %arg10: memref<1x32xf32, #tpu.memory_space<vmem>>, %arg11: memref<32x128xbf16, #tpu.memory_space<vmem>>, %arg12: memref<32x128xbf16, #tpu.memory_space<vmem>>, %arg13: memref<1x128xf32, #tpu.memory_space<vmem>>, %arg14: memref<32x128xbf16, #tpu.memory_space<vmem>>, %arg15: memref<1x32xf32, #tpu.memory_space<vmem>>, %arg16: memref<1x32xf32, #tpu.memory_space<vmem>>, %arg17: memref<32x32xbf16, #tpu.memory_space<vmem>>, %arg18: memref<1x32xf32, #tpu.memory_space<vmem>>, %arg19: memref<1x32xf32, #tpu.memory_space<vmem>>, %arg20: memref<1x32xf32, #tpu.memory_space<vmem>>, %arg21: memref<32x16xbf16, #tpu.memory_space<vmem>>, %arg22: memref<1x16xf32, #tpu.memory_space<vmem>>, %arg23: memref<1x16xf32, #tpu.memory_space<vmem>>, %arg24: memref<1x16xf32, #tpu.memory_space<vmem>>, %arg25: memref<16x12xbf16, #tpu.memory_space<vmem>>, %arg26: memref<1x12xf32, #tpu.memory_space<vmem>>, %arg27: memref<2x12xf32, #tpu.memory_space<vmem>>, %arg28: memref<16x128xf32, #tpu.memory_space<vmem>>, %arg29: memref<16x128xf32, #tpu.memory_space<vmem>>, %arg30: memref<16x32xf32, #tpu.memory_space<vmem>>, %arg31: memref<16x32xf32, #tpu.memory_space<vmem>>, %arg32: memref<16x128xf32, #tpu.memory_space<vmem>>) attributes {dimension_semantics = [], scalar_prefetch = 0 : i64, scratch_operands = 5 : i64, tpu.core_type = #tpu.core_type<tc>} {
    %c0 = arith.constant 0 : index
    %c0_0 = arith.constant 0 : index
    %0 = vector.load %arg0[%c0, %c0_0] : memref<16x8xf32, #tpu.memory_space<vmem>>, vector<16x8xf32>
    %c0_1 = arith.constant 0 : index
    %c0_2 = arith.constant 0 : index
    %1 = vector.load %arg1[%c0_1, %c0_2] : memref<1x8xf32, #tpu.memory_space<vmem>>, vector<1x8xf32>
    %c0_3 = arith.constant 0 : index
    %c0_4 = arith.constant 0 : index
    %2 = vector.load %arg2[%c0_3, %c0_4] : memref<1x8xf32, #tpu.memory_space<vmem>>, vector<1x8xf32>
    %cst = arith.constant dense<0.000000e+00> : vector<16xf32>
    %3 = vector.multi_reduction <add>, %0, %cst [1] : vector<16x8xf32> to vector<16xf32>
    %4 = vector.shape_cast %3 : vector<16xf32> to vector<16x1xf32>
    %cst_5 = arith.constant 8.000000e+00 : f32
    %5 = vector.broadcast %cst_5 : f32 to vector<16x1xf32>
    %6 = arith.divf %4, %5 : vector<16x1xf32>
    %7 = vector.broadcast %6 : vector<16x1xf32> to vector<16x8xf32>
    %8 = arith.subf %0, %7 : vector<16x8xf32>
    %9 = arith.mulf %8, %8 : vector<16x8xf32>
    %cst_6 = arith.constant dense<0.000000e+00> : vector<16xf32>
    %10 = vector.multi_reduction <add>, %9, %cst_6 [1] : vector<16x8xf32> to vector<16xf32>
    %11 = vector.shape_cast %10 : vector<16xf32> to vector<16x1xf32>
    %cst_7 = arith.constant 8.000000e+00 : f32
    %12 = vector.broadcast %cst_7 : f32 to vector<16x1xf32>
    %13 = arith.divf %11, %12 : vector<16x1xf32>
    %14 = vector.broadcast %6 : vector<16x1xf32> to vector<16x8xf32>
    %15 = arith.subf %0, %14 : vector<16x8xf32>
    %cst_8 = arith.constant 9.99999974E-6 : f32
    %16 = vector.broadcast %cst_8 : f32 to vector<16x1xf32>
    %17 = arith.addf %13, %16 : vector<16x1xf32>
    %18 = math.rsqrt %17 : vector<16x1xf32>
    %19 = vector.broadcast %18 : vector<16x1xf32> to vector<16x8xf32>
    %20 = arith.mulf %15, %19 : vector<16x8xf32>
    %21 = vector.broadcast %1 : vector<1x8xf32> to vector<16x8xf32>
    %22 = arith.mulf %20, %21 : vector<16x8xf32>
    %23 = vector.broadcast %2 : vector<1x8xf32> to vector<16x8xf32>
    %24 = arith.addf %22, %23 : vector<16x8xf32>
    %c0_9 = arith.constant 0 : index
    %c0_10 = arith.constant 0 : index
    %25 = vector.load %arg3[%c0_9, %c0_10] : memref<8x256xbf16, #tpu.memory_space<vmem>>, vector<8x256xbf16>
    %26 = arith.extf %25 : vector<8x256xbf16> to vector<8x256xf32>
    %cst_11 = arith.constant dense<0.000000e+00> : vector<16x256xf32>
    %27 = tpu.matmul %24, %26, %cst_11 {dimension_numbers = #tpu.dot_dimension_numbers<[1], [0], [0], [1], [0, 0, 1, 1], [], []>} : vector<16x8xf32>, vector<8x256xf32>, vector<16x256xf32> -> vector<16x256xf32>
    %c0_12 = arith.constant 0 : index
    %c0_13 = arith.constant 0 : index
    %28 = vector.load %arg4[%c0_12, %c0_13] : memref<1x256xf32, #tpu.memory_space<vmem>>, vector<1x256xf32>
    %29 = vector.broadcast %28 : vector<1x256xf32> to vector<16x256xf32>
    %30 = arith.addf %27, %29 : vector<16x256xf32>
    %31 = vector.extract_strided_slice %30 {offsets = [0, 0], sizes = [16, 128], strides = [1, 1]} : vector<16x256xf32> to vector<16x128xf32>
    %c0_14 = arith.constant 0 : index
    %c0_15 = arith.constant 0 : index
    %32 = vector.load %arg28[%c0_14, %c0_15] : memref<16x128xf32, #tpu.memory_space<vmem>>, vector<16x128xf32>
    tpu.vector_store %arg28[%c0_14, %c0_15], %31 {strides = array<i32>} : memref<16x128xf32, #tpu.memory_space<vmem>>, vector<16x128xf32>,
    %33 = vector.extract_strided_slice %30 {offsets = [0, 128], sizes = [16, 128], strides = [1, 1]} : vector<16x256xf32> to vector<16x128xf32>
    %c0_16 = arith.constant 0 : index
    %c0_17 = arith.constant 0 : index
    %34 = vector.load %arg29[%c0_16, %c0_17] : memref<16x128xf32, #tpu.memory_space<vmem>>, vector<16x128xf32>
    tpu.vector_store %arg29[%c0_16, %c0_17], %33 {strides = array<i32>} : memref<16x128xf32, #tpu.memory_space<vmem>>, vector<16x128xf32>,
    %cst_18 = arith.constant 0.000000e+00 : f32
    %35 = vector.broadcast %cst_18 : f32 to vector<2x32xf32>
    %c0_19 = arith.constant 0 : index
    %c0_20 = arith.constant 0 : index
    %36 = vector.load %arg5[%c0_19, %c0_20] : memref<32x128xbf16, #tpu.memory_space<vmem>>, vector<32x128xbf16>
    %37 = arith.extf %36 : vector<32x128xbf16> to vector<32x128xf32>
    %c0_21 = arith.constant 0 : index
    %c0_22 = arith.constant 0 : index
    %38 = vector.load %arg6[%c0_21, %c0_22] : memref<32x128xbf16, #tpu.memory_space<vmem>>, vector<32x128xbf16>
    %39 = arith.extf %38 : vector<32x128xbf16> to vector<32x128xf32>
    %c0_i32 = arith.constant 0 : i32
    %c7_i32 = arith.constant 7 : i32
    %40 = arith.subi %c7_i32, %c0_i32 : i32
    %c2_i32 = arith.constant 2 : i32
    %41 = arith.muli %c0_i32, %c2_i32 : i32
    %42 = arith.index_cast %41 : i32 to index
    %c0_23 = arith.constant 0 : index
    %43 = vector.load %arg28[%42, %c0_23] : memref<16x128xf32, #tpu.memory_space<vmem>>, vector<2x128xf32>
    %cst_24 = arith.constant dense<0.000000e+00> : vector<2x128xf32>
    %44 = tpu.matmul %35, %37, %cst_24 {dimension_numbers = #tpu.dot_dimension_numbers<[1], [0], [0], [1], [0, 0, 1, 1], [], []>} : vector<2x32xf32>, vector<32x128xf32>, vector<2x128xf32> -> vector<2x128xf32>
    %45 = arith.addf %43, %44 : vector<2x128xf32>
    %c2_i32_25 = arith.constant 2 : i32
    %46 = arith.muli %40, %c2_i32_25 : i32
    %47 = arith.index_cast %46 : i32 to index
    %c0_26 = arith.constant 0 : index
    %48 = vector.load %arg29[%47, %c0_26] : memref<16x128xf32, #tpu.memory_space<vmem>>, vector<2x128xf32>
    %cst_27 = arith.constant dense<0.000000e+00> : vector<2x128xf32>
    %49 = tpu.matmul %35, %39, %cst_27 {dimension_numbers = #tpu.dot_dimension_numbers<[1], [0], [0], [1], [0, 0, 1, 1], [], []>} : vector<2x32xf32>, vector<32x128xf32>, vector<2x128xf32> -> vector<2x128xf32>
    %50 = arith.addf %48, %49 : vector<2x128xf32>
    %51 = arith.negf %45 : vector<2x128xf32>
    %52 = math.exp %51 : vector<2x128xf32>
    %cst_28 = arith.constant 1.000000e+00 : f32
    %53 = vector.broadcast %cst_28 : f32 to vector<2x128xf32>
    %54 = arith.addf %53, %52 : vector<2x128xf32>
    %55 = arith.divf %53, %54 : vector<2x128xf32>
    %56 = math.tanh %45 : vector<2x128xf32>
    %57 = vector.extract_strided_slice %55 {offsets = [0, 32], sizes = [2, 32], strides = [1, 1]} : vector<2x128xf32> to vector<2x32xf32>
    %58 = arith.mulf %57, %35 : vector<2x32xf32>
    %59 = vector.extract_strided_slice %55 {offsets = [0, 0], sizes = [2, 32], strides = [1, 1]} : vector<2x128xf32> to vector<2x32xf32>
    %60 = vector.extract_strided_slice %56 {offsets = [0, 64], sizes = [2, 32], strides = [1, 1]} : vector<2x128xf32> to vector<2x32xf32>
    %61 = arith.mulf %59, %60 : vector<2x32xf32>
    %62 = arith.addf %58, %61 : vector<2x32xf32>
    %63 = vector.extract_strided_slice %55 {offsets = [0, 96], sizes = [2, 32], strides = [1, 1]} : vector<2x128xf32> to vector<2x32xf32>
    %64 = math.tanh %62 : vector<2x32xf32>
    %65 = arith.mulf %63, %64 : vector<2x32xf32>
    %66 = arith.negf %50 : vector<2x128xf32>
    %67 = math.exp %66 : vector<2x128xf32>
    %cst_29 = arith.constant 1.000000e+00 : f32
    %68 = vector.broadcast %cst_29 : f32 to vector<2x128xf32>
    %69 = arith.addf %68, %67 : vector<2x128xf32>
    %70 = arith.divf %68, %69 : vector<2x128xf32>
    %71 = math.tanh %50 : vector<2x128xf32>
    %72 = vector.extract_strided_slice %70 {offsets = [0, 32], sizes = [2, 32], strides = [1, 1]} : vector<2x128xf32> to vector<2x32xf32>
    %73 = arith.mulf %72, %35 : vector<2x32xf32>
    %74 = vector.extract_strided_slice %70 {offsets = [0, 0], sizes = [2, 32], strides = [1, 1]} : vector<2x128xf32> to vector<2x32xf32>
    %75 = vector.extract_strided_slice %71 {offsets = [0, 64], sizes = [2, 32], strides = [1, 1]} : vector<2x128xf32> to vector<2x32xf32>
    %76 = arith.mulf %74, %75 : vector<2x32xf32>
    %77 = arith.addf %73, %76 : vector<2x32xf32>
    %78 = vector.extract_strided_slice %70 {offsets = [0, 96], sizes = [2, 32], strides = [1, 1]} : vector<2x128xf32> to vector<2x32xf32>
    %79 = math.tanh %77 : vector<2x32xf32>
    %80 = arith.mulf %78, %79 : vector<2x32xf32>
    %c2_i32_30 = arith.constant 2 : i32
    %81 = arith.muli %c0_i32, %c2_i32_30 : i32
    %82 = arith.index_cast %81 : i32 to index
    %c0_31 = arith.constant 0 : index
    %83 = vector.load %arg30[%82, %c0_31] : memref<16x32xf32, #tpu.memory_space<vmem>>, vector<2x32xf32>
    tpu.vector_store %arg30[%82, %c0_31], %65 {strides = array<i32>} : memref<16x32xf32, #tpu.memory_space<vmem>>, vector<2x32xf32>,
    %c2_i32_32 = arith.constant 2 : i32
    %84 = arith.muli %40, %c2_i32_32 : i32
    %85 = arith.index_cast %84 : i32 to index
    %c0_33 = arith.constant 0 : index
    %86 = vector.load %arg31[%85, %c0_33] : memref<16x32xf32, #tpu.memory_space<vmem>>, vector<2x32xf32>
    tpu.vector_store %arg31[%85, %c0_33], %80 {strides = array<i32>} : memref<16x32xf32, #tpu.memory_space<vmem>>, vector<2x32xf32>,
    %c1_i32 = arith.constant 1 : i32
    %c7_i32_34 = arith.constant 7 : i32
    %87 = arith.subi %c7_i32_34, %c1_i32 : i32
    %c2_i32_35 = arith.constant 2 : i32
    %88 = arith.muli %c1_i32, %c2_i32_35 : i32
    %89 = arith.index_cast %88 : i32 to index
    %c0_36 = arith.constant 0 : index
    %90 = vector.load %arg28[%89, %c0_36] : memref<16x128xf32, #tpu.memory_space<vmem>>, vector<2x128xf32>
    %cst_37 = arith.constant dense<0.000000e+00> : vector<2x128xf32>
    %91 = tpu.matmul %65, %37, %cst_37 {dimension_numbers = #tpu.dot_dimension_numbers<[1], [0], [0], [1], [0, 0, 1, 1], [], []>} : vector<2x32xf32>, vector<32x128xf32>, vector<2x128xf32> -> vector<2x128xf32>
    %92 = arith.addf %90, %91 : vector<2x128xf32>
    %c2_i32_38 = arith.constant 2 : i32
    %93 = arith.muli %87, %c2_i32_38 : i32
    %94 = arith.index_cast %93 : i32 to index
    %c0_39 = arith.constant 0 : index
    %95 = vector.load %arg29[%94, %c0_39] : memref<16x128xf32, #tpu.memory_space<vmem>>, vector<2x128xf32>
    %cst_40 = arith.constant dense<0.000000e+00> : vector<2x128xf32>
    %96 = tpu.matmul %80, %39, %cst_40 {dimension_numbers = #tpu.dot_dimension_numbers<[1], [0], [0], [1], [0, 0, 1, 1], [], []>} : vector<2x32xf32>, vector<32x128xf32>, vector<2x128xf32> -> vector<2x128xf32>
    %97 = arith.addf %95, %96 : vector<2x128xf32>
    %98 = arith.negf %92 : vector<2x128xf32>
    %99 = math.exp %98 : vector<2x128xf32>
    %cst_41 = arith.constant 1.000000e+00 : f32
    %100 = vector.broadcast %cst_41 : f32 to vector<2x128xf32>
    %101 = arith.addf %100, %99 : vector<2x128xf32>
    %102 = arith.divf %100, %101 : vector<2x128xf32>
    %103 = math.tanh %92 : vector<2x128xf32>
    %104 = vector.extract_strided_slice %102 {offsets = [0, 32], sizes = [2, 32], strides = [1, 1]} : vector<2x128xf32> to vector<2x32xf32>
    %105 = arith.mulf %104, %62 : vector<2x32xf32>
    %106 = vector.extract_strided_slice %102 {offsets = [0, 0], sizes = [2, 32], strides = [1, 1]} : vector<2x128xf32> to vector<2x32xf32>
    %107 = vector.extract_strided_slice %103 {offsets = [0, 64], sizes = [2, 32], strides = [1, 1]} : vector<2x128xf32> to vector<2x32xf32>
    %108 = arith.mulf %106, %107 : vector<2x32xf32>
    %109 = arith.addf %105, %108 : vector<2x32xf32>
    %110 = vector.extract_strided_slice %102 {offsets = [0, 96], sizes = [2, 32], strides = [1, 1]} : vector<2x128xf32> to vector<2x32xf32>
    %111 = math.tanh %109 : vector<2x32xf32>
    %112 = arith.mulf %110, %111 : vector<2x32xf32>
    %113 = arith.negf %97 : vector<2x128xf32>
    %114 = math.exp %113 : vector<2x128xf32>
    %cst_42 = arith.constant 1.000000e+00 : f32
    %115 = vector.broadcast %cst_42 : f32 to vector<2x128xf32>
    %116 = arith.addf %115, %114 : vector<2x128xf32>
    %117 = arith.divf %115, %116 : vector<2x128xf32>
    %118 = math.tanh %97 : vector<2x128xf32>
    %119 = vector.extract_strided_slice %117 {offsets = [0, 32], sizes = [2, 32], strides = [1, 1]} : vector<2x128xf32> to vector<2x32xf32>
    %120 = arith.mulf %119, %77 : vector<2x32xf32>
    %121 = vector.extract_strided_slice %117 {offsets = [0, 0], sizes = [2, 32], strides = [1, 1]} : vector<2x128xf32> to vector<2x32xf32>
    %122 = vector.extract_strided_slice %118 {offsets = [0, 64], sizes = [2, 32], strides = [1, 1]} : vector<2x128xf32> to vector<2x32xf32>
    %123 = arith.mulf %121, %122 : vector<2x32xf32>
    %124 = arith.addf %120, %123 : vector<2x32xf32>
    %125 = vector.extract_strided_slice %117 {offsets = [0, 96], sizes = [2, 32], strides = [1, 1]} : vector<2x128xf32> to vector<2x32xf32>
    %126 = math.tanh %124 : vector<2x32xf32>
    %127 = arith.mulf %125, %126 : vector<2x32xf32>
    %c2_i32_43 = arith.constant 2 : i32
    %128 = arith.muli %c1_i32, %c2_i32_43 : i32
    %129 = arith.index_cast %128 : i32 to index
    %c0_44 = arith.constant 0 : index
    %130 = vector.load %arg30[%129, %c0_44] : memref<16x32xf32, #tpu.memory_space<vmem>>, vector<2x32xf32>
    tpu.vector_store %arg30[%129, %c0_44], %112 {strides = array<i32>} : memref<16x32xf32, #tpu.memory_space<vmem>>, vector<2x32xf32>,
    %c2_i32_45 = arith.constant 2 : i32
    %131 = arith.muli %87, %c2_i32_45 : i32
    %132 = arith.index_cast %131 : i32 to index
    %c0_46 = arith.constant 0 : index
    %133 = vector.load %arg31[%132, %c0_46] : memref<16x32xf32, #tpu.memory_space<vmem>>, vector<2x32xf32>
    tpu.vector_store %arg31[%132, %c0_46], %127 {strides = array<i32>} : memref<16x32xf32, #tpu.memory_space<vmem>>, vector<2x32xf32>,
    %c2_i32_47 = arith.constant 2 : i32
    %c7_i32_48 = arith.constant 7 : i32
    %134 = arith.subi %c7_i32_48, %c2_i32_47 : i32
    %c2_i32_49 = arith.constant 2 : i32
    %135 = arith.muli %c2_i32_47, %c2_i32_49 : i32
    %136 = arith.index_cast %135 : i32 to index
    %c0_50 = arith.constant 0 : index
    %137 = vector.load %arg28[%136, %c0_50] : memref<16x128xf32, #tpu.memory_space<vmem>>, vector<2x128xf32>
    %cst_51 = arith.constant dense<0.000000e+00> : vector<2x128xf32>
    %138 = tpu.matmul %112, %37, %cst_51 {dimension_numbers = #tpu.dot_dimension_numbers<[1], [0], [0], [1], [0, 0, 1, 1], [], []>} : vector<2x32xf32>, vector<32x128xf32>, vector<2x128xf32> -> vector<2x128xf32>
    %139 = arith.addf %137, %138 : vector<2x128xf32>
    %c2_i32_52 = arith.constant 2 : i32
    %140 = arith.muli %134, %c2_i32_52 : i32
    %141 = arith.index_cast %140 : i32 to index
    %c0_53 = arith.constant 0 : index
    %142 = vector.load %arg29[%141, %c0_53] : memref<16x128xf32, #tpu.memory_space<vmem>>, vector<2x128xf32>
    %cst_54 = arith.constant dense<0.000000e+00> : vector<2x128xf32>
    %143 = tpu.matmul %127, %39, %cst_54 {dimension_numbers = #tpu.dot_dimension_numbers<[1], [0], [0], [1], [0, 0, 1, 1], [], []>} : vector<2x32xf32>, vector<32x128xf32>, vector<2x128xf32> -> vector<2x128xf32>
    %144 = arith.addf %142, %143 : vector<2x128xf32>
    %145 = arith.negf %139 : vector<2x128xf32>
    %146 = math.exp %145 : vector<2x128xf32>
    %cst_55 = arith.constant 1.000000e+00 : f32
    %147 = vector.broadcast %cst_55 : f32 to vector<2x128xf32>
    %148 = arith.addf %147, %146 : vector<2x128xf32>
    %149 = arith.divf %147, %148 : vector<2x128xf32>
    %150 = math.tanh %139 : vector<2x128xf32>
    %151 = vector.extract_strided_slice %149 {offsets = [0, 32], sizes = [2, 32], strides = [1, 1]} : vector<2x128xf32> to vector<2x32xf32>
    %152 = arith.mulf %151, %109 : vector<2x32xf32>
    %153 = vector.extract_strided_slice %149 {offsets = [0, 0], sizes = [2, 32], strides = [1, 1]} : vector<2x128xf32> to vector<2x32xf32>
    %154 = vector.extract_strided_slice %150 {offsets = [0, 64], sizes = [2, 32], strides = [1, 1]} : vector<2x128xf32> to vector<2x32xf32>
    %155 = arith.mulf %153, %154 : vector<2x32xf32>
    %156 = arith.addf %152, %155 : vector<2x32xf32>
    %157 = vector.extract_strided_slice %149 {offsets = [0, 96], sizes = [2, 32], strides = [1, 1]} : vector<2x128xf32> to vector<2x32xf32>
    %158 = math.tanh %156 : vector<2x32xf32>
    %159 = arith.mulf %157, %158 : vector<2x32xf32>
    %160 = arith.negf %144 : vector<2x128xf32>
    %161 = math.exp %160 : vector<2x128xf32>
    %cst_56 = arith.constant 1.000000e+00 : f32
    %162 = vector.broadcast %cst_56 : f32 to vector<2x128xf32>
    %163 = arith.addf %162, %161 : vector<2x128xf32>
    %164 = arith.divf %162, %163 : vector<2x128xf32>
    %165 = math.tanh %144 : vector<2x128xf32>
    %166 = vector.extract_strided_slice %164 {offsets = [0, 32], sizes = [2, 32], strides = [1, 1]} : vector<2x128xf32> to vector<2x32xf32>
    %167 = arith.mulf %166, %124 : vector<2x32xf32>
    %168 = vector.extract_strided_slice %164 {offsets = [0, 0], sizes = [2, 32], strides = [1, 1]} : vector<2x128xf32> to vector<2x32xf32>
    %169 = vector.extract_strided_slice %165 {offsets = [0, 64], sizes = [2, 32], strides = [1, 1]} : vector<2x128xf32> to vector<2x32xf32>
    %170 = arith.mulf %168, %169 : vector<2x32xf32>
    %171 = arith.addf %167, %170 : vector<2x32xf32>
    %172 = vector.extract_strided_slice %164 {offsets = [0, 96], sizes = [2, 32], strides = [1, 1]} : vector<2x128xf32> to vector<2x32xf32>
    %173 = math.tanh %171 : vector<2x32xf32>
    %174 = arith.mulf %172, %173 : vector<2x32xf32>
    %c2_i32_57 = arith.constant 2 : i32
    %175 = arith.muli %c2_i32_47, %c2_i32_57 : i32
    %176 = arith.index_cast %175 : i32 to index
    %c0_58 = arith.constant 0 : index
    %177 = vector.load %arg30[%176, %c0_58] : memref<16x32xf32, #tpu.memory_space<vmem>>, vector<2x32xf32>
    tpu.vector_store %arg30[%176, %c0_58], %159 {strides = array<i32>} : memref<16x32xf32, #tpu.memory_space<vmem>>, vector<2x32xf32>,
    %c2_i32_59 = arith.constant 2 : i32
    %178 = arith.muli %134, %c2_i32_59 : i32
    %179 = arith.index_cast %178 : i32 to index
    %c0_60 = arith.constant 0 : index
    %180 = vector.load %arg31[%179, %c0_60] : memref<16x32xf32, #tpu.memory_space<vmem>>, vector<2x32xf32>
    tpu.vector_store %arg31[%179, %c0_60], %174 {strides = array<i32>} : memref<16x32xf32, #tpu.memory_space<vmem>>, vector<2x32xf32>,
    %c3_i32 = arith.constant 3 : i32
    %c7_i32_61 = arith.constant 7 : i32
    %181 = arith.subi %c7_i32_61, %c3_i32 : i32
    %c2_i32_62 = arith.constant 2 : i32
    %182 = arith.muli %c3_i32, %c2_i32_62 : i32
    %183 = arith.index_cast %182 : i32 to index
    %c0_63 = arith.constant 0 : index
    %184 = vector.load %arg28[%183, %c0_63] : memref<16x128xf32, #tpu.memory_space<vmem>>, vector<2x128xf32>
    %cst_64 = arith.constant dense<0.000000e+00> : vector<2x128xf32>
    %185 = tpu.matmul %159, %37, %cst_64 {dimension_numbers = #tpu.dot_dimension_numbers<[1], [0], [0], [1], [0, 0, 1, 1], [], []>} : vector<2x32xf32>, vector<32x128xf32>, vector<2x128xf32> -> vector<2x128xf32>
    %186 = arith.addf %184, %185 : vector<2x128xf32>
    %c2_i32_65 = arith.constant 2 : i32
    %187 = arith.muli %181, %c2_i32_65 : i32
    %188 = arith.index_cast %187 : i32 to index
    %c0_66 = arith.constant 0 : index
    %189 = vector.load %arg29[%188, %c0_66] : memref<16x128xf32, #tpu.memory_space<vmem>>, vector<2x128xf32>
    %cst_67 = arith.constant dense<0.000000e+00> : vector<2x128xf32>
    %190 = tpu.matmul %174, %39, %cst_67 {dimension_numbers = #tpu.dot_dimension_numbers<[1], [0], [0], [1], [0, 0, 1, 1], [], []>} : vector<2x32xf32>, vector<32x128xf32>, vector<2x128xf32> -> vector<2x128xf32>
    %191 = arith.addf %189, %190 : vector<2x128xf32>
    %192 = arith.negf %186 : vector<2x128xf32>
    %193 = math.exp %192 : vector<2x128xf32>
    %cst_68 = arith.constant 1.000000e+00 : f32
    %194 = vector.broadcast %cst_68 : f32 to vector<2x128xf32>
    %195 = arith.addf %194, %193 : vector<2x128xf32>
    %196 = arith.divf %194, %195 : vector<2x128xf32>
    %197 = math.tanh %186 : vector<2x128xf32>
    %198 = vector.extract_strided_slice %196 {offsets = [0, 32], sizes = [2, 32], strides = [1, 1]} : vector<2x128xf32> to vector<2x32xf32>
    %199 = arith.mulf %198, %156 : vector<2x32xf32>
    %200 = vector.extract_strided_slice %196 {offsets = [0, 0], sizes = [2, 32], strides = [1, 1]} : vector<2x128xf32> to vector<2x32xf32>
    %201 = vector.extract_strided_slice %197 {offsets = [0, 64], sizes = [2, 32], strides = [1, 1]} : vector<2x128xf32> to vector<2x32xf32>
    %202 = arith.mulf %200, %201 : vector<2x32xf32>
    %203 = arith.addf %199, %202 : vector<2x32xf32>
    %204 = vector.extract_strided_slice %196 {offsets = [0, 96], sizes = [2, 32], strides = [1, 1]} : vector<2x128xf32> to vector<2x32xf32>
    %205 = math.tanh %203 : vector<2x32xf32>
    %206 = arith.mulf %204, %205 : vector<2x32xf32>
    %207 = arith.negf %191 : vector<2x128xf32>
    %208 = math.exp %207 : vector<2x128xf32>
    %cst_69 = arith.constant 1.000000e+00 : f32
    %209 = vector.broadcast %cst_69 : f32 to vector<2x128xf32>
    %210 = arith.addf %209, %208 : vector<2x128xf32>
    %211 = arith.divf %209, %210 : vector<2x128xf32>
    %212 = math.tanh %191 : vector<2x128xf32>
    %213 = vector.extract_strided_slice %211 {offsets = [0, 32], sizes = [2, 32], strides = [1, 1]} : vector<2x128xf32> to vector<2x32xf32>
    %214 = arith.mulf %213, %171 : vector<2x32xf32>
    %215 = vector.extract_strided_slice %211 {offsets = [0, 0], sizes = [2, 32], strides = [1, 1]} : vector<2x128xf32> to vector<2x32xf32>
    %216 = vector.extract_strided_slice %212 {offsets = [0, 64], sizes = [2, 32], strides = [1, 1]} : vector<2x128xf32> to vector<2x32xf32>
    %217 = arith.mulf %215, %216 : vector<2x32xf32>
    %218 = arith.addf %214, %217 : vector<2x32xf32>
    %219 = vector.extract_strided_slice %211 {offsets = [0, 96], sizes = [2, 32], strides = [1, 1]} : vector<2x128xf32> to vector<2x32xf32>
    %220 = math.tanh %218 : vector<2x32xf32>
    %221 = arith.mulf %219, %220 : vector<2x32xf32>
    %c2_i32_70 = arith.constant 2 : i32
    %222 = arith.muli %c3_i32, %c2_i32_70 : i32
    %223 = arith.index_cast %222 : i32 to index
    %c0_71 = arith.constant 0 : index
    %224 = vector.load %arg30[%223, %c0_71] : memref<16x32xf32, #tpu.memory_space<vmem>>, vector<2x32xf32>
    tpu.vector_store %arg30[%223, %c0_71], %206 {strides = array<i32>} : memref<16x32xf32, #tpu.memory_space<vmem>>, vector<2x32xf32>,
    %c2_i32_72 = arith.constant 2 : i32
    %225 = arith.muli %181, %c2_i32_72 : i32
    %226 = arith.index_cast %225 : i32 to index
    %c0_73 = arith.constant 0 : index
    %227 = vector.load %arg31[%226, %c0_73] : memref<16x32xf32, #tpu.memory_space<vmem>>, vector<2x32xf32>
    tpu.vector_store %arg31[%226, %c0_73], %221 {strides = array<i32>} : memref<16x32xf32, #tpu.memory_space<vmem>>, vector<2x32xf32>,
    %c4_i32 = arith.constant 4 : i32
    %c7_i32_74 = arith.constant 7 : i32
    %228 = arith.subi %c7_i32_74, %c4_i32 : i32
    %c2_i32_75 = arith.constant 2 : i32
    %229 = arith.muli %c4_i32, %c2_i32_75 : i32
    %230 = arith.index_cast %229 : i32 to index
    %c0_76 = arith.constant 0 : index
    %231 = vector.load %arg28[%230, %c0_76] : memref<16x128xf32, #tpu.memory_space<vmem>>, vector<2x128xf32>
    %cst_77 = arith.constant dense<0.000000e+00> : vector<2x128xf32>
    %232 = tpu.matmul %206, %37, %cst_77 {dimension_numbers = #tpu.dot_dimension_numbers<[1], [0], [0], [1], [0, 0, 1, 1], [], []>} : vector<2x32xf32>, vector<32x128xf32>, vector<2x128xf32> -> vector<2x128xf32>
    %233 = arith.addf %231, %232 : vector<2x128xf32>
    %c2_i32_78 = arith.constant 2 : i32
    %234 = arith.muli %228, %c2_i32_78 : i32
    %235 = arith.index_cast %234 : i32 to index
    %c0_79 = arith.constant 0 : index
    %236 = vector.load %arg29[%235, %c0_79] : memref<16x128xf32, #tpu.memory_space<vmem>>, vector<2x128xf32>
    %cst_80 = arith.constant dense<0.000000e+00> : vector<2x128xf32>
    %237 = tpu.matmul %221, %39, %cst_80 {dimension_numbers = #tpu.dot_dimension_numbers<[1], [0], [0], [1], [0, 0, 1, 1], [], []>} : vector<2x32xf32>, vector<32x128xf32>, vector<2x128xf32> -> vector<2x128xf32>
    %238 = arith.addf %236, %237 : vector<2x128xf32>
    %239 = arith.negf %233 : vector<2x128xf32>
    %240 = math.exp %239 : vector<2x128xf32>
    %cst_81 = arith.constant 1.000000e+00 : f32
    %241 = vector.broadcast %cst_81 : f32 to vector<2x128xf32>
    %242 = arith.addf %241, %240 : vector<2x128xf32>
    %243 = arith.divf %241, %242 : vector<2x128xf32>
    %244 = math.tanh %233 : vector<2x128xf32>
    %245 = vector.extract_strided_slice %243 {offsets = [0, 32], sizes = [2, 32], strides = [1, 1]} : vector<2x128xf32> to vector<2x32xf32>
    %246 = arith.mulf %245, %203 : vector<2x32xf32>
    %247 = vector.extract_strided_slice %243 {offsets = [0, 0], sizes = [2, 32], strides = [1, 1]} : vector<2x128xf32> to vector<2x32xf32>
    %248 = vector.extract_strided_slice %244 {offsets = [0, 64], sizes = [2, 32], strides = [1, 1]} : vector<2x128xf32> to vector<2x32xf32>
    %249 = arith.mulf %247, %248 : vector<2x32xf32>
    %250 = arith.addf %246, %249 : vector<2x32xf32>
    %251 = vector.extract_strided_slice %243 {offsets = [0, 96], sizes = [2, 32], strides = [1, 1]} : vector<2x128xf32> to vector<2x32xf32>
    %252 = math.tanh %250 : vector<2x32xf32>
    %253 = arith.mulf %251, %252 : vector<2x32xf32>
    %254 = arith.negf %238 : vector<2x128xf32>
    %255 = math.exp %254 : vector<2x128xf32>
    %cst_82 = arith.constant 1.000000e+00 : f32
    %256 = vector.broadcast %cst_82 : f32 to vector<2x128xf32>
    %257 = arith.addf %256, %255 : vector<2x128xf32>
    %258 = arith.divf %256, %257 : vector<2x128xf32>
    %259 = math.tanh %238 : vector<2x128xf32>
    %260 = vector.extract_strided_slice %258 {offsets = [0, 32], sizes = [2, 32], strides = [1, 1]} : vector<2x128xf32> to vector<2x32xf32>
    %261 = arith.mulf %260, %218 : vector<2x32xf32>
    %262 = vector.extract_strided_slice %258 {offsets = [0, 0], sizes = [2, 32], strides = [1, 1]} : vector<2x128xf32> to vector<2x32xf32>
    %263 = vector.extract_strided_slice %259 {offsets = [0, 64], sizes = [2, 32], strides = [1, 1]} : vector<2x128xf32> to vector<2x32xf32>
    %264 = arith.mulf %262, %263 : vector<2x32xf32>
    %265 = arith.addf %261, %264 : vector<2x32xf32>
    %266 = vector.extract_strided_slice %258 {offsets = [0, 96], sizes = [2, 32], strides = [1, 1]} : vector<2x128xf32> to vector<2x32xf32>
    %267 = math.tanh %265 : vector<2x32xf32>
    %268 = arith.mulf %266, %267 : vector<2x32xf32>
    %c2_i32_83 = arith.constant 2 : i32
    %269 = arith.muli %c4_i32, %c2_i32_83 : i32
    %270 = arith.index_cast %269 : i32 to index
    %c0_84 = arith.constant 0 : index
    %271 = vector.load %arg30[%270, %c0_84] : memref<16x32xf32, #tpu.memory_space<vmem>>, vector<2x32xf32>
    tpu.vector_store %arg30[%270, %c0_84], %253 {strides = array<i32>} : memref<16x32xf32, #tpu.memory_space<vmem>>, vector<2x32xf32>,
    %c2_i32_85 = arith.constant 2 : i32
    %272 = arith.muli %228, %c2_i32_85 : i32
    %273 = arith.index_cast %272 : i32 to index
    %c0_86 = arith.constant 0 : index
    %274 = vector.load %arg31[%273, %c0_86] : memref<16x32xf32, #tpu.memory_space<vmem>>, vector<2x32xf32>
    tpu.vector_store %arg31[%273, %c0_86], %268 {strides = array<i32>} : memref<16x32xf32, #tpu.memory_space<vmem>>, vector<2x32xf32>,
    %c5_i32 = arith.constant 5 : i32
    %c7_i32_87 = arith.constant 7 : i32
    %275 = arith.subi %c7_i32_87, %c5_i32 : i32
    %c2_i32_88 = arith.constant 2 : i32
    %276 = arith.muli %c5_i32, %c2_i32_88 : i32
    %277 = arith.index_cast %276 : i32 to index
    %c0_89 = arith.constant 0 : index
    %278 = vector.load %arg28[%277, %c0_89] : memref<16x128xf32, #tpu.memory_space<vmem>>, vector<2x128xf32>
    %cst_90 = arith.constant dense<0.000000e+00> : vector<2x128xf32>
    %279 = tpu.matmul %253, %37, %cst_90 {dimension_numbers = #tpu.dot_dimension_numbers<[1], [0], [0], [1], [0, 0, 1, 1], [], []>} : vector<2x32xf32>, vector<32x128xf32>, vector<2x128xf32> -> vector<2x128xf32>
    %280 = arith.addf %278, %279 : vector<2x128xf32>
    %c2_i32_91 = arith.constant 2 : i32
    %281 = arith.muli %275, %c2_i32_91 : i32
    %282 = arith.index_cast %281 : i32 to index
    %c0_92 = arith.constant 0 : index
    %283 = vector.load %arg29[%282, %c0_92] : memref<16x128xf32, #tpu.memory_space<vmem>>, vector<2x128xf32>
    %cst_93 = arith.constant dense<0.000000e+00> : vector<2x128xf32>
    %284 = tpu.matmul %268, %39, %cst_93 {dimension_numbers = #tpu.dot_dimension_numbers<[1], [0], [0], [1], [0, 0, 1, 1], [], []>} : vector<2x32xf32>, vector<32x128xf32>, vector<2x128xf32> -> vector<2x128xf32>
    %285 = arith.addf %283, %284 : vector<2x128xf32>
    %286 = arith.negf %280 : vector<2x128xf32>
    %287 = math.exp %286 : vector<2x128xf32>
    %cst_94 = arith.constant 1.000000e+00 : f32
    %288 = vector.broadcast %cst_94 : f32 to vector<2x128xf32>
    %289 = arith.addf %288, %287 : vector<2x128xf32>
    %290 = arith.divf %288, %289 : vector<2x128xf32>
    %291 = math.tanh %280 : vector<2x128xf32>
    %292 = vector.extract_strided_slice %290 {offsets = [0, 32], sizes = [2, 32], strides = [1, 1]} : vector<2x128xf32> to vector<2x32xf32>
    %293 = arith.mulf %292, %250 : vector<2x32xf32>
    %294 = vector.extract_strided_slice %290 {offsets = [0, 0], sizes = [2, 32], strides = [1, 1]} : vector<2x128xf32> to vector<2x32xf32>
    %295 = vector.extract_strided_slice %291 {offsets = [0, 64], sizes = [2, 32], strides = [1, 1]} : vector<2x128xf32> to vector<2x32xf32>
    %296 = arith.mulf %294, %295 : vector<2x32xf32>
    %297 = arith.addf %293, %296 : vector<2x32xf32>
    %298 = vector.extract_strided_slice %290 {offsets = [0, 96], sizes = [2, 32], strides = [1, 1]} : vector<2x128xf32> to vector<2x32xf32>
    %299 = math.tanh %297 : vector<2x32xf32>
    %300 = arith.mulf %298, %299 : vector<2x32xf32>
    %301 = arith.negf %285 : vector<2x128xf32>
    %302 = math.exp %301 : vector<2x128xf32>
    %cst_95 = arith.constant 1.000000e+00 : f32
    %303 = vector.broadcast %cst_95 : f32 to vector<2x128xf32>
    %304 = arith.addf %303, %302 : vector<2x128xf32>
    %305 = arith.divf %303, %304 : vector<2x128xf32>
    %306 = math.tanh %285 : vector<2x128xf32>
    %307 = vector.extract_strided_slice %305 {offsets = [0, 32], sizes = [2, 32], strides = [1, 1]} : vector<2x128xf32> to vector<2x32xf32>
    %308 = arith.mulf %307, %265 : vector<2x32xf32>
    %309 = vector.extract_strided_slice %305 {offsets = [0, 0], sizes = [2, 32], strides = [1, 1]} : vector<2x128xf32> to vector<2x32xf32>
    %310 = vector.extract_strided_slice %306 {offsets = [0, 64], sizes = [2, 32], strides = [1, 1]} : vector<2x128xf32> to vector<2x32xf32>
    %311 = arith.mulf %309, %310 : vector<2x32xf32>
    %312 = arith.addf %308, %311 : vector<2x32xf32>
    %313 = vector.extract_strided_slice %305 {offsets = [0, 96], sizes = [2, 32], strides = [1, 1]} : vector<2x128xf32> to vector<2x32xf32>
    %314 = math.tanh %312 : vector<2x32xf32>
    %315 = arith.mulf %313, %314 : vector<2x32xf32>
    %c2_i32_96 = arith.constant 2 : i32
    %316 = arith.muli %c5_i32, %c2_i32_96 : i32
    %317 = arith.index_cast %316 : i32 to index
    %c0_97 = arith.constant 0 : index
    %318 = vector.load %arg30[%317, %c0_97] : memref<16x32xf32, #tpu.memory_space<vmem>>, vector<2x32xf32>
    tpu.vector_store %arg30[%317, %c0_97], %300 {strides = array<i32>} : memref<16x32xf32, #tpu.memory_space<vmem>>, vector<2x32xf32>,
    %c2_i32_98 = arith.constant 2 : i32
    %319 = arith.muli %275, %c2_i32_98 : i32
    %320 = arith.index_cast %319 : i32 to index
    %c0_99 = arith.constant 0 : index
    %321 = vector.load %arg31[%320, %c0_99] : memref<16x32xf32, #tpu.memory_space<vmem>>, vector<2x32xf32>
    tpu.vector_store %arg31[%320, %c0_99], %315 {strides = array<i32>} : memref<16x32xf32, #tpu.memory_space<vmem>>, vector<2x32xf32>,
    %c6_i32 = arith.constant 6 : i32
    %c7_i32_100 = arith.constant 7 : i32
    %322 = arith.subi %c7_i32_100, %c6_i32 : i32
    %c2_i32_101 = arith.constant 2 : i32
    %323 = arith.muli %c6_i32, %c2_i32_101 : i32
    %324 = arith.index_cast %323 : i32 to index
    %c0_102 = arith.constant 0 : index
    %325 = vector.load %arg28[%324, %c0_102] : memref<16x128xf32, #tpu.memory_space<vmem>>, vector<2x128xf32>
    %cst_103 = arith.constant dense<0.000000e+00> : vector<2x128xf32>
    %326 = tpu.matmul %300, %37, %cst_103 {dimension_numbers = #tpu.dot_dimension_numbers<[1], [0], [0], [1], [0, 0, 1, 1], [], []>} : vector<2x32xf32>, vector<32x128xf32>, vector<2x128xf32> -> vector<2x128xf32>
    %327 = arith.addf %325, %326 : vector<2x128xf32>
    %c2_i32_104 = arith.constant 2 : i32
    %328 = arith.muli %322, %c2_i32_104 : i32
    %329 = arith.index_cast %328 : i32 to index
    %c0_105 = arith.constant 0 : index
    %330 = vector.load %arg29[%329, %c0_105] : memref<16x128xf32, #tpu.memory_space<vmem>>, vector<2x128xf32>
    %cst_106 = arith.constant dense<0.000000e+00> : vector<2x128xf32>
    %331 = tpu.matmul %315, %39, %cst_106 {dimension_numbers = #tpu.dot_dimension_numbers<[1], [0], [0], [1], [0, 0, 1, 1], [], []>} : vector<2x32xf32>, vector<32x128xf32>, vector<2x128xf32> -> vector<2x128xf32>
    %332 = arith.addf %330, %331 : vector<2x128xf32>
    %333 = arith.negf %327 : vector<2x128xf32>
    %334 = math.exp %333 : vector<2x128xf32>
    %cst_107 = arith.constant 1.000000e+00 : f32
    %335 = vector.broadcast %cst_107 : f32 to vector<2x128xf32>
    %336 = arith.addf %335, %334 : vector<2x128xf32>
    %337 = arith.divf %335, %336 : vector<2x128xf32>
    %338 = math.tanh %327 : vector<2x128xf32>
    %339 = vector.extract_strided_slice %337 {offsets = [0, 32], sizes = [2, 32], strides = [1, 1]} : vector<2x128xf32> to vector<2x32xf32>
    %340 = arith.mulf %339, %297 : vector<2x32xf32>
    %341 = vector.extract_strided_slice %337 {offsets = [0, 0], sizes = [2, 32], strides = [1, 1]} : vector<2x128xf32> to vector<2x32xf32>
    %342 = vector.extract_strided_slice %338 {offsets = [0, 64], sizes = [2, 32], strides = [1, 1]} : vector<2x128xf32> to vector<2x32xf32>
    %343 = arith.mulf %341, %342 : vector<2x32xf32>
    %344 = arith.addf %340, %343 : vector<2x32xf32>
    %345 = vector.extract_strided_slice %337 {offsets = [0, 96], sizes = [2, 32], strides = [1, 1]} : vector<2x128xf32> to vector<2x32xf32>
    %346 = math.tanh %344 : vector<2x32xf32>
    %347 = arith.mulf %345, %346 : vector<2x32xf32>
    %348 = arith.negf %332 : vector<2x128xf32>
    %349 = math.exp %348 : vector<2x128xf32>
    %cst_108 = arith.constant 1.000000e+00 : f32
    %350 = vector.broadcast %cst_108 : f32 to vector<2x128xf32>
    %351 = arith.addf %350, %349 : vector<2x128xf32>
    %352 = arith.divf %350, %351 : vector<2x128xf32>
    %353 = math.tanh %332 : vector<2x128xf32>
    %354 = vector.extract_strided_slice %352 {offsets = [0, 32], sizes = [2, 32], strides = [1, 1]} : vector<2x128xf32> to vector<2x32xf32>
    %355 = arith.mulf %354, %312 : vector<2x32xf32>
    %356 = vector.extract_strided_slice %352 {offsets = [0, 0], sizes = [2, 32], strides = [1, 1]} : vector<2x128xf32> to vector<2x32xf32>
    %357 = vector.extract_strided_slice %353 {offsets = [0, 64], sizes = [2, 32], strides = [1, 1]} : vector<2x128xf32> to vector<2x32xf32>
    %358 = arith.mulf %356, %357 : vector<2x32xf32>
    %359 = arith.addf %355, %358 : vector<2x32xf32>
    %360 = vector.extract_strided_slice %352 {offsets = [0, 96], sizes = [2, 32], strides = [1, 1]} : vector<2x128xf32> to vector<2x32xf32>
    %361 = math.tanh %359 : vector<2x32xf32>
    %362 = arith.mulf %360, %361 : vector<2x32xf32>
    %c2_i32_109 = arith.constant 2 : i32
    %363 = arith.muli %c6_i32, %c2_i32_109 : i32
    %364 = arith.index_cast %363 : i32 to index
    %c0_110 = arith.constant 0 : index
    %365 = vector.load %arg30[%364, %c0_110] : memref<16x32xf32, #tpu.memory_space<vmem>>, vector<2x32xf32>
    tpu.vector_store %arg30[%364, %c0_110], %347 {strides = array<i32>} : memref<16x32xf32, #tpu.memory_space<vmem>>, vector<2x32xf32>,
    %c2_i32_111 = arith.constant 2 : i32
    %366 = arith.muli %322, %c2_i32_111 : i32
    %367 = arith.index_cast %366 : i32 to index
    %c0_112 = arith.constant 0 : index
    %368 = vector.load %arg31[%367, %c0_112] : memref<16x32xf32, #tpu.memory_space<vmem>>, vector<2x32xf32>
    tpu.vector_store %arg31[%367, %c0_112], %362 {strides = array<i32>} : memref<16x32xf32, #tpu.memory_space<vmem>>, vector<2x32xf32>,
    %c7_i32_113 = arith.constant 7 : i32
    %c7_i32_114 = arith.constant 7 : i32
    %369 = arith.subi %c7_i32_114, %c7_i32_113 : i32
    %c2_i32_115 = arith.constant 2 : i32
    %370 = arith.muli %c7_i32_113, %c2_i32_115 : i32
    %371 = arith.index_cast %370 : i32 to index
    %c0_116 = arith.constant 0 : index
    %372 = vector.load %arg28[%371, %c0_116] : memref<16x128xf32, #tpu.memory_space<vmem>>, vector<2x128xf32>
    %cst_117 = arith.constant dense<0.000000e+00> : vector<2x128xf32>
    %373 = tpu.matmul %347, %37, %cst_117 {dimension_numbers = #tpu.dot_dimension_numbers<[1], [0], [0], [1], [0, 0, 1, 1], [], []>} : vector<2x32xf32>, vector<32x128xf32>, vector<2x128xf32> -> vector<2x128xf32>
    %374 = arith.addf %372, %373 : vector<2x128xf32>
    %c2_i32_118 = arith.constant 2 : i32
    %375 = arith.muli %369, %c2_i32_118 : i32
    %376 = arith.index_cast %375 : i32 to index
    %c0_119 = arith.constant 0 : index
    %377 = vector.load %arg29[%376, %c0_119] : memref<16x128xf32, #tpu.memory_space<vmem>>, vector<2x128xf32>
    %cst_120 = arith.constant dense<0.000000e+00> : vector<2x128xf32>
    %378 = tpu.matmul %362, %39, %cst_120 {dimension_numbers = #tpu.dot_dimension_numbers<[1], [0], [0], [1], [0, 0, 1, 1], [], []>} : vector<2x32xf32>, vector<32x128xf32>, vector<2x128xf32> -> vector<2x128xf32>
    %379 = arith.addf %377, %378 : vector<2x128xf32>
    %380 = arith.negf %374 : vector<2x128xf32>
    %381 = math.exp %380 : vector<2x128xf32>
    %cst_121 = arith.constant 1.000000e+00 : f32
    %382 = vector.broadcast %cst_121 : f32 to vector<2x128xf32>
    %383 = arith.addf %382, %381 : vector<2x128xf32>
    %384 = arith.divf %382, %383 : vector<2x128xf32>
    %385 = math.tanh %374 : vector<2x128xf32>
    %386 = vector.extract_strided_slice %384 {offsets = [0, 32], sizes = [2, 32], strides = [1, 1]} : vector<2x128xf32> to vector<2x32xf32>
    %387 = arith.mulf %386, %344 : vector<2x32xf32>
    %388 = vector.extract_strided_slice %384 {offsets = [0, 0], sizes = [2, 32], strides = [1, 1]} : vector<2x128xf32> to vector<2x32xf32>
    %389 = vector.extract_strided_slice %385 {offsets = [0, 64], sizes = [2, 32], strides = [1, 1]} : vector<2x128xf32> to vector<2x32xf32>
    %390 = arith.mulf %388, %389 : vector<2x32xf32>
    %391 = arith.addf %387, %390 : vector<2x32xf32>
    %392 = vector.extract_strided_slice %384 {offsets = [0, 96], sizes = [2, 32], strides = [1, 1]} : vector<2x128xf32> to vector<2x32xf32>
    %393 = math.tanh %391 : vector<2x32xf32>
    %394 = arith.mulf %392, %393 : vector<2x32xf32>
    %395 = arith.negf %379 : vector<2x128xf32>
    %396 = math.exp %395 : vector<2x128xf32>
    %cst_122 = arith.constant 1.000000e+00 : f32
    %397 = vector.broadcast %cst_122 : f32 to vector<2x128xf32>
    %398 = arith.addf %397, %396 : vector<2x128xf32>
    %399 = arith.divf %397, %398 : vector<2x128xf32>
    %400 = math.tanh %379 : vector<2x128xf32>
    %401 = vector.extract_strided_slice %399 {offsets = [0, 32], sizes = [2, 32], strides = [1, 1]} : vector<2x128xf32> to vector<2x32xf32>
    %402 = arith.mulf %401, %359 : vector<2x32xf32>
    %403 = vector.extract_strided_slice %399 {offsets = [0, 0], sizes = [2, 32], strides = [1, 1]} : vector<2x128xf32> to vector<2x32xf32>
    %404 = vector.extract_strided_slice %400 {offsets = [0, 64], sizes = [2, 32], strides = [1, 1]} : vector<2x128xf32> to vector<2x32xf32>
    %405 = arith.mulf %403, %404 : vector<2x32xf32>
    %406 = arith.addf %402, %405 : vector<2x32xf32>
    %407 = vector.extract_strided_slice %399 {offsets = [0, 96], sizes = [2, 32], strides = [1, 1]} : vector<2x128xf32> to vector<2x32xf32>
    %408 = math.tanh %406 : vector<2x32xf32>
    %409 = arith.mulf %407, %408 : vector<2x32xf32>
    %c2_i32_123 = arith.constant 2 : i32
    %410 = arith.muli %c7_i32_113, %c2_i32_123 : i32
    %411 = arith.index_cast %410 : i32 to index
    %c0_124 = arith.constant 0 : index
    %412 = vector.load %arg30[%411, %c0_124] : memref<16x32xf32, #tpu.memory_space<vmem>>, vector<2x32xf32>
    tpu.vector_store %arg30[%411, %c0_124], %394 {strides = array<i32>} : memref<16x32xf32, #tpu.memory_space<vmem>>, vector<2x32xf32>,
    %c2_i32_125 = arith.constant 2 : i32
    %413 = arith.muli %369, %c2_i32_125 : i32
    %414 = arith.index_cast %413 : i32 to index
    %c0_126 = arith.constant 0 : index
    %415 = vector.load %arg31[%414, %c0_126] : memref<16x32xf32, #tpu.memory_space<vmem>>, vector<2x32xf32>
    tpu.vector_store %arg31[%414, %c0_126], %409 {strides = array<i32>} : memref<16x32xf32, #tpu.memory_space<vmem>>, vector<2x32xf32>,
    %c8_i32 = arith.constant 8 : i32
    %c0_127 = arith.constant 0 : index
    %c0_128 = arith.constant 0 : index
    %416 = vector.load %arg30[%c0_127, %c0_128] : memref<16x32xf32, #tpu.memory_space<vmem>>, vector<16x32xf32>
    %c0_129 = arith.constant 0 : index
    %c0_130 = arith.constant 0 : index
    %417 = vector.load %arg31[%c0_129, %c0_130] : memref<16x32xf32, #tpu.memory_space<vmem>>, vector<16x32xf32>
    %cst_131 = arith.constant dense<0.000000e+00> : vector<16xf32>
    %418 = vector.multi_reduction <add>, %416, %cst_131 [1] : vector<16x32xf32> to vector<16xf32>
    %419 = vector.shape_cast %418 : vector<16xf32> to vector<16x1xf32>
    %cst_132 = arith.constant dense<0.000000e+00> : vector<16xf32>
    %420 = vector.multi_reduction <add>, %417, %cst_132 [1] : vector<16x32xf32> to vector<16xf32>
    %421 = vector.shape_cast %420 : vector<16xf32> to vector<16x1xf32>
    %422 = arith.addf %419, %421 : vector<16x1xf32>
    %cst_133 = arith.constant 1.562500e-02 : f32
    %423 = vector.broadcast %cst_133 : f32 to vector<16x1xf32>
    %424 = arith.mulf %422, %423 : vector<16x1xf32>
    %425 = vector.broadcast %424 : vector<16x1xf32> to vector<16x32xf32>
    %426 = arith.subf %416, %425 : vector<16x32xf32>
    %427 = vector.broadcast %424 : vector<16x1xf32> to vector<16x32xf32>
    %428 = arith.subf %417, %427 : vector<16x32xf32>
    %429 = arith.mulf %426, %426 : vector<16x32xf32>
    %cst_134 = arith.constant dense<0.000000e+00> : vector<16xf32>
    %430 = vector.multi_reduction <add>, %429, %cst_134 [1] : vector<16x32xf32> to vector<16xf32>
    %431 = vector.shape_cast %430 : vector<16xf32> to vector<16x1xf32>
    %432 = arith.mulf %428, %428 : vector<16x32xf32>
    %cst_135 = arith.constant dense<0.000000e+00> : vector<16xf32>
    %433 = vector.multi_reduction <add>, %432, %cst_135 [1] : vector<16x32xf32> to vector<16xf32>
    %434 = vector.shape_cast %433 : vector<16xf32> to vector<16x1xf32>
    %435 = arith.addf %431, %434 : vector<16x1xf32>
    %cst_136 = arith.constant 1.562500e-02 : f32
    %436 = vector.broadcast %cst_136 : f32 to vector<16x1xf32>
    %437 = arith.mulf %435, %436 : vector<16x1xf32>
    %cst_137 = arith.constant 9.99999974E-6 : f32
    %438 = vector.broadcast %cst_137 : f32 to vector<16x1xf32>
    %439 = arith.addf %437, %438 : vector<16x1xf32>
    %440 = math.rsqrt %439 : vector<16x1xf32>
    %441 = vector.broadcast %440 : vector<16x1xf32> to vector<16x32xf32>
    %442 = arith.mulf %426, %441 : vector<16x32xf32>
    %c0_138 = arith.constant 0 : index
    %c0_139 = arith.constant 0 : index
    %443 = vector.load %arg7[%c0_138, %c0_139] : memref<1x32xf32, #tpu.memory_space<vmem>>, vector<1x32xf32>
    %444 = vector.broadcast %443 : vector<1x32xf32> to vector<16x32xf32>
    %445 = arith.mulf %442, %444 : vector<16x32xf32>
    %c0_140 = arith.constant 0 : index
    %c0_141 = arith.constant 0 : index
    %446 = vector.load %arg8[%c0_140, %c0_141] : memref<1x32xf32, #tpu.memory_space<vmem>>, vector<1x32xf32>
    %447 = vector.broadcast %446 : vector<1x32xf32> to vector<16x32xf32>
    %448 = arith.addf %445, %447 : vector<16x32xf32>
    %449 = vector.broadcast %440 : vector<16x1xf32> to vector<16x32xf32>
    %450 = arith.mulf %428, %449 : vector<16x32xf32>
    %c0_142 = arith.constant 0 : index
    %c0_143 = arith.constant 0 : index
    %451 = vector.load %arg9[%c0_142, %c0_143] : memref<1x32xf32, #tpu.memory_space<vmem>>, vector<1x32xf32>
    %452 = vector.broadcast %451 : vector<1x32xf32> to vector<16x32xf32>
    %453 = arith.mulf %450, %452 : vector<16x32xf32>
    %c0_144 = arith.constant 0 : index
    %c0_145 = arith.constant 0 : index
    %454 = vector.load %arg10[%c0_144, %c0_145] : memref<1x32xf32, #tpu.memory_space<vmem>>, vector<1x32xf32>
    %455 = vector.broadcast %454 : vector<1x32xf32> to vector<16x32xf32>
    %456 = arith.addf %453, %455 : vector<16x32xf32>
    %c0_146 = arith.constant 0 : index
    %c0_147 = arith.constant 0 : index
    %457 = vector.load %arg11[%c0_146, %c0_147] : memref<32x128xbf16, #tpu.memory_space<vmem>>, vector<32x128xbf16>
    %458 = arith.extf %457 : vector<32x128xbf16> to vector<32x128xf32>
    %cst_148 = arith.constant dense<0.000000e+00> : vector<16x128xf32>
    %459 = tpu.matmul %448, %458, %cst_148 {dimension_numbers = #tpu.dot_dimension_numbers<[1], [0], [0], [1], [0, 0, 1, 1], [], []>} : vector<16x32xf32>, vector<32x128xf32>, vector<16x128xf32> -> vector<16x128xf32>
    %c0_149 = arith.constant 0 : index
    %c0_150 = arith.constant 0 : index
    %460 = vector.load %arg12[%c0_149, %c0_150] : memref<32x128xbf16, #tpu.memory_space<vmem>>, vector<32x128xbf16>
    %461 = arith.extf %460 : vector<32x128xbf16> to vector<32x128xf32>
    %cst_151 = arith.constant dense<0.000000e+00> : vector<16x128xf32>
    %462 = tpu.matmul %456, %461, %cst_151 {dimension_numbers = #tpu.dot_dimension_numbers<[1], [0], [0], [1], [0, 0, 1, 1], [], []>} : vector<16x32xf32>, vector<32x128xf32>, vector<16x128xf32> -> vector<16x128xf32>
    %463 = arith.addf %459, %462 : vector<16x128xf32>
    %c0_152 = arith.constant 0 : index
    %c0_153 = arith.constant 0 : index
    %464 = vector.load %arg13[%c0_152, %c0_153] : memref<1x128xf32, #tpu.memory_space<vmem>>, vector<1x128xf32>
    %465 = vector.broadcast %464 : vector<1x128xf32> to vector<16x128xf32>
    %466 = arith.addf %463, %465 : vector<16x128xf32>
    %c0_154 = arith.constant 0 : index
    %c0_155 = arith.constant 0 : index
    %467 = vector.load %arg32[%c0_154, %c0_155] : memref<16x128xf32, #tpu.memory_space<vmem>>, vector<16x128xf32>
    tpu.vector_store %arg32[%c0_154, %c0_155], %466 {strides = array<i32>} : memref<16x128xf32, #tpu.memory_space<vmem>>, vector<16x128xf32>,
    %c0_156 = arith.constant 0 : index
    %c0_157 = arith.constant 0 : index
    %468 = vector.load %arg14[%c0_156, %c0_157] : memref<32x128xbf16, #tpu.memory_space<vmem>>, vector<32x128xbf16>
    %469 = arith.extf %468 : vector<32x128xbf16> to vector<32x128xf32>
    %c0_i32_158 = arith.constant 0 : i32
    %c2_i32_159 = arith.constant 2 : i32
    %470 = arith.muli %c0_i32_158, %c2_i32_159 : i32
    %471 = arith.index_cast %470 : i32 to index
    %c0_160 = arith.constant 0 : index
    %472 = vector.load %arg32[%471, %c0_160] : memref<16x128xf32, #tpu.memory_space<vmem>>, vector<2x128xf32>
    %cst_161 = arith.constant dense<0.000000e+00> : vector<2x128xf32>
    %473 = tpu.matmul %35, %469, %cst_161 {dimension_numbers = #tpu.dot_dimension_numbers<[1], [0], [0], [1], [0, 0, 1, 1], [], []>} : vector<2x32xf32>, vector<32x128xf32>, vector<2x128xf32> -> vector<2x128xf32>
    %474 = arith.addf %472, %473 : vector<2x128xf32>
    %475 = arith.negf %474 : vector<2x128xf32>
    %476 = math.exp %475 : vector<2x128xf32>
    %cst_162 = arith.constant 1.000000e+00 : f32
    %477 = vector.broadcast %cst_162 : f32 to vector<2x128xf32>
    %478 = arith.addf %477, %476 : vector<2x128xf32>
    %479 = arith.divf %477, %478 : vector<2x128xf32>
    %480 = math.tanh %474 : vector<2x128xf32>
    %481 = vector.extract_strided_slice %479 {offsets = [0, 32], sizes = [2, 32], strides = [1, 1]} : vector<2x128xf32> to vector<2x32xf32>
    %482 = arith.mulf %481, %35 : vector<2x32xf32>
    %483 = vector.extract_strided_slice %479 {offsets = [0, 0], sizes = [2, 32], strides = [1, 1]} : vector<2x128xf32> to vector<2x32xf32>
    %484 = vector.extract_strided_slice %480 {offsets = [0, 64], sizes = [2, 32], strides = [1, 1]} : vector<2x128xf32> to vector<2x32xf32>
    %485 = arith.mulf %483, %484 : vector<2x32xf32>
    %486 = arith.addf %482, %485 : vector<2x32xf32>
    %487 = vector.extract_strided_slice %479 {offsets = [0, 96], sizes = [2, 32], strides = [1, 1]} : vector<2x128xf32> to vector<2x32xf32>
    %488 = math.tanh %486 : vector<2x32xf32>
    %489 = arith.mulf %487, %488 : vector<2x32xf32>
    %c1_i32_163 = arith.constant 1 : i32
    %c2_i32_164 = arith.constant 2 : i32
    %490 = arith.muli %c1_i32_163, %c2_i32_164 : i32
    %491 = arith.index_cast %490 : i32 to index
    %c0_165 = arith.constant 0 : index
    %492 = vector.load %arg32[%491, %c0_165] : memref<16x128xf32, #tpu.memory_space<vmem>>, vector<2x128xf32>
    %cst_166 = arith.constant dense<0.000000e+00> : vector<2x128xf32>
    %493 = tpu.matmul %489, %469, %cst_166 {dimension_numbers = #tpu.dot_dimension_numbers<[1], [0], [0], [1], [0, 0, 1, 1], [], []>} : vector<2x32xf32>, vector<32x128xf32>, vector<2x128xf32> -> vector<2x128xf32>
    %494 = arith.addf %492, %493 : vector<2x128xf32>
    %495 = arith.negf %494 : vector<2x128xf32>
    %496 = math.exp %495 : vector<2x128xf32>
    %cst_167 = arith.constant 1.000000e+00 : f32
    %497 = vector.broadcast %cst_167 : f32 to vector<2x128xf32>
    %498 = arith.addf %497, %496 : vector<2x128xf32>
    %499 = arith.divf %497, %498 : vector<2x128xf32>
    %500 = math.tanh %494 : vector<2x128xf32>
    %501 = vector.extract_strided_slice %499 {offsets = [0, 32], sizes = [2, 32], strides = [1, 1]} : vector<2x128xf32> to vector<2x32xf32>
    %502 = arith.mulf %501, %486 : vector<2x32xf32>
    %503 = vector.extract_strided_slice %499 {offsets = [0, 0], sizes = [2, 32], strides = [1, 1]} : vector<2x128xf32> to vector<2x32xf32>
    %504 = vector.extract_strided_slice %500 {offsets = [0, 64], sizes = [2, 32], strides = [1, 1]} : vector<2x128xf32> to vector<2x32xf32>
    %505 = arith.mulf %503, %504 : vector<2x32xf32>
    %506 = arith.addf %502, %505 : vector<2x32xf32>
    %507 = vector.extract_strided_slice %499 {offsets = [0, 96], sizes = [2, 32], strides = [1, 1]} : vector<2x128xf32> to vector<2x32xf32>
    %508 = math.tanh %506 : vector<2x32xf32>
    %509 = arith.mulf %507, %508 : vector<2x32xf32>
    %c2_i32_168 = arith.constant 2 : i32
    %c2_i32_169 = arith.constant 2 : i32
    %510 = arith.muli %c2_i32_168, %c2_i32_169 : i32
    %511 = arith.index_cast %510 : i32 to index
    %c0_170 = arith.constant 0 : index
    %512 = vector.load %arg32[%511, %c0_170] : memref<16x128xf32, #tpu.memory_space<vmem>>, vector<2x128xf32>
    %cst_171 = arith.constant dense<0.000000e+00> : vector<2x128xf32>
    %513 = tpu.matmul %509, %469, %cst_171 {dimension_numbers = #tpu.dot_dimension_numbers<[1], [0], [0], [1], [0, 0, 1, 1], [], []>} : vector<2x32xf32>, vector<32x128xf32>, vector<2x128xf32> -> vector<2x128xf32>
    %514 = arith.addf %512, %513 : vector<2x128xf32>
    %515 = arith.negf %514 : vector<2x128xf32>
    %516 = math.exp %515 : vector<2x128xf32>
    %cst_172 = arith.constant 1.000000e+00 : f32
    %517 = vector.broadcast %cst_172 : f32 to vector<2x128xf32>
    %518 = arith.addf %517, %516 : vector<2x128xf32>
    %519 = arith.divf %517, %518 : vector<2x128xf32>
    %520 = math.tanh %514 : vector<2x128xf32>
    %521 = vector.extract_strided_slice %519 {offsets = [0, 32], sizes = [2, 32], strides = [1, 1]} : vector<2x128xf32> to vector<2x32xf32>
    %522 = arith.mulf %521, %506 : vector<2x32xf32>
    %523 = vector.extract_strided_slice %519 {offsets = [0, 0], sizes = [2, 32], strides = [1, 1]} : vector<2x128xf32> to vector<2x32xf32>
    %524 = vector.extract_strided_slice %520 {offsets = [0, 64], sizes = [2, 32], strides = [1, 1]} : vector<2x128xf32> to vector<2x32xf32>
    %525 = arith.mulf %523, %524 : vector<2x32xf32>
    %526 = arith.addf %522, %525 : vector<2x32xf32>
    %527 = vector.extract_strided_slice %519 {offsets = [0, 96], sizes = [2, 32], strides = [1, 1]} : vector<2x128xf32> to vector<2x32xf32>
    %528 = math.tanh %526 : vector<2x32xf32>
    %529 = arith.mulf %527, %528 : vector<2x32xf32>
    %c3_i32_173 = arith.constant 3 : i32
    %c2_i32_174 = arith.constant 2 : i32
    %530 = arith.muli %c3_i32_173, %c2_i32_174 : i32
    %531 = arith.index_cast %530 : i32 to index
    %c0_175 = arith.constant 0 : index
    %532 = vector.load %arg32[%531, %c0_175] : memref<16x128xf32, #tpu.memory_space<vmem>>, vector<2x128xf32>
    %cst_176 = arith.constant dense<0.000000e+00> : vector<2x128xf32>
    %533 = tpu.matmul %529, %469, %cst_176 {dimension_numbers = #tpu.dot_dimension_numbers<[1], [0], [0], [1], [0, 0, 1, 1], [], []>} : vector<2x32xf32>, vector<32x128xf32>, vector<2x128xf32> -> vector<2x128xf32>
    %534 = arith.addf %532, %533 : vector<2x128xf32>
    %535 = arith.negf %534 : vector<2x128xf32>
    %536 = math.exp %535 : vector<2x128xf32>
    %cst_177 = arith.constant 1.000000e+00 : f32
    %537 = vector.broadcast %cst_177 : f32 to vector<2x128xf32>
    %538 = arith.addf %537, %536 : vector<2x128xf32>
    %539 = arith.divf %537, %538 : vector<2x128xf32>
    %540 = math.tanh %534 : vector<2x128xf32>
    %541 = vector.extract_strided_slice %539 {offsets = [0, 32], sizes = [2, 32], strides = [1, 1]} : vector<2x128xf32> to vector<2x32xf32>
    %542 = arith.mulf %541, %526 : vector<2x32xf32>
    %543 = vector.extract_strided_slice %539 {offsets = [0, 0], sizes = [2, 32], strides = [1, 1]} : vector<2x128xf32> to vector<2x32xf32>
    %544 = vector.extract_strided_slice %540 {offsets = [0, 64], sizes = [2, 32], strides = [1, 1]} : vector<2x128xf32> to vector<2x32xf32>
    %545 = arith.mulf %543, %544 : vector<2x32xf32>
    %546 = arith.addf %542, %545 : vector<2x32xf32>
    %547 = vector.extract_strided_slice %539 {offsets = [0, 96], sizes = [2, 32], strides = [1, 1]} : vector<2x128xf32> to vector<2x32xf32>
    %548 = math.tanh %546 : vector<2x32xf32>
    %549 = arith.mulf %547, %548 : vector<2x32xf32>
    %c4_i32_178 = arith.constant 4 : i32
    %c2_i32_179 = arith.constant 2 : i32
    %550 = arith.muli %c4_i32_178, %c2_i32_179 : i32
    %551 = arith.index_cast %550 : i32 to index
    %c0_180 = arith.constant 0 : index
    %552 = vector.load %arg32[%551, %c0_180] : memref<16x128xf32, #tpu.memory_space<vmem>>, vector<2x128xf32>
    %cst_181 = arith.constant dense<0.000000e+00> : vector<2x128xf32>
    %553 = tpu.matmul %549, %469, %cst_181 {dimension_numbers = #tpu.dot_dimension_numbers<[1], [0], [0], [1], [0, 0, 1, 1], [], []>} : vector<2x32xf32>, vector<32x128xf32>, vector<2x128xf32> -> vector<2x128xf32>
    %554 = arith.addf %552, %553 : vector<2x128xf32>
    %555 = arith.negf %554 : vector<2x128xf32>
    %556 = math.exp %555 : vector<2x128xf32>
    %cst_182 = arith.constant 1.000000e+00 : f32
    %557 = vector.broadcast %cst_182 : f32 to vector<2x128xf32>
    %558 = arith.addf %557, %556 : vector<2x128xf32>
    %559 = arith.divf %557, %558 : vector<2x128xf32>
    %560 = math.tanh %554 : vector<2x128xf32>
    %561 = vector.extract_strided_slice %559 {offsets = [0, 32], sizes = [2, 32], strides = [1, 1]} : vector<2x128xf32> to vector<2x32xf32>
    %562 = arith.mulf %561, %546 : vector<2x32xf32>
    %563 = vector.extract_strided_slice %559 {offsets = [0, 0], sizes = [2, 32], strides = [1, 1]} : vector<2x128xf32> to vector<2x32xf32>
    %564 = vector.extract_strided_slice %560 {offsets = [0, 64], sizes = [2, 32], strides = [1, 1]} : vector<2x128xf32> to vector<2x32xf32>
    %565 = arith.mulf %563, %564 : vector<2x32xf32>
    %566 = arith.addf %562, %565 : vector<2x32xf32>
    %567 = vector.extract_strided_slice %559 {offsets = [0, 96], sizes = [2, 32], strides = [1, 1]} : vector<2x128xf32> to vector<2x32xf32>
    %568 = math.tanh %566 : vector<2x32xf32>
    %569 = arith.mulf %567, %568 : vector<2x32xf32>
    %c5_i32_183 = arith.constant 5 : i32
    %c2_i32_184 = arith.constant 2 : i32
    %570 = arith.muli %c5_i32_183, %c2_i32_184 : i32
    %571 = arith.index_cast %570 : i32 to index
    %c0_185 = arith.constant 0 : index
    %572 = vector.load %arg32[%571, %c0_185] : memref<16x128xf32, #tpu.memory_space<vmem>>, vector<2x128xf32>
    %cst_186 = arith.constant dense<0.000000e+00> : vector<2x128xf32>
    %573 = tpu.matmul %569, %469, %cst_186 {dimension_numbers = #tpu.dot_dimension_numbers<[1], [0], [0], [1], [0, 0, 1, 1], [], []>} : vector<2x32xf32>, vector<32x128xf32>, vector<2x128xf32> -> vector<2x128xf32>
    %574 = arith.addf %572, %573 : vector<2x128xf32>
    %575 = arith.negf %574 : vector<2x128xf32>
    %576 = math.exp %575 : vector<2x128xf32>
    %cst_187 = arith.constant 1.000000e+00 : f32
    %577 = vector.broadcast %cst_187 : f32 to vector<2x128xf32>
    %578 = arith.addf %577, %576 : vector<2x128xf32>
    %579 = arith.divf %577, %578 : vector<2x128xf32>
    %580 = math.tanh %574 : vector<2x128xf32>
    %581 = vector.extract_strided_slice %579 {offsets = [0, 32], sizes = [2, 32], strides = [1, 1]} : vector<2x128xf32> to vector<2x32xf32>
    %582 = arith.mulf %581, %566 : vector<2x32xf32>
    %583 = vector.extract_strided_slice %579 {offsets = [0, 0], sizes = [2, 32], strides = [1, 1]} : vector<2x128xf32> to vector<2x32xf32>
    %584 = vector.extract_strided_slice %580 {offsets = [0, 64], sizes = [2, 32], strides = [1, 1]} : vector<2x128xf32> to vector<2x32xf32>
    %585 = arith.mulf %583, %584 : vector<2x32xf32>
    %586 = arith.addf %582, %585 : vector<2x32xf32>
    %587 = vector.extract_strided_slice %579 {offsets = [0, 96], sizes = [2, 32], strides = [1, 1]} : vector<2x128xf32> to vector<2x32xf32>
    %588 = math.tanh %586 : vector<2x32xf32>
    %589 = arith.mulf %587, %588 : vector<2x32xf32>
    %c6_i32_188 = arith.constant 6 : i32
    %c2_i32_189 = arith.constant 2 : i32
    %590 = arith.muli %c6_i32_188, %c2_i32_189 : i32
    %591 = arith.index_cast %590 : i32 to index
    %c0_190 = arith.constant 0 : index
    %592 = vector.load %arg32[%591, %c0_190] : memref<16x128xf32, #tpu.memory_space<vmem>>, vector<2x128xf32>
    %cst_191 = arith.constant dense<0.000000e+00> : vector<2x128xf32>
    %593 = tpu.matmul %589, %469, %cst_191 {dimension_numbers = #tpu.dot_dimension_numbers<[1], [0], [0], [1], [0, 0, 1, 1], [], []>} : vector<2x32xf32>, vector<32x128xf32>, vector<2x128xf32> -> vector<2x128xf32>
    %594 = arith.addf %592, %593 : vector<2x128xf32>
    %595 = arith.negf %594 : vector<2x128xf32>
    %596 = math.exp %595 : vector<2x128xf32>
    %cst_192 = arith.constant 1.000000e+00 : f32
    %597 = vector.broadcast %cst_192 : f32 to vector<2x128xf32>
    %598 = arith.addf %597, %596 : vector<2x128xf32>
    %599 = arith.divf %597, %598 : vector<2x128xf32>
    %600 = math.tanh %594 : vector<2x128xf32>
    %601 = vector.extract_strided_slice %599 {offsets = [0, 32], sizes = [2, 32], strides = [1, 1]} : vector<2x128xf32> to vector<2x32xf32>
    %602 = arith.mulf %601, %586 : vector<2x32xf32>
    %603 = vector.extract_strided_slice %599 {offsets = [0, 0], sizes = [2, 32], strides = [1, 1]} : vector<2x128xf32> to vector<2x32xf32>
    %604 = vector.extract_strided_slice %600 {offsets = [0, 64], sizes = [2, 32], strides = [1, 1]} : vector<2x128xf32> to vector<2x32xf32>
    %605 = arith.mulf %603, %604 : vector<2x32xf32>
    %606 = arith.addf %602, %605 : vector<2x32xf32>
    %607 = vector.extract_strided_slice %599 {offsets = [0, 96], sizes = [2, 32], strides = [1, 1]} : vector<2x128xf32> to vector<2x32xf32>
    %608 = math.tanh %606 : vector<2x32xf32>
    %609 = arith.mulf %607, %608 : vector<2x32xf32>
    %c7_i32_193 = arith.constant 7 : i32
    %c2_i32_194 = arith.constant 2 : i32
    %610 = arith.muli %c7_i32_193, %c2_i32_194 : i32
    %611 = arith.index_cast %610 : i32 to index
    %c0_195 = arith.constant 0 : index
    %612 = vector.load %arg32[%611, %c0_195] : memref<16x128xf32, #tpu.memory_space<vmem>>, vector<2x128xf32>
    %cst_196 = arith.constant dense<0.000000e+00> : vector<2x128xf32>
    %613 = tpu.matmul %609, %469, %cst_196 {dimension_numbers = #tpu.dot_dimension_numbers<[1], [0], [0], [1], [0, 0, 1, 1], [], []>} : vector<2x32xf32>, vector<32x128xf32>, vector<2x128xf32> -> vector<2x128xf32>
    %614 = arith.addf %612, %613 : vector<2x128xf32>
    %615 = arith.negf %614 : vector<2x128xf32>
    %616 = math.exp %615 : vector<2x128xf32>
    %cst_197 = arith.constant 1.000000e+00 : f32
    %617 = vector.broadcast %cst_197 : f32 to vector<2x128xf32>
    %618 = arith.addf %617, %616 : vector<2x128xf32>
    %619 = arith.divf %617, %618 : vector<2x128xf32>
    %620 = math.tanh %614 : vector<2x128xf32>
    %621 = vector.extract_strided_slice %619 {offsets = [0, 32], sizes = [2, 32], strides = [1, 1]} : vector<2x128xf32> to vector<2x32xf32>
    %622 = arith.mulf %621, %606 : vector<2x32xf32>
    %623 = vector.extract_strided_slice %619 {offsets = [0, 0], sizes = [2, 32], strides = [1, 1]} : vector<2x128xf32> to vector<2x32xf32>
    %624 = vector.extract_strided_slice %620 {offsets = [0, 64], sizes = [2, 32], strides = [1, 1]} : vector<2x128xf32> to vector<2x32xf32>
    %625 = arith.mulf %623, %624 : vector<2x32xf32>
    %626 = arith.addf %622, %625 : vector<2x32xf32>
    %627 = vector.extract_strided_slice %619 {offsets = [0, 96], sizes = [2, 32], strides = [1, 1]} : vector<2x128xf32> to vector<2x32xf32>
    %628 = math.tanh %626 : vector<2x32xf32>
    %629 = arith.mulf %627, %628 : vector<2x32xf32>
    %c8_i32_198 = arith.constant 8 : i32
    %c0_199 = arith.constant 0 : index
    %c0_200 = arith.constant 0 : index
    %630 = vector.load %arg15[%c0_199, %c0_200] : memref<1x32xf32, #tpu.memory_space<vmem>>, vector<1x32xf32>
    %c0_201 = arith.constant 0 : index
    %c0_202 = arith.constant 0 : index
    %631 = vector.load %arg16[%c0_201, %c0_202] : memref<1x32xf32, #tpu.memory_space<vmem>>, vector<1x32xf32>
    %cst_203 = arith.constant dense<0.000000e+00> : vector<2xf32>
    %632 = vector.multi_reduction <add>, %629, %cst_203 [1] : vector<2x32xf32> to vector<2xf32>
    %633 = vector.shape_cast %632 : vector<2xf32> to vector<2x1xf32>
    %cst_204 = arith.constant 3.200000e+01 : f32
    %634 = vector.broadcast %cst_204 : f32 to vector<2x1xf32>
    %635 = arith.divf %633, %634 : vector<2x1xf32>
    %636 = vector.broadcast %635 : vector<2x1xf32> to vector<2x32xf32>
    %637 = arith.subf %629, %636 : vector<2x32xf32>
    %638 = arith.mulf %637, %637 : vector<2x32xf32>
    %cst_205 = arith.constant dense<0.000000e+00> : vector<2xf32>
    %639 = vector.multi_reduction <add>, %638, %cst_205 [1] : vector<2x32xf32> to vector<2xf32>
    %640 = vector.shape_cast %639 : vector<2xf32> to vector<2x1xf32>
    %cst_206 = arith.constant 3.200000e+01 : f32
    %641 = vector.broadcast %cst_206 : f32 to vector<2x1xf32>
    %642 = arith.divf %640, %641 : vector<2x1xf32>
    %643 = vector.broadcast %635 : vector<2x1xf32> to vector<2x32xf32>
    %644 = arith.subf %629, %643 : vector<2x32xf32>
    %cst_207 = arith.constant 9.99999974E-6 : f32
    %645 = vector.broadcast %cst_207 : f32 to vector<2x1xf32>
    %646 = arith.addf %642, %645 : vector<2x1xf32>
    %647 = math.rsqrt %646 : vector<2x1xf32>
    %648 = vector.broadcast %647 : vector<2x1xf32> to vector<2x32xf32>
    %649 = arith.mulf %644, %648 : vector<2x32xf32>
    %650 = vector.broadcast %630 : vector<1x32xf32> to vector<2x32xf32>
    %651 = arith.mulf %649, %650 : vector<2x32xf32>
    %652 = vector.broadcast %631 : vector<1x32xf32> to vector<2x32xf32>
    %653 = arith.addf %651, %652 : vector<2x32xf32>
    %c0_208 = arith.constant 0 : index
    %c0_209 = arith.constant 0 : index
    %654 = vector.load %arg17[%c0_208, %c0_209] : memref<32x32xbf16, #tpu.memory_space<vmem>>, vector<32x32xbf16>
    %655 = arith.extf %654 : vector<32x32xbf16> to vector<32x32xf32>
    %cst_210 = arith.constant dense<0.000000e+00> : vector<2x32xf32>
    %656 = tpu.matmul %653, %655, %cst_210 {dimension_numbers = #tpu.dot_dimension_numbers<[1], [0], [0], [1], [0, 0, 1, 1], [], []>} : vector<2x32xf32>, vector<32x32xf32>, vector<2x32xf32> -> vector<2x32xf32>
    %c0_211 = arith.constant 0 : index
    %c0_212 = arith.constant 0 : index
    %657 = vector.load %arg18[%c0_211, %c0_212] : memref<1x32xf32, #tpu.memory_space<vmem>>, vector<1x32xf32>
    %658 = vector.broadcast %657 : vector<1x32xf32> to vector<2x32xf32>
    %659 = arith.addf %656, %658 : vector<2x32xf32>
    %c0_213 = arith.constant 0 : index
    %c0_214 = arith.constant 0 : index
    %660 = vector.load %arg19[%c0_213, %c0_214] : memref<1x32xf32, #tpu.memory_space<vmem>>, vector<1x32xf32>
    %c0_215 = arith.constant 0 : index
    %c0_216 = arith.constant 0 : index
    %661 = vector.load %arg20[%c0_215, %c0_216] : memref<1x32xf32, #tpu.memory_space<vmem>>, vector<1x32xf32>
    %cst_217 = arith.constant dense<0.000000e+00> : vector<2xf32>
    %662 = vector.multi_reduction <add>, %659, %cst_217 [1] : vector<2x32xf32> to vector<2xf32>
    %663 = vector.shape_cast %662 : vector<2xf32> to vector<2x1xf32>
    %cst_218 = arith.constant 3.200000e+01 : f32
    %664 = vector.broadcast %cst_218 : f32 to vector<2x1xf32>
    %665 = arith.divf %663, %664 : vector<2x1xf32>
    %666 = vector.broadcast %665 : vector<2x1xf32> to vector<2x32xf32>
    %667 = arith.subf %659, %666 : vector<2x32xf32>
    %668 = arith.mulf %667, %667 : vector<2x32xf32>
    %cst_219 = arith.constant dense<0.000000e+00> : vector<2xf32>
    %669 = vector.multi_reduction <add>, %668, %cst_219 [1] : vector<2x32xf32> to vector<2xf32>
    %670 = vector.shape_cast %669 : vector<2xf32> to vector<2x1xf32>
    %cst_220 = arith.constant 3.200000e+01 : f32
    %671 = vector.broadcast %cst_220 : f32 to vector<2x1xf32>
    %672 = arith.divf %670, %671 : vector<2x1xf32>
    %673 = vector.broadcast %665 : vector<2x1xf32> to vector<2x32xf32>
    %674 = arith.subf %659, %673 : vector<2x32xf32>
    %cst_221 = arith.constant 9.99999974E-6 : f32
    %675 = vector.broadcast %cst_221 : f32 to vector<2x1xf32>
    %676 = arith.addf %672, %675 : vector<2x1xf32>
    %677 = math.rsqrt %676 : vector<2x1xf32>
    %678 = vector.broadcast %677 : vector<2x1xf32> to vector<2x32xf32>
    %679 = arith.mulf %674, %678 : vector<2x32xf32>
    %680 = vector.broadcast %660 : vector<1x32xf32> to vector<2x32xf32>
    %681 = arith.mulf %679, %680 : vector<2x32xf32>
    %682 = vector.broadcast %661 : vector<1x32xf32> to vector<2x32xf32>
    %683 = arith.addf %681, %682 : vector<2x32xf32>
    %cst_222 = arith.constant 0.000000e+00 : f32
    %684 = vector.broadcast %cst_222 : f32 to vector<2x32xf32>
    %685 = arith.cmpf oge, %683, %684 : vector<2x32xf32>
    %cst_223 = arith.constant 0.00999999977 : f32
    %686 = vector.broadcast %cst_223 : f32 to vector<2x32xf32>
    %687 = arith.mulf %686, %683 : vector<2x32xf32>
    %688 = arith.select %685, %683, %687 : vector<2x32xi1>, vector<2x32xf32>
    %c0_224 = arith.constant 0 : index
    %c0_225 = arith.constant 0 : index
    %689 = vector.load %arg21[%c0_224, %c0_225] : memref<32x16xbf16, #tpu.memory_space<vmem>>, vector<32x16xbf16>
    %690 = arith.extf %689 : vector<32x16xbf16> to vector<32x16xf32>
    %cst_226 = arith.constant dense<0.000000e+00> : vector<2x16xf32>
    %691 = tpu.matmul %688, %690, %cst_226 {dimension_numbers = #tpu.dot_dimension_numbers<[1], [0], [0], [1], [0, 0, 1, 1], [], []>} : vector<2x32xf32>, vector<32x16xf32>, vector<2x16xf32> -> vector<2x16xf32>
    %c0_227 = arith.constant 0 : index
    %c0_228 = arith.constant 0 : index
    %692 = vector.load %arg22[%c0_227, %c0_228] : memref<1x16xf32, #tpu.memory_space<vmem>>, vector<1x16xf32>
    %693 = vector.broadcast %692 : vector<1x16xf32> to vector<2x16xf32>
    %694 = arith.addf %691, %693 : vector<2x16xf32>
    %c0_229 = arith.constant 0 : index
    %c0_230 = arith.constant 0 : index
    %695 = vector.load %arg23[%c0_229, %c0_230] : memref<1x16xf32, #tpu.memory_space<vmem>>, vector<1x16xf32>
    %c0_231 = arith.constant 0 : index
    %c0_232 = arith.constant 0 : index
    %696 = vector.load %arg24[%c0_231, %c0_232] : memref<1x16xf32, #tpu.memory_space<vmem>>, vector<1x16xf32>
    %cst_233 = arith.constant dense<0.000000e+00> : vector<2xf32>
    %697 = vector.multi_reduction <add>, %694, %cst_233 [1] : vector<2x16xf32> to vector<2xf32>
    %698 = vector.shape_cast %697 : vector<2xf32> to vector<2x1xf32>
    %cst_234 = arith.constant 1.600000e+01 : f32
    %699 = vector.broadcast %cst_234 : f32 to vector<2x1xf32>
    %700 = arith.divf %698, %699 : vector<2x1xf32>
    %701 = vector.broadcast %700 : vector<2x1xf32> to vector<2x16xf32>
    %702 = arith.subf %694, %701 : vector<2x16xf32>
    %703 = arith.mulf %702, %702 : vector<2x16xf32>
    %cst_235 = arith.constant dense<0.000000e+00> : vector<2xf32>
    %704 = vector.multi_reduction <add>, %703, %cst_235 [1] : vector<2x16xf32> to vector<2xf32>
    %705 = vector.shape_cast %704 : vector<2xf32> to vector<2x1xf32>
    %cst_236 = arith.constant 1.600000e+01 : f32
    %706 = vector.broadcast %cst_236 : f32 to vector<2x1xf32>
    %707 = arith.divf %705, %706 : vector<2x1xf32>
    %708 = vector.broadcast %700 : vector<2x1xf32> to vector<2x16xf32>
    %709 = arith.subf %694, %708 : vector<2x16xf32>
    %cst_237 = arith.constant 9.99999974E-6 : f32
    %710 = vector.broadcast %cst_237 : f32 to vector<2x1xf32>
    %711 = arith.addf %707, %710 : vector<2x1xf32>
    %712 = math.rsqrt %711 : vector<2x1xf32>
    %713 = vector.broadcast %712 : vector<2x1xf32> to vector<2x16xf32>
    %714 = arith.mulf %709, %713 : vector<2x16xf32>
    %715 = vector.broadcast %695 : vector<1x16xf32> to vector<2x16xf32>
    %716 = arith.mulf %714, %715 : vector<2x16xf32>
    %717 = vector.broadcast %696 : vector<1x16xf32> to vector<2x16xf32>
    %718 = arith.addf %716, %717 : vector<2x16xf32>
    %cst_238 = arith.constant 0.000000e+00 : f32
    %719 = vector.broadcast %cst_238 : f32 to vector<2x16xf32>
    %720 = arith.cmpf oge, %718, %719 : vector<2x16xf32>
    %cst_239 = arith.constant 0.00999999977 : f32
    %721 = vector.broadcast %cst_239 : f32 to vector<2x16xf32>
    %722 = arith.mulf %721, %718 : vector<2x16xf32>
    %723 = arith.select %720, %718, %722 : vector<2x16xi1>, vector<2x16xf32>
    %c0_240 = arith.constant 0 : index
    %c0_241 = arith.constant 0 : index
    %724 = vector.load %arg25[%c0_240, %c0_241] : memref<16x12xbf16, #tpu.memory_space<vmem>>, vector<16x12xbf16>
    %725 = arith.extf %724 : vector<16x12xbf16> to vector<16x12xf32>
    %cst_242 = arith.constant dense<0.000000e+00> : vector<2x12xf32>
    %726 = tpu.matmul %723, %725, %cst_242 {dimension_numbers = #tpu.dot_dimension_numbers<[1], [0], [0], [1], [0, 0, 1, 1], [], []>} : vector<2x16xf32>, vector<16x12xf32>, vector<2x12xf32> -> vector<2x12xf32>
    %c0_243 = arith.constant 0 : index
    %c0_244 = arith.constant 0 : index
    %727 = vector.load %arg26[%c0_243, %c0_244] : memref<1x12xf32, #tpu.memory_space<vmem>>, vector<1x12xf32>
    %728 = vector.broadcast %727 : vector<1x12xf32> to vector<2x12xf32>
    %729 = arith.addf %726, %728 : vector<2x12xf32>
    %c0_245 = arith.constant 0 : index
    %c0_246 = arith.constant 0 : index
    %730 = vector.load %arg27[%c0_245, %c0_246] : memref<2x12xf32, #tpu.memory_space<vmem>>, vector<2x12xf32>
    tpu.vector_store %arg27[%c0_245, %c0_246], %729 {strides = array<i32>} : memref<2x12xf32, #tpu.memory_space<vmem>>, vector<2x12xf32>,
    return
  }
}

</mosaic_0001>

<bundles_post_ra>
// kernel: pure_lstm_forward.1
= control target key start
LH: loop header
LB: loop body
LE: loop exit
PB: predicated region body
PF: predicated region fallthrough
CT: control target
= control target key end

     0   :  { %vm90_vm0 = vcmask 64512   ;;  %v4352_v15 = vmov 0.0   ;;  %v4353_v18 = vmov 0.0|0.0   ;;  %vm4354_vm1 = vmmov 0   ;;  %s4990_s0 = inlined_call_operand.vmem [shape: f32[16,8], index: 0, kind: input, shape index: {}]   ;;  %s4991_s3 = inlined_call_operand.vmem [shape: bf16[8,256], index: 3, kind: input, shape index: {}]   ;;  %s4992_s5 = inlined_call_operand.vmem [shape: bf16[32,128], index: 5, kind: input, shape index: {}]   ;;  %s4993_s1 = inlined_call_operand.vmem [shape: f32[1,8], index: 1, kind: input, shape index: {}]   ;;  %s4994_s2 = inlined_call_operand.vmem [shape: f32[1,8], index: 2, kind: input, shape index: {}]   ;;  %s4995_s6 = inlined_call_operand.vmem [shape: bf16[32,128], index: 6, kind: input, shape index: {}]   ;;  %s4996_s4 = inlined_call_operand.vmem [shape: f32[1,256], index: 4, kind: input, shape index: {}]   ;;  %s4997_s12 = inlined_call_operand.vmem [shape: bf16[32,128], index: 12, kind: input, shape index: {}]   ;;  %s4998_s11 = inlined_call_operand.vmem [shape: bf16[32,128], index: 11, kind: input, shape index: {}]   ;;  %s4999_s14 = inlined_call_operand.vmem [shape: bf16[32,128], index: 14, kind: input, shape index: {}]   ;;  %s5000_s9 = inlined_call_operand.vmem [shape: f32[1,32], index: 9, kind: input, shape index: {}]   ;;  %s5001_s10 = inlined_call_operand.vmem [shape: f32[1,32], index: 10, kind: input, shape index: {}]   ;;  %s5002_s7 = inlined_call_operand.vmem [shape: f32[1,32], index: 7, kind: input, shape index: {}]   ;;  %s5003_s8 = inlined_call_operand.vmem [shape: f32[1,32], index: 8, kind: input, shape index: {}]   ;;  %s5004_s13 = inlined_call_operand.vmem [shape: f32[1,128], index: 13, kind: input, shape index: {}]   ;;  %s5005_s15 = inlined_call_operand.vmem [shape: f32[1,32], index: 15, kind: input, shape index: {}]   ;;  %s5006_s16 = inlined_call_operand.vmem [shape: f32[1,32], index: 16, kind: input, shape index: {}]   ;;  %s5007_s17 = inlined_call_operand.vmem [shape: bf16[32,32], index: 17, kind: input, shape index: {}]   ;;  %s5008_s18 = inlined_call_operand.vmem [shape: f32[1,32], index: 18, kind: input, shape index: {}]   ;;  %s5009_s21 = inlined_call_operand.vmem [shape: bf16[32,16], index: 21, kind: input, shape index: {}]   ;;  %s5010_s19 = inlined_call_operand.vmem [shape: f32[1,32], index: 19, kind: input, shape index: {}]   ;;  %s5011_s20 = inlined_call_operand.vmem [shape: f32[1,32], index: 20, kind: input, shape index: {}]   ;;  %s5012_s22 = inlined_call_operand.vmem [shape: f32[1,16], index: 22, kind: input, shape index: {}]   ;;  %s5013_s25 = inlined_call_operand.vmem [shape: bf16[16,12], index: 25, kind: input, shape index: {}]   ;;  %s5014_s23 = inlined_call_operand.vmem [shape: f32[1,16], index: 23, kind: input, shape index: {}]   ;;  %s5015_s24 = inlined_call_operand.vmem [shape: f32[1,16], index: 24, kind: input, shape index: {}]   ;;  %s5016_s26 = inlined_call_operand.vmem [shape: f32[1,12], index: 26, kind: input, shape index: {}]   ;;  %s5017_s27 = inlined_call_operand.vmem [shape: f32[2,12], index: 27, kind: output, shape index: {}]  }
   0x1   :  { %5024 = sst [smem:[#allocation7_spill]] %s4990_s0  ;;  %219 = vmatprep.mubr.f32.mxu0 %v4352_v15  ;;  %3963 = vmatprep.subr.bf16.mxu1 %v4353_v18  ;;  %v139_v41 = vlaneseq  ;;  %vm452_vm2 = vcmask 254976   ;;  %vm253_vm3 = vcmask 261120   ;;  %vm3243_vm5 = vcmask 123904  }
   0x2   :  { %5025 = sst [smem:[#allocation8_spill]] %s4991_s3  ;;  %3656 = vmatprep.mubr.msk.f32.mxu1 %vm4354_vm1, %v4352_v15  ;;  %s4357_s3 = smov 96   ;;  %vm3286_vm7 = vcmask 130048   ;;  %vm3360_vm8 = vcmask 91136  }
   0x3   :  { %5026 = sst [smem:[#allocation9_spill]] %s4992_s5  ;;  %s5037_s0 = sld [smem:[#allocation8_spill]]  ;;  %v140_v42 = vshrl.u32 %v139_v41, 7 }
   0x4   :  { %5027 = sst [smem:[#allocation10_spill]] %s4993_s1  ;;  %s5038_s1 = sld [smem:[#allocation9_spill]] }
   0x5   :  { %5028 = sst [smem:[#allocation11_spill]] %s4994_s2  ;;  %v141_v43 = vsub.s32 0, %v140_v42  ;;  %v145_v45 = vsub.s32 1, %v140_v42  ;;  %s4356_s2 = smov 32  }
   0x6   :  { %5029 = sst [smem:[#allocation12_spill]] %s4995_s6  ;;  %s5040_s30 = sld [smem:[#allocation11_spill]] }
   0x7   :  { %5030 = sst [smem:[#allocation13_spill]] %s4996_s4  ;;  %s5041_s28 = sld [smem:[#allocation12_spill]] }
   0x8   :  { %5031 = sst [smem:[#allocation14_spill]] %s4997_s12  ;;  %s5039_s12 = sld [smem:[#allocation10_spill]] }
   0x9   :  { %5032 = sst [smem:[#allocation15_spill]] %s4998_s11  ;;  %v134_v14 = vld [vmem:[%s5037_s0] sm:$0xff]  ;;  %s5042_s4 = sld [smem:[#allocation13_spill]] }
   0xa   :  { %5033 = sst [smem:[#allocation16_spill]] %s4999_s14  ;;  %s5036_s11 = sld [smem:[#allocation7_spill]]  ;;  %v136_v16 = vunpack.c.h.bf16 %v134_v14  ;;  %v135_v17 = vunpack.c.l.bf16 %v134_v14  ;;  %v4517_v19 = vld [vmem:[%s5038_s1] sm:$0xff]   ;;  %v4524_v20 = vld [vmem:[%s5038_s1 + $0x8] sm:$0xff]  }
   0xb   :  { %5034 = sst [smem:[#allocation17_spill]] %s5000_s9  ;;  %3965 = vmatpush3.bf16.msra.mxu1 %v4517_v19  ;;  %s5043_s5 = sld [smem:[#allocation14_spill]] }
   0xc   :  { %5035 = sst [smem:[#allocation18_spill]] %s5001_s10  ;;  %155 = vmatprep.subr.mxu0 %v136_v16  ;;  %3966 = vmatprep.subr.bf16.mxu1 %v4353_v18  ;;  %v3367_v30 = vld [vmem:[%s5040_s30] ss:$0 sm:$0xff]  ;;  %s4355_s10 = smov 64  }
   0xd   :  { %156 = vmatpush1.msra.mxu0 %v135_v17  ;;  %v4546_v35 = vld [vmem:[%s5041_s28] sm:$0xff]   ;;  %v4555_v38 = vld [vmem:[%s5041_s28 + $0x8] sm:$0xff]   ;;  %s5044_s28 = sld [smem:[#allocation15_spill]]  ;;  %s5045_s29 = sld [smem:[#allocation16_spill]] }
   0xe   :  { %3969 = vmatprep.subr.bf16.mxu0 %v4353_v18  ;;  %v3366_v28 = vld [vmem:[%s5039_s12] ss:$0 sm:$0xff]  ;;  %s5047_s14 = sld [smem:[#allocation18_spill]] }
   0xf   :  { %3968 = vmatpush3.bf16.msra.mxu1 %v4524_v20  ;;  %v137_v44 = vld [vmem:[%s5042_s4] sm:$0x3] }
  0x10   :  { %v86_v0 = vld [vmem:[%s5036_s11] sm:$0xff]  ;;  %v87_v1 = vld [vmem:[%s5036_s11 + $0x8] sm:$0xff]  ;;  %3975 = vmatprep.subr.bf16.mxu1 %v4353_v18  ;;  %v142_v46 = vrot.slane %v137_v44, %v141_v43  ;;  %v146_v47 = vrot.slane %v137_v44, %v145_v45 }
  0x11   :  { %v91_v2 = vsel %vm90_vm0, %v86_v0, 0.0  ;;  %v94_v3 = vsel %vm90_vm0, %v87_v1, 0.0 }
  0x12   :  { %92 = vadd.xlane.f32.xlu0 %v91_v2  ;;  %3657 = vmatmul.mubr.f32.vlgmr.msra.gmra.mrb[0].mxu1 %v4352_v15 }
  0x13   :  { %3977 = vmatpush3.bf16.msra.mxu1 %v4517_v19  ;;  %3678 = vmatprep.mubr.msk.f32.mxu1 %vm4354_vm1, %v4352_v15 }
  0x14   :  { %3978 = vmatprep.subr.bf16.mxu1 %v4353_v18 }
  0x16   :  { %95 = vadd.xlane.f32.xlu0 %v94_v3 }
  0x17   :  { %3980 = vmatpush3.bf16.msra.mxu1 %v4524_v20 }
  0x18   :  { %3987 = vmatprep.subr.bf16.mxu1 %v4353_v18 }
  0x9f   :  { %v93_v4 = vpop.xlane.xlu0 %92 }
  0xa0   :  { %v98_v5 = vmul.f32 0.125, %v93_v4 }
  0xa2   :  { %v100_v6 = vsub.f32 %v86_v0, %v98_v5 }
  0xa3   :  { %v96_v7 = vpop.xlane.xlu0 %95 }
  0xa4   :  { %v99_v8 = vmul.f32 0.125, %v96_v7  ;;  %v102_v9 = vmul.f32 %v100_v6, %v100_v6 }
  0xa6   :  { %v101_v10 = vsub.f32 %v87_v1, %v99_v8  ;;  %v104_v11 = vsel %vm90_vm0, %v102_v9, 0.0 }
  0xa7   :  { %105 = vadd.xlane.f32.xlu1 %v104_v11 }
  0xa8   :  { %v103_v12 = vmul.f32 %v101_v10, %v101_v10 }
  0xaa   :  { %v107_v13 = vsel %vm90_vm0, %v103_v12, 0.0 }
  0xab   :  { %108 = vadd.xlane.f32.xlu1 %v107_v13 }
  0xe5   :  { %v323_v39 = vpop.f32.mrb[0].mxu1 }
  0xe6   :  { %v3658_v40 = vpop.f32.mrb[1].mxu1 }
 0x134   :  { %v106_v21 = vpop.xlane.xlu1 %105 }
 0x135   :  { %v110_v22 = vmul.f32 0.125, %v106_v21 }
 0x137   :  { %v112_v23 = vadd.f32 1e-05, %v110_v22 }
 0x138   :  { %v109_v24 = vpop.xlane.xlu1 %108 }
 0x139   :  { %4146 = vrsqrt.f32 %v112_v23  ;;  %v111_v25 = vmul.f32 0.125, %v109_v24 }
 0x13b   :  { %v113_v26 = vadd.f32 1e-05, %v111_v25 }
 0x13d   :  { %4148 = vrsqrt.f32 %v113_v26 }
 0x143   :  { %v4147_v27 = vpop.eup %4146 }
 0x144   :  { %v116_v29 = vmul.f32 %v4147_v27, %v100_v6 }
 0x146   :  { %v124_v31 = vmul.f32 %v3366_v28, %v116_v29 }
 0x147   :  { %v4149_v32 = vpop.eup %4148 }
 0x148   :  { %v132_v33 = vadd.f32 %v3367_v30, %v124_v31  ;;  %v117_v34 = vmul.f32 %v4149_v32, %v101_v10 }
 0x14a   :  { %3368 = vmatmul.mubr.msk.f32.vlgmr.msra.gmra.mrb[0].mxu0 %vm90_vm0, %v132_v33  ;;  %v125_v36 = vmul.f32 %v3366_v28, %v117_v34 }
 0x14b   :  { %225 = vmatprep.mubr.f32.mxu0 %v4352_v15  ;;  %3971 = vmatpush3.bf16.msra.mxu0 %v4546_v35 }
 0x14c   :  { %v133_v37 = vadd.f32 %v3367_v30, %v125_v36  ;;  %3972 = vmatprep.subr.bf16.mxu0 %v4353_v18 }
 0x14e   :  { %3369 = vmatmul.mubr.msk.f32.gmra.mrb[2].mxu0 %vm90_vm0, %v133_v37 }
 0x14f   :  { %3974 = vmatpush3.bf16.msra.mxu0 %v4555_v38  ;;  %3667 = vmatprep.mubr.msk.f32.mxu0 %vm4354_vm1, %v4352_v15 }
 0x150   :  { %3981 = vmatprep.subr.bf16.mxu0 %v4353_v18 }
 0x152   :  { %3668 = vmatmul.mubr.f32.vlgmr.msra.gmra.mrb[4].mxu0 %v4352_v15 }
 0x153   :  { %3983 = vmatpush3.bf16.msra.mxu0 %v4546_v35  ;;  %3689 = vmatprep.mubr.msk.f32.mxu0 %vm4354_vm1, %v4352_v15 }
 0x154   :  { %3984 = vmatprep.subr.bf16.mxu0 %v4353_v18 }
 0x157   :  { %3986 = vmatpush3.bf16.msra.mxu0 %v4555_v38 }
 0x158   :  { %3993 = vmatprep.subr.bf16.mxu0 %v4353_v18 }
 0x21d   :  { %v221_v48 = vpop.f32.mrb[0].mxu0 }
 0x21e   :  { %v222_v49 = vadd.f32 %v221_v48, %v142_v46  ;;  %v223_v50 = vpop.f32.mrb[1].mxu0 }
 0x21f   :  { %v224_v51 = vadd.f32 %v223_v50, %v146_v47 }
 0x220   :  { %232 = vst [vmem:[#allocation2] sm:$0xff] %v222_v49 }
 0x221   :  { %234 = vst [vmem:[#allocation3] sm:$0xff] %v224_v51  ;;  %v227_v52 = vpop.f32.mrb[2].mxu0 }
 0x222   :  { %v228_v53 = vadd.f32 %v227_v52, %v142_v46  ;;  %v229_v54 = vpop.f32.mrb[3].mxu0 }
 0x223   :  { %v230_v55 = vadd.f32 %v229_v54, %v146_v47 }
 0x224   :  { %233 = vst [vmem:[#allocation2 + $0x8] sm:$0xff] %v228_v53 }
 0x225   :  { %235 = vst [vmem:[#allocation3 + $0x8] sm:$0xff] %v230_v55  ;;  %v395_v56 = vpop.f32.mrb[4].mxu0 }
 0x226   :  { %v3669_v57 = vpop.f32.mrb[5].mxu0 }
 0x227   :  { %v252_v58 = vld [vmem:[#allocation2] sm:$0x3]  ;;  %v459_v34 = vld [vmem:[#allocation2 + $0x2] sm:$0x3] }
 0x228   :  { %v327_v59 = vadd.f32 %v323_v39, %v252_v58 }
 0x22a   :  { %4150 = vtanh.f32 %v327_v59  ;;  %v3370_v1 = vmul.f32 -1.442695, %v327_v59 }
 0x22c   :  { %v328_v60 = vld [vmem:[#allocation3 + $0xe] sm:$0x3]  ;;  %v533_v30 = vld [vmem:[#allocation3 + $0xc] sm:$0x3] }
 0x22d   :  { %v399_v61 = vadd.f32 %v395_v56, %v328_v60 }
 0x22f   :  { %4152 = vtanh.f32 %v399_v61  ;;  %v3371_v0 = vmul.f32 -1.442695, %v399_v61 }
 0x231   :  { %4154 = vpow2.f32 %v3371_v0 }
 0x232   :  { %4156 = vpow2.f32 %v3370_v1 }
 0x234   :  { %v4151_v62 = vpop.eup %4150 }
 0x235   :  { %409 = vrot.lane.b32.xlu1 %v4151_v62, %s4355_s10 }
 0x239   :  { %v4153_v63 = vpop.eup %4152 }
 0x23a   :  { %433 = vrot.lane.b32.xlu0 %v4153_v63, %s4355_s10 }
 0x23b   :  { %v4155_v2 = vpop.eup %4154 }
 0x23c   :  { %v427_v3 = vadd.f32 1.0, %v4155_v2  ;;  %v4157_v4 = vpop.eup %4156 }
 0x23d   :  { %v403_v5 = vadd.f32 1.0, %v4157_v4  ;;  %v739_v4 = vld [vmem:[#allocation3 + $0xa] sm:$0x3] }
 0x23e   :  { %4158 = vrcp.f32 %v427_v3 }
 0x23f   :  { %4160 = vrcp.f32 %v403_v5 }
 0x248   :  { %v4159_v6 = vpop.eup %4158 }
 0x249   :  { %v4161_v10 = vpop.eup %4160  ;;  %v431_v12 = vmul.f32 0.0, %v4159_v6 }
 0x24a   :  { %v407_v16 = vmul.f32 0.0, %v4161_v10 }
 0x2a7   :  { %v410_v9 = vpop.permute.xlu1 %409 }
 0x2a8   :  { %v412_v11 = vmul.f32 %v4161_v10, %v410_v9 }
 0x2ac   :  { %v434_v7 = vpop.permute.xlu0 %433 }
 0x2ad   :  { %v436_v8 = vmul.f32 %v4159_v6, %v434_v7 }
 0x2af   :  { %438 = vrot.lane.b32.xlu1 %v436_v8, %s4356_s2  ;;  %v665_v8 = vld [vmem:[#allocation2 + $0x4] sm:$0x3] }
 0x2b3   :  { %414 = vrot.lane.b32.xlu1 %v412_v11, %s4356_s2 }
 0x321   :  { %v439_v13 = vpop.permute.xlu1 %438 }
 0x322   :  { %v4576_v14 = vadd.f32 %v439_v13, %v431_v12 }
 0x324   :  { %4162 = vtanh.f32 %v4576_v14 }
 0x325   :  { %v415_v17 = vpop.permute.xlu1 %414 }
 0x326   :  { %v4579_v21 = vadd.f32 %v415_v17, %v407_v16 }
 0x328   :  { %4164 = vtanh.f32 %v4579_v21 }
 0x32e   :  { %v4163_v22 = vpop.eup %4162 }
 0x32f   :  { %444 = vrot.lane.b32.xlu0 %v4163_v22, %s4355_s10 }
 0x332   :  { %v4165_v23 = vpop.eup %4164 }
 0x333   :  { %420 = vrot.lane.b32.xlu1 %v4165_v23, %s4355_s10 }
 0x3a1   :  { %v445_v24 = vpop.permute.xlu0 %444 }
 0x3a2   :  { %v447_v25 = vmul.f32 %v4159_v6, %v445_v24 }
 0x3a4   :  { %455 = vrot.lane.b32.xlu0 %v447_v25, %s4356_s2 }
 0x3a5   :  { %v421_v26 = vpop.permute.xlu1 %420 }
 0x3a6   :  { %v423_v27 = vmul.f32 %v4161_v10, %v421_v26 }
 0x3a8   :  { %449 = vrot.lane.b32.xlu1 %v423_v27, %s4356_s2 }
 0x416   :  { %v456_v28 = vpop.permute.xlu0 %455 }
 0x417   :  { %458 = vst.msk [vmem:[#allocation5 + $0xe] sm:$0x3] %vm452_vm2, %v456_v28  ;;  %3690 = vmatmul.mubr.msk.f32.vlgmr.msra.gmra.mrb[6].mxu0 %vm253_vm3, %v456_v28 }
 0x418   :  { %3995 = vmatpush3.bf16.msra.mxu0 %v4546_v35  ;;  %3711 = vmatprep.mubr.msk.f32.mxu0 %vm4354_vm1, %v4352_v15 }
 0x419   :  { %3996 = vmatprep.subr.bf16.mxu0 %v4353_v18 }
 0x41a   :  { %v450_v29 = vpop.permute.xlu1 %449 }
 0x41b   :  { %453 = vst.msk [vmem:[#allocation4] sm:$0x3] %vm452_vm2, %v450_v29  ;;  %3679 = vmatmul.mubr.msk.f32.vlgmr.msra.gmra.mrb[2].mxu1 %vm253_vm3, %v450_v29 }
 0x41c   :  { %3989 = vmatpush3.bf16.msra.mxu1 %v4517_v19  ;;  %3998 = vmatpush3.bf16.msra.mxu0 %v4555_v38 }
 0x41d   :  { %3990 = vmatprep.subr.bf16.mxu1 %v4353_v18  ;;  %3700 = vmatprep.mubr.msk.f32.mxu1 %vm4354_vm1, %v4352_v15 }
 0x41e   :  { %4005 = vmatprep.subr.bf16.mxu0 %v4353_v18 }
 0x420   :  { %3992 = vmatpush3.bf16.msra.mxu1 %v4524_v20 }
 0x421   :  { %3999 = vmatprep.subr.bf16.mxu1 %v4353_v18 }
 0x4ea   :  { %v602_v31 = vpop.f32.mrb[6].mxu0 }
 0x4eb   :  { %v606_v32 = vadd.f32 %v602_v31, %v533_v30  ;;  %v3691_v33 = vpop.f32.mrb[7].mxu0 }
 0x4ed   :  { %4166 = vtanh.f32 %v606_v32  ;;  %v3375_v42 = vmul.f32 -1.442695, %v606_v32 }
 0x4ee   :  { %v528_v36 = vpop.f32.mrb[2].mxu1 }
 0x4ef   :  { %v532_v37 = vadd.f32 %v528_v36, %v459_v34  ;;  %v3680_v39 = vpop.f32.mrb[3].mxu1 }
 0x4f1   :  { %4168 = vtanh.f32 %v532_v37  ;;  %v3374_v43 = vmul.f32 -1.442695, %v532_v37 }
 0x4f2   :  { %4170 = vpow2.f32 %v3375_v42 }
 0x4f3   :  { %4172 = vpow2.f32 %v3374_v43 }
 0x4f7   :  { %v4167_v40 = vpop.eup %4166 }
 0x4f8   :  { %640 = vrot.lane.b32.xlu0 %v4167_v40, %s4355_s10 }
 0x4fb   :  { %v4169_v41 = vpop.eup %4168 }
 0x4fc   :  { %616 = vrot.lane.b32.xlu1 %v4169_v41, %s4355_s10  ;;  %v4171_v44 = vpop.eup %4170 }
 0x4fd   :  { %v634_v45 = vadd.f32 1.0, %v4171_v44  ;;  %v4173_v46 = vpop.eup %4172 }
 0x4fe   :  { %v610_v47 = vadd.f32 1.0, %v4173_v46  ;;  %v945_v46 = vld [vmem:[#allocation3 + $0x8] sm:$0x3] }
 0x4ff   :  { %4174 = vrcp.f32 %v634_v45 }
 0x500   :  { %4176 = vrcp.f32 %v610_v47 }
 0x509   :  { %v4175_v48 = vpop.eup %4174 }
 0x50a   :  { %v4177_v51 = vpop.eup %4176  ;;  %v638_v54 = vmul.f32 %v4175_v48, %v4576_v14 }
 0x50b   :  { %v614_v57 = vmul.f32 %v4177_v51, %v4579_v21 }
 0x56a   :  { %v641_v49 = vpop.permute.xlu0 %640 }
 0x56b   :  { %v643_v50 = vmul.f32 %v4175_v48, %v641_v49 }
 0x56d   :  { %645 = vrot.lane.b32.xlu0 %v643_v50, %s4356_s2  ;;  %v871_v50 = vld [vmem:[#allocation2 + $0x6] sm:$0x3] }
 0x56e   :  { %v617_v52 = vpop.permute.xlu1 %616 }
 0x56f   :  { %v619_v53 = vmul.f32 %v4177_v51, %v617_v52 }
 0x571   :  { %621 = vrot.lane.b32.xlu1 %v619_v53, %s4356_s2 }
 0x5df   :  { %v646_v55 = vpop.permute.xlu0 %645 }
 0x5e0   :  { %v4607_v56 = vadd.f32 %v646_v55, %v638_v54 }
 0x5e2   :  { %4178 = vtanh.f32 %v4607_v56 }
 0x5e3   :  { %v622_v58 = vpop.permute.xlu1 %621 }
 0x5e4   :  { %v4611_v59 = vadd.f32 %v622_v58, %v614_v57 }
 0x5e6   :  { %4180 = vtanh.f32 %v4611_v59 }
 0x5ec   :  { %v4179_v60 = vpop.eup %4178 }
 0x5ed   :  { %651 = vrot.lane.b32.xlu0 %v4179_v60, %s4355_s10 }
 0x5f0   :  { %v4181_v61 = vpop.eup %4180 }
 0x5f1   :  { %627 = vrot.lane.b32.xlu1 %v4181_v61, %s4355_s10 }
 0x65f   :  { %v652_v62 = vpop.permute.xlu0 %651 }
 0x660   :  { %v654_v63 = vmul.f32 %v4175_v48, %v652_v62 }
 0x662   :  { %661 = vrot.lane.b32.xlu0 %v654_v63, %s4356_s2 }
 0x663   :  { %v628_v0 = vpop.permute.xlu1 %627 }
 0x664   :  { %v630_v1 = vmul.f32 %v4177_v51, %v628_v0 }
 0x666   :  { %656 = vrot.lane.b32.xlu1 %v630_v1, %s4356_s2 }
 0x6d4   :  { %v662_v2 = vpop.permute.xlu0 %661 }
 0x6d5   :  { %664 = vst.msk [vmem:[#allocation5 + $0xc] sm:$0x3] %vm452_vm2, %v662_v2  ;;  %3712 = vmatmul.mubr.msk.f32.vlgmr.msra.gmra.mrb[8].mxu0 %vm253_vm3, %v662_v2 }
 0x6d6   :  { %4007 = vmatpush3.bf16.msra.mxu0 %v4546_v35  ;;  %3733 = vmatprep.mubr.msk.f32.mxu0 %vm4354_vm1, %v4352_v15 }
 0x6d7   :  { %4008 = vmatprep.subr.bf16.mxu0 %v4353_v18 }
 0x6d8   :  { %v657_v3 = vpop.permute.xlu1 %656 }
 0x6d9   :  { %659 = vst.msk [vmem:[#allocation4 + $0x2] sm:$0x3] %vm452_vm2, %v657_v3  ;;  %3701 = vmatmul.mubr.msk.f32.vlgmr.msra.gmra.mrb[4].mxu1 %vm253_vm3, %v657_v3 }
 0x6da   :  { %4001 = vmatpush3.bf16.msra.mxu1 %v4517_v19  ;;  %4010 = vmatpush3.bf16.msra.mxu0 %v4555_v38 }
 0x6db   :  { %4002 = vmatprep.subr.bf16.mxu1 %v4353_v18  ;;  %3722 = vmatprep.mubr.msk.f32.mxu1 %vm4354_vm1, %v4352_v15 }
 0x6dc   :  { %4017 = vmatprep.subr.bf16.mxu0 %v4353_v18 }
 0x6de   :  { %4004 = vmatpush3.bf16.msra.mxu1 %v4524_v20 }
 0x6df   :  { %4011 = vmatprep.subr.bf16.mxu1 %v4353_v18 }
 0x7a8   :  { %v808_v5 = vpop.f32.mrb[8].mxu0 }
 0x7a9   :  { %v812_v6 = vadd.f32 %v808_v5, %v739_v4  ;;  %v3713_v7 = vpop.f32.mrb[9].mxu0 }
 0x7ab   :  { %4182 = vtanh.f32 %v812_v6  ;;  %v3379_v14 = vmul.f32 -1.442695, %v812_v6 }
 0x7ac   :  { %v734_v9 = vpop.f32.mrb[4].mxu1 }
 0x7ad   :  { %v738_v10 = vadd.f32 %v734_v9, %v665_v8  ;;  %v3702_v11 = vpop.f32.mrb[5].mxu1 }
 0x7af   :  { %4184 = vtanh.f32 %v738_v10  ;;  %v3378_v16 = vmul.f32 -1.442695, %v738_v10 }
 0x7b0   :  { %4186 = vpow2.f32 %v3379_v14 }
 0x7b1   :  { %4188 = vpow2.f32 %v3378_v16 }
 0x7b5   :  { %v4183_v12 = vpop.eup %4182 }
 0x7b6   :  { %846 = vrot.lane.b32.xlu0 %v4183_v12, %s4355_s10 }
 0x7b9   :  { %v4185_v13 = vpop.eup %4184 }
 0x7ba   :  { %822 = vrot.lane.b32.xlu1 %v4185_v13, %s4355_s10  ;;  %v4187_v17 = vpop.eup %4186 }
 0x7bb   :  { %v840_v21 = vadd.f32 1.0, %v4187_v17  ;;  %v4189_v22 = vpop.eup %4188 }
 0x7bc   :  { %v816_v23 = vadd.f32 1.0, %v4189_v22  ;;  %v1151_v22 = vld [vmem:[#allocation3 + $0x6] sm:$0x3] }
 0x7bd   :  { %4190 = vrcp.f32 %v840_v21 }
 0x7be   :  { %4192 = vrcp.f32 %v816_v23 }
 0x7c7   :  { %v4191_v24 = vpop.eup %4190 }
 0x7c8   :  { %v4193_v27 = vpop.eup %4192  ;;  %v844_v30 = vmul.f32 %v4191_v24, %v4607_v56 }
 0x7c9   :  { %v820_v33 = vmul.f32 %v4193_v27, %v4611_v59 }
 0x828   :  { %v847_v25 = vpop.permute.xlu0 %846 }
 0x829   :  { %v849_v26 = vmul.f32 %v4191_v24, %v847_v25 }
 0x82b   :  { %851 = vrot.lane.b32.xlu0 %v849_v26, %s4356_s2  ;;  %v1077_v26 = vld [vmem:[#allocation2 + $0x8] sm:$0x3] }
 0x82c   :  { %v823_v28 = vpop.permute.xlu1 %822 }
 0x82d   :  { %v825_v29 = vmul.f32 %v4193_v27, %v823_v28 }
 0x82f   :  { %827 = vrot.lane.b32.xlu1 %v825_v29, %s4356_s2 }
 0x89d   :  { %v852_v31 = vpop.permute.xlu0 %851 }
 0x89e   :  { %v4639_v32 = vadd.f32 %v852_v31, %v844_v30 }
 0x8a0   :  { %4194 = vtanh.f32 %v4639_v32 }
 0x8a1   :  { %v828_v34 = vpop.permute.xlu1 %827 }
 0x8a2   :  { %v4643_v36 = vadd.f32 %v828_v34, %v820_v33 }
 0x8a4   :  { %4196 = vtanh.f32 %v4643_v36 }
 0x8aa   :  { %v4195_v37 = vpop.eup %4194 }
 0x8ab   :  { %857 = vrot.lane.b32.xlu0 %v4195_v37, %s4355_s10 }
 0x8ae   :  { %v4197_v39 = vpop.eup %4196 }
 0x8af   :  { %833 = vrot.lane.b32.xlu1 %v4197_v39, %s4355_s10 }
 0x91d   :  { %v858_v40 = vpop.permute.xlu0 %857 }
 0x91e   :  { %v860_v41 = vmul.f32 %v4191_v24, %v858_v40 }
 0x920   :  { %867 = vrot.lane.b32.xlu0 %v860_v41, %s4356_s2 }
 0x921   :  { %v834_v42 = vpop.permute.xlu1 %833 }
 0x922   :  { %v836_v43 = vmul.f32 %v4193_v27, %v834_v42 }
 0x924   :  { %862 = vrot.lane.b32.xlu1 %v836_v43, %s4356_s2 }
 0x992   :  { %v868_v44 = vpop.permute.xlu0 %867 }
 0x993   :  { %870 = vst.msk [vmem:[#allocation5 + $0xa] sm:$0x3] %vm452_vm2, %v868_v44  ;;  %3734 = vmatmul.mubr.msk.f32.vlgmr.msra.gmra.mrb[10].mxu0 %vm253_vm3, %v868_v44 }
 0x994   :  { %4019 = vmatpush3.bf16.msra.mxu0 %v4546_v35  ;;  %3755 = vmatprep.mubr.msk.f32.mxu0 %vm4354_vm1, %v4352_v15 }
 0x995   :  { %4020 = vmatprep.subr.bf16.mxu0 %v4353_v18 }
 0x996   :  { %v863_v45 = vpop.permute.xlu1 %862 }
 0x997   :  { %865 = vst.msk [vmem:[#allocation4 + $0x4] sm:$0x3] %vm452_vm2, %v863_v45  ;;  %3723 = vmatmul.mubr.msk.f32.vlgmr.msra.gmra.mrb[6].mxu1 %vm253_vm3, %v863_v45 }
 0x998   :  { %4013 = vmatpush3.bf16.msra.mxu1 %v4517_v19  ;;  %4022 = vmatpush3.bf16.msra.mxu0 %v4555_v38 }
 0x999   :  { %4014 = vmatprep.subr.bf16.mxu1 %v4353_v18  ;;  %3744 = vmatprep.mubr.msk.f32.mxu1 %vm4354_vm1, %v4352_v15 }
 0x99a   :  { %4029 = vmatprep.subr.bf16.mxu0 %v4353_v18 }
 0x99c   :  { %4016 = vmatpush3.bf16.msra.mxu1 %v4524_v20 }
 0x99d   :  { %4023 = vmatprep.subr.bf16.mxu1 %v4353_v18 }
 0xa66   :  { %v1014_v47 = vpop.f32.mrb[10].mxu0 }
 0xa67   :  { %v1018_v48 = vadd.f32 %v1014_v47, %v945_v46  ;;  %v3735_v49 = vpop.f32.mrb[11].mxu0 }
 0xa69   :  { %4198 = vtanh.f32 %v1018_v48  ;;  %v3383_v56 = vmul.f32 -1.442695, %v1018_v48 }
 0xa6a   :  { %v940_v51 = vpop.f32.mrb[6].mxu1 }
 0xa6b   :  { %v944_v52 = vadd.f32 %v940_v51, %v871_v50  ;;  %v3724_v53 = vpop.f32.mrb[7].mxu1 }
 0xa6d   :  { %4200 = vtanh.f32 %v944_v52  ;;  %v3382_v57 = vmul.f32 -1.442695, %v944_v52 }
 0xa6e   :  { %4202 = vpow2.f32 %v3383_v56 }
 0xa6f   :  { %4204 = vpow2.f32 %v3382_v57 }
 0xa73   :  { %v4199_v54 = vpop.eup %4198 }
 0xa74   :  { %1052 = vrot.lane.b32.xlu0 %v4199_v54, %s4355_s10 }
 0xa77   :  { %v4201_v55 = vpop.eup %4200 }
 0xa78   :  { %1028 = vrot.lane.b32.xlu1 %v4201_v55, %s4355_s10  ;;  %v4203_v58 = vpop.eup %4202 }
 0xa79   :  { %v1046_v59 = vadd.f32 1.0, %v4203_v58  ;;  %v4205_v60 = vpop.eup %4204 }
 0xa7a   :  { %v1022_v61 = vadd.f32 1.0, %v4205_v60  ;;  %v1357_v60 = vld [vmem:[#allocation3 + $0x4] sm:$0x3] }
 0xa7b   :  { %4206 = vrcp.f32 %v1046_v59 }
 0xa7c   :  { %4208 = vrcp.f32 %v1022_v61 }
 0xa85   :  { %v4207_v62 = vpop.eup %4206 }
 0xa86   :  { %v4209_v1 = vpop.eup %4208  ;;  %v1050_v4 = vmul.f32 %v4207_v62, %v4639_v32 }
 0xa87   :  { %v1026_v7 = vmul.f32 %v4209_v1, %v4643_v36 }
 0xae6   :  { %v1053_v63 = vpop.permute.xlu0 %1052 }
 0xae7   :  { %v1055_v0 = vmul.f32 %v4207_v62, %v1053_v63 }
 0xae9   :  { %1057 = vrot.lane.b32.xlu0 %v1055_v0, %s4356_s2  ;;  %v1283_v0 = vld [vmem:[#allocation2 + $0xa] sm:$0x3] }
 0xaea   :  { %v1029_v2 = vpop.permute.xlu1 %1028 }
 0xaeb   :  { %v1031_v3 = vmul.f32 %v4209_v1, %v1029_v2 }
 0xaed   :  { %1033 = vrot.lane.b32.xlu1 %v1031_v3, %s4356_s2 }
 0xb5b   :  { %v1058_v5 = vpop.permute.xlu0 %1057 }
 0xb5c   :  { %v4671_v6 = vadd.f32 %v1058_v5, %v1050_v4 }
 0xb5e   :  { %4210 = vtanh.f32 %v4671_v6 }
 0xb5f   :  { %v1034_v8 = vpop.permute.xlu1 %1033 }
 0xb60   :  { %v4675_v9 = vadd.f32 %v1034_v8, %v1026_v7 }
 0xb62   :  { %4212 = vtanh.f32 %v4675_v9 }
 0xb68   :  { %v4211_v10 = vpop.eup %4210 }
 0xb69   :  { %1063 = vrot.lane.b32.xlu0 %v4211_v10, %s4355_s10 }
 0xb6c   :  { %v4213_v11 = vpop.eup %4212 }
 0xb6d   :  { %1039 = vrot.lane.b32.xlu1 %v4213_v11, %s4355_s10 }
 0xbdb   :  { %v1064_v12 = vpop.permute.xlu0 %1063 }
 0xbdc   :  { %v1066_v13 = vmul.f32 %v4207_v62, %v1064_v12 }
 0xbde   :  { %1073 = vrot.lane.b32.xlu0 %v1066_v13, %s4356_s2 }
 0xbdf   :  { %v1040_v14 = vpop.permute.xlu1 %1039 }
 0xbe0   :  { %v1042_v16 = vmul.f32 %v4209_v1, %v1040_v14 }
 0xbe2   :  { %1068 = vrot.lane.b32.xlu1 %v1042_v16, %s4356_s2 }
 0xc50   :  { %v1074_v17 = vpop.permute.xlu0 %1073 }
 0xc51   :  { %1076 = vst.msk [vmem:[#allocation5 + $0x8] sm:$0x3] %vm452_vm2, %v1074_v17  ;;  %3756 = vmatmul.mubr.msk.f32.vlgmr.msra.gmra.mrb[12].mxu0 %vm253_vm3, %v1074_v17 }
 0xc52   :  { %4031 = vmatpush3.bf16.msra.mxu0 %v4546_v35  ;;  %3777 = vmatprep.mubr.msk.f32.mxu0 %vm4354_vm1, %v4352_v15 }
 0xc53   :  { %4032 = vmatprep.subr.bf16.mxu0 %v4353_v18 }
 0xc54   :  { %v1069_v21 = vpop.permute.xlu1 %1068 }
 0xc55   :  { %1071 = vst.msk [vmem:[#allocation4 + $0x6] sm:$0x3] %vm452_vm2, %v1069_v21  ;;  %3745 = vmatmul.mubr.msk.f32.vlgmr.msra.gmra.mrb[8].mxu1 %vm253_vm3, %v1069_v21 }
 0xc56   :  { %4025 = vmatpush3.bf16.msra.mxu1 %v4517_v19  ;;  %4034 = vmatpush3.bf16.msra.mxu0 %v4555_v38 }
 0xc57   :  { %4026 = vmatprep.subr.bf16.mxu1 %v4353_v18  ;;  %3766 = vmatprep.mubr.msk.f32.mxu1 %vm4354_vm1, %v4352_v15 }
 0xc58   :  { %4041 = vmatprep.subr.bf16.mxu0 %v4353_v18 }
 0xc5a   :  { %4028 = vmatpush3.bf16.msra.mxu1 %v4524_v20 }
 0xc5b   :  { %4035 = vmatprep.subr.bf16.mxu1 %v4353_v18 }
 0xd24   :  { %v1220_v23 = vpop.f32.mrb[12].mxu0 }
 0xd25   :  { %v1224_v24 = vadd.f32 %v1220_v23, %v1151_v22  ;;  %v3757_v25 = vpop.f32.mrb[13].mxu0 }
 0xd27   :  { %4214 = vtanh.f32 %v1224_v24  ;;  %v3387_v32 = vmul.f32 -1.442695, %v1224_v24 }
 0xd28   :  { %v1146_v27 = vpop.f32.mrb[8].mxu1 }
 0xd29   :  { %v1150_v28 = vadd.f32 %v1146_v27, %v1077_v26  ;;  %v3746_v29 = vpop.f32.mrb[9].mxu1 }
 0xd2b   :  { %4216 = vtanh.f32 %v1150_v28  ;;  %v3386_v33 = vmul.f32 -1.442695, %v1150_v28 }
 0xd2c   :  { %4218 = vpow2.f32 %v3387_v32 }
 0xd2d   :  { %4220 = vpow2.f32 %v3386_v33 }
 0xd31   :  { %v4215_v30 = vpop.eup %4214 }
 0xd32   :  { %1258 = vrot.lane.b32.xlu0 %v4215_v30, %s4355_s10 }
 0xd35   :  { %v4217_v31 = vpop.eup %4216 }
 0xd36   :  { %1234 = vrot.lane.b32.xlu1 %v4217_v31, %s4355_s10  ;;  %v4219_v34 = vpop.eup %4218 }
 0xd37   :  { %v1252_v36 = vadd.f32 1.0, %v4219_v34  ;;  %v4221_v37 = vpop.eup %4220 }
 0xd38   :  { %v1228_v39 = vadd.f32 1.0, %v4221_v37 }
 0xd39   :  { %4222 = vrcp.f32 %v1252_v36 }
 0xd3a   :  { %4224 = vrcp.f32 %v1228_v39 }
 0xd43   :  { %v4223_v40 = vpop.eup %4222 }
 0xd44   :  { %v4225_v43 = vpop.eup %4224  ;;  %v1256_v46 = vmul.f32 %v4223_v40, %v4671_v6 }
 0xd45   :  { %v1232_v49 = vmul.f32 %v4225_v43, %v4675_v9 }
 0xda4   :  { %v1259_v41 = vpop.permute.xlu0 %1258 }
 0xda5   :  { %v1261_v42 = vmul.f32 %v4223_v40, %v1259_v41  ;;  %v1489_v41 = vld [vmem:[#allocation2 + $0xc] sm:$0x3] }
 0xda7   :  { %1263 = vrot.lane.b32.xlu0 %v1261_v42, %s4356_s2 }
 0xda8   :  { %v1235_v44 = vpop.permute.xlu1 %1234 }
 0xda9   :  { %v1237_v45 = vmul.f32 %v4225_v43, %v1235_v44 }
 0xdab   :  { %1239 = vrot.lane.b32.xlu1 %v1237_v45, %s4356_s2 }
 0xe19   :  { %v1264_v47 = vpop.permute.xlu0 %1263 }
 0xe1a   :  { %v4703_v48 = vadd.f32 %v1264_v47, %v1256_v46 }
 0xe1c   :  { %4226 = vtanh.f32 %v4703_v48 }
 0xe1d   :  { %v1240_v50 = vpop.permute.xlu1 %1239 }
 0xe1e   :  { %v4707_v51 = vadd.f32 %v1240_v50, %v1232_v49 }
 0xe20   :  { %4228 = vtanh.f32 %v4707_v51 }
 0xe26   :  { %v4227_v52 = vpop.eup %4226 }
 0xe27   :  { %1269 = vrot.lane.b32.xlu0 %v4227_v52, %s4355_s10 }
 0xe2a   :  { %v4229_v53 = vpop.eup %4228 }
 0xe2b   :  { %1245 = vrot.lane.b32.xlu1 %v4229_v53, %s4355_s10 }
 0xe99   :  { %v1270_v54 = vpop.permute.xlu0 %1269 }
 0xe9a   :  { %v1272_v55 = vmul.f32 %v4223_v40, %v1270_v54 }
 0xe9c   :  { %1279 = vrot.lane.b32.xlu0 %v1272_v55, %s4356_s2 }
 0xe9d   :  { %v1246_v56 = vpop.permute.xlu1 %1245 }
 0xe9e   :  { %v1248_v57 = vmul.f32 %v4225_v43, %v1246_v56 }
 0xea0   :  { %1274 = vrot.lane.b32.xlu1 %v1248_v57, %s4356_s2 }
 0xf0e   :  { %v1280_v58 = vpop.permute.xlu0 %1279 }
 0xf0f   :  { %1282 = vst.msk [vmem:[#allocation5 + $0x6] sm:$0x3] %vm452_vm2, %v1280_v58  ;;  %3778 = vmatmul.mubr.msk.f32.vlgmr.msra.gmra.mrb[14].mxu0 %vm253_vm3, %v1280_v58 }
 0xf10   :  { %4043 = vmatpush3.bf16.msra.mxu0 %v4546_v35  ;;  %3799 = vmatprep.mubr.msk.f32.mxu0 %vm4354_vm1, %v4352_v15 }
 0xf11   :  { %4044 = vmatprep.subr.bf16.mxu0 %v4353_v18 }
 0xf12   :  { %v1275_v59 = vpop.permute.xlu1 %1274 }
 0xf13   :  { %1277 = vst.msk [vmem:[#allocation4 + $0x8] sm:$0x3] %vm452_vm2, %v1275_v59  ;;  %3767 = vmatmul.mubr.msk.f32.vlgmr.msra.gmra.mrb[10].mxu1 %vm253_vm3, %v1275_v59 }
 0xf14   :  { %4037 = vmatpush3.bf16.msra.mxu1 %v4517_v19  ;;  %4046 = vmatpush3.bf16.msra.mxu0 %v4555_v38 }
 0xf15   :  { %4038 = vmatprep.subr.bf16.mxu1 %v4353_v18  ;;  %3788 = vmatprep.mubr.msk.f32.mxu1 %vm4354_vm1, %v4352_v15 }
 0xf16   :  { %4053 = vmatprep.subr.bf16.mxu0 %v4353_v18 }
 0xf18   :  { %4040 = vmatpush3.bf16.msra.mxu1 %v4524_v20 }
 0xf19   :  { %4047 = vmatprep.subr.bf16.mxu1 %v4353_v18 }
 0xfe2   :  { %v1426_v61 = vpop.f32.mrb[14].mxu0 }
 0xfe3   :  { %v1430_v62 = vadd.f32 %v1426_v61, %v1357_v60  ;;  %v3779_v63 = vpop.f32.mrb[15].mxu0 }
 0xfe5   :  { %4230 = vtanh.f32 %v1430_v62  ;;  %v3391_v6 = vmul.f32 -1.442695, %v1430_v62 }
 0xfe6   :  { %v1352_v1 = vpop.f32.mrb[10].mxu1 }
 0xfe7   :  { %v1356_v2 = vadd.f32 %v1352_v1, %v1283_v0  ;;  %v3768_v3 = vpop.f32.mrb[11].mxu1 }
 0xfe9   :  { %4232 = vtanh.f32 %v1356_v2  ;;  %v3390_v7 = vmul.f32 -1.442695, %v1356_v2 }
 0xfea   :  { %4234 = vpow2.f32 %v3391_v6  ;;  %v1769_v6 = vld [vmem:[#allocation3] sm:$0x3] }
 0xfeb   :  { %4236 = vpow2.f32 %v3390_v7 }
 0xfef   :  { %v4231_v4 = vpop.eup %4230 }
 0xff0   :  { %1464 = vrot.lane.b32.xlu0 %v4231_v4, %s4355_s10 }
 0xff3   :  { %v4233_v5 = vpop.eup %4232 }
 0xff4   :  { %1440 = vrot.lane.b32.xlu1 %v4233_v5, %s4355_s10  ;;  %v4235_v8 = vpop.eup %4234 }
 0xff5   :  { %v1458_v9 = vadd.f32 1.0, %v4235_v8  ;;  %v4237_v10 = vpop.eup %4236 }
 0xff6   :  { %v1434_v11 = vadd.f32 1.0, %v4237_v10  ;;  %v1695_v10 = vld [vmem:[#allocation2 + $0xe] sm:$0x3] }
 0xff7   :  { %4238 = vrcp.f32 %v1458_v9 }
 0xff8   :  { %4240 = vrcp.f32 %v1434_v11 }
0x1001   :  { %v4239_v12 = vpop.eup %4238 }
0x1002   :  { %v4241_v16 = vpop.eup %4240  ;;  %v1462_v22 = vmul.f32 %v4239_v12, %v4703_v48 }
0x1003   :  { %v1438_v25 = vmul.f32 %v4241_v16, %v4707_v51 }
0x1062   :  { %v1465_v13 = vpop.permute.xlu0 %1464 }
0x1063   :  { %v1467_v14 = vmul.f32 %v4239_v12, %v1465_v13 }
0x1065   :  { %1469 = vrot.lane.b32.xlu0 %v1467_v14, %s4356_s2 }
0x1066   :  { %v1441_v17 = vpop.permute.xlu1 %1440 }
0x1067   :  { %v1443_v21 = vmul.f32 %v4241_v16, %v1441_v17 }
0x1069   :  { %1445 = vrot.lane.b32.xlu1 %v1443_v21, %s4356_s2 }
0x10d7   :  { %v1470_v23 = vpop.permute.xlu0 %1469 }
0x10d8   :  { %v4735_v24 = vadd.f32 %v1470_v23, %v1462_v22 }
0x10da   :  { %4242 = vtanh.f32 %v4735_v24 }
0x10db   :  { %v1446_v26 = vpop.permute.xlu1 %1445 }
0x10dc   :  { %v4739_v27 = vadd.f32 %v1446_v26, %v1438_v25 }
0x10de   :  { %4244 = vtanh.f32 %v4739_v27 }
0x10e4   :  { %v4243_v28 = vpop.eup %4242 }
0x10e5   :  { %1475 = vrot.lane.b32.xlu0 %v4243_v28, %s4355_s10 }
0x10e8   :  { %v4245_v29 = vpop.eup %4244 }
0x10e9   :  { %1451 = vrot.lane.b32.xlu1 %v4245_v29, %s4355_s10 }
0x1157   :  { %v1476_v30 = vpop.permute.xlu0 %1475 }
0x1158   :  { %v1478_v31 = vmul.f32 %v4239_v12, %v1476_v30 }
0x115a   :  { %1485 = vrot.lane.b32.xlu0 %v1478_v31, %s4356_s2 }
0x115b   :  { %v1452_v32 = vpop.permute.xlu1 %1451 }
0x115c   :  { %v1454_v33 = vmul.f32 %v4241_v16, %v1452_v32 }
0x115e   :  { %1480 = vrot.lane.b32.xlu1 %v1454_v33, %s4356_s2 }
0x11cc   :  { %v1486_v34 = vpop.permute.xlu0 %1485 }
0x11cd   :  { %1488 = vst.msk [vmem:[#allocation5 + $0x4] sm:$0x3] %vm452_vm2, %v1486_v34  ;;  %3800 = vmatmul.mubr.msk.f32.vlgmr.msra.gmra.mrb[16].mxu0 %vm253_vm3, %v1486_v34 }
0x11ce   :  { %4055 = vmatpush3.bf16.msra.mxu0 %v4546_v35  ;;  %3821 = vmatprep.mubr.msk.f32.mxu0 %vm4354_vm1, %v4352_v15  ;;  %v1563_v35 = vld [vmem:[#allocation3 + $0x2] sm:$0x3] }
0x11cf   :  { %4056 = vmatprep.subr.bf16.mxu0 %v4353_v18 }
0x11d0   :  { %v1481_v36 = vpop.permute.xlu1 %1480 }
0x11d1   :  { %1483 = vst.msk [vmem:[#allocation4 + $0xa] sm:$0x3] %vm452_vm2, %v1481_v36  ;;  %3789 = vmatmul.mubr.msk.f32.vlgmr.msra.gmra.mrb[12].mxu1 %vm253_vm3, %v1481_v36 }
0x11d2   :  { %4049 = vmatpush3.bf16.msra.mxu1 %v4517_v19  ;;  %4058 = vmatpush3.bf16.msra.mxu0 %v4555_v38 }
0x11d3   :  { %4050 = vmatprep.subr.bf16.mxu1 %v4353_v18  ;;  %3810 = vmatprep.mubr.msk.f32.mxu1 %vm4354_vm1, %v4352_v15 }
0x11d4   :  { %4075 = vmatprep.subr.bf16.mxu0 %v4353_v18 }
0x11d6   :  { %4052 = vmatpush3.bf16.msra.mxu1 %v4524_v20 }
0x12a0   :  { %v1632_v37 = vpop.f32.mrb[16].mxu0 }
0x12a1   :  { %v1636_v39 = vadd.f32 %v1632_v37, %v1563_v35  ;;  %v3801_v40 = vpop.f32.mrb[17].mxu0 }
0x12a3   :  { %4246 = vtanh.f32 %v1636_v39  ;;  %v3395_v45 = vmul.f32 -1.442695, %v1636_v39 }
0x12a4   :  { %v1558_v42 = vpop.f32.mrb[12].mxu1 }
0x12a5   :  { %v1562_v43 = vadd.f32 %v1558_v42, %v1489_v41  ;;  %v3790_v19 = vpop.f32.mrb[13].mxu1 }
0x12a7   :  { %4248 = vtanh.f32 %v1562_v43  ;;  %v3394_v46 = vmul.f32 -1.442695, %v1562_v43 }
0x12a8   :  { %4250 = vpow2.f32 %v3395_v45 }
0x12a9   :  { %4252 = vpow2.f32 %v3394_v46 }
0x12ad   :  { %v4247_v38 = vpop.eup %4246 }
0x12ae   :  { %1670 = vrot.lane.b32.xlu0 %v4247_v38, %s4355_s10  ;;  %v1901_v38 = vld [vmem:[#allocation4] sm:$0xff] }
0x12b1   :  { %v4249_v44 = vpop.eup %4248 }
0x12b2   :  { %1646 = vrot.lane.b32.xlu1 %v4249_v44, %s4355_s10  ;;  %v4251_v20 = vpop.eup %4250  ;;  %v1905_v44 = vsel %vm253_vm3, %v1901_v38, 0.0 }
0x12b3   :  { %v1664_v47 = vadd.f32 1.0, %v4251_v20  ;;  %v4253_v48 = vpop.eup %4252 }
0x12b4   :  { %v1640_v49 = vadd.f32 1.0, %v4253_v48 }
0x12b5   :  { %4254 = vrcp.f32 %v1664_v47 }
0x12b6   :  { %4256 = vrcp.f32 %v1640_v49 }
0x12bf   :  { %v4255_v50 = vpop.eup %4254 }
0x12c0   :  { %v4257_v53 = vpop.eup %4256  ;;  %v1668_v56 = vmul.f32 %v4255_v50, %v4735_v24 }
0x12c1   :  { %v1644_v59 = vmul.f32 %v4257_v53, %v4739_v27 }
0x1320   :  { %v1671_v51 = vpop.permute.xlu0 %1670 }
0x1321   :  { %v1673_v52 = vmul.f32 %v4255_v50, %v1671_v51 }
0x1323   :  { %1675 = vrot.lane.b32.xlu0 %v1673_v52, %s4356_s2 }
0x1324   :  { %v1647_v54 = vpop.permute.xlu1 %1646 }
0x1325   :  { %v1649_v55 = vmul.f32 %v4257_v53, %v1647_v54 }
0x1327   :  { %1651 = vrot.lane.b32.xlu1 %v1649_v55, %s4356_s2 }
0x1395   :  { %v1676_v57 = vpop.permute.xlu0 %1675 }
0x1396   :  { %v1678_v58 = vadd.f32 %v1676_v57, %v1668_v56 }
0x1398   :  { %4258 = vtanh.f32 %v1678_v58 }
0x1399   :  { %v1652_v60 = vpop.permute.xlu1 %1651 }
0x139a   :  { %v1654_v61 = vadd.f32 %v1652_v60, %v1644_v59 }
0x139c   :  { %4260 = vtanh.f32 %v1654_v61 }
0x13a2   :  { %v4259_v62 = vpop.eup %4258 }
0x13a3   :  { %1681 = vrot.lane.b32.xlu0 %v4259_v62, %s4355_s10 }
0x13a6   :  { %v4261_v63 = vpop.eup %4260 }
0x13a7   :  { %1657 = vrot.lane.b32.xlu1 %v4261_v63, %s4355_s10 }
0x1415   :  { %v1682_v0 = vpop.permute.xlu0 %1681 }
0x1416   :  { %v1684_v1 = vmul.f32 %v4255_v50, %v1682_v0  ;;  %v1904_v50 = vld [vmem:[#allocation5 + $0x8] sm:$0xff] }
0x1417   :  { %v1914_v51 = vsel %vm253_vm3, %v1904_v50, 0.0 }
0x1418   :  { %1691 = vrot.lane.b32.xlu0 %v1684_v1, %s4356_s2 }
0x1419   :  { %v1658_v2 = vpop.permute.xlu1 %1657 }
0x141a   :  { %v1660_v3 = vmul.f32 %v4257_v53, %v1658_v2 }
0x141c   :  { %1686 = vrot.lane.b32.xlu1 %v1660_v3, %s4356_s2 }
0x148a   :  { %v1692_v4 = vpop.permute.xlu0 %1691 }
0x148b   :  { %1694 = vst.msk [vmem:[#allocation5 + $0x2] sm:$0x3] %vm452_vm2, %v1692_v4  ;;  %3822 = vmatmul.mubr.msk.f32.vlgmr.msra.gmra.mrb[18].mxu0 %vm253_vm3, %v1692_v4 }
0x148c   :  { %3854 = vmatprep.mubr.msk.f32.mxu0 %vm4354_vm1, %v4352_v15 }
0x148e   :  { %v1687_v5 = vpop.permute.xlu1 %1686 }
0x148f   :  { %1689 = vst.msk [vmem:[#allocation4 + $0xc] sm:$0x3] %vm452_vm2, %v1687_v5  ;;  %3811 = vmatmul.mubr.msk.f32.vlgmr.msra.gmra.mrb[14].mxu1 %vm253_vm3, %v1687_v5 }
0x155e   :  { %v1838_v7 = vpop.f32.mrb[18].mxu0 }
0x155f   :  { %v1842_v8 = vadd.f32 %v1838_v7, %v1769_v6  ;;  %v3823_v9 = vpop.f32.mrb[19].mxu0 }
0x1560   :  { %v3499_v9 = vld [vmem:[%s5043_s5 + $0x8] sm:$0xff]  }
0x1561   :  { %4262 = vtanh.f32 %v1842_v8  ;;  %v3399_v17 = vmul.f32 -1.442695, %v1842_v8  ;;  %v3461_v8 = vld [vmem:[%s5043_s5] sm:$0xff]   ;;  %s5046_s5 = sld [smem:[#allocation17_spill]] }
0x1562   :  { %v1764_v11 = vpop.f32.mrb[14].mxu1  ;;  %4060 = vmatprep.subr.bf16.mxu1 %v3461_v8 }
0x1563   :  { %v1768_v12 = vadd.f32 %v1764_v11, %v1695_v10  ;;  %v3812_v13 = vpop.f32.mrb[15].mxu1  ;;  %4062 = vmatpush3.bf16.msra.mxu1 %v3461_v8  ;;  %v3453_v10 = vld [vmem:[%s5044_s28] sm:$0xff]  }
0x1564   :  { %4064 = vmatprep.subr.bf16.mxu1 %v3499_v9  ;;  %v4811_v11 = vld [vmem:[%s5045_s29] sm:$0xff]  }
0x1565   :  { %4264 = vtanh.f32 %v1768_v12  ;;  %v3398_v21 = vmul.f32 -1.442695, %v1768_v12  ;;  %4077 = vmatpush3.bf16.msra.mxu0 %v4811_v11  ;;  %v4818_v12 = vld [vmem:[%s5045_s29 + $0x8] sm:$0xff]  }
0x1566   :  { %4266 = vpow2.f32 %v3399_v17  ;;  %4078 = vmatprep.subr.bf16.mxu0 %v4353_v18 }
0x1567   :  { %4268 = vpow2.f32 %v3398_v21  ;;  %4066 = vmatpush3.bf16.msra.mxu1 %v3499_v9 }
0x1568   :  { %4068 = vmatprep.subr.bf16.mxu1 %v3453_v10 }
0x1569   :  { %4080 = vmatpush3.bf16.msra.mxu0 %v4818_v12 }
0x156a   :  { %4081 = vmatprep.subr.bf16.mxu0 %v4353_v18 }
0x156b   :  { %v4263_v14 = vpop.eup %4262 }
0x156c   :  { %1876 = vrot.lane.b32.xlu0 %v4263_v14, %s4355_s10  ;;  %3855 = vmatmul.mubr.f32.vlgmr.msra.gmra.mrb[20].mxu0 %v4352_v15 }
0x156d   :  { %4083 = vmatpush3.bf16.msra.mxu0 %v4811_v11  ;;  %3865 = vmatprep.mubr.msk.f32.mxu0 %vm4354_vm1, %v4352_v15 }
0x156e   :  { %4084 = vmatprep.subr.bf16.mxu0 %v4353_v18 }
0x156f   :  { %v4265_v16 = vpop.eup %4264 }
0x1570   :  { %1852 = vrot.lane.b32.xlu1 %v4265_v16, %s4355_s10  ;;  %v4267_v22 = vpop.eup %4266 }
0x1571   :  { %v1870_v23 = vadd.f32 1.0, %v4267_v22  ;;  %v4269_v24 = vpop.eup %4268  ;;  %4086 = vmatpush3.bf16.msra.mxu0 %v4818_v12 }
0x1572   :  { %v1846_v25 = vadd.f32 1.0, %v4269_v24  ;;  %4093 = vmatprep.subr.bf16.mxu0 %v4353_v18 }
0x1573   :  { %4270 = vrcp.f32 %v1870_v23 }
0x1574   :  { %4272 = vrcp.f32 %v1846_v25 }
0x157d   :  { %v4271_v26 = vpop.eup %4270 }
0x157e   :  { %v4273_v29 = vpop.eup %4272  ;;  %v1874_v32 = vmul.f32 %v4271_v26, %v1678_v58 }
0x157f   :  { %v1850_v36 = vmul.f32 %v4273_v29, %v1654_v61 }
0x15de   :  { %v1877_v27 = vpop.permute.xlu0 %1876 }
0x15df   :  { %v1879_v28 = vmul.f32 %v4271_v26, %v1877_v27 }
0x15e1   :  { %1881 = vrot.lane.b32.xlu0 %v1879_v28, %s4356_s2  ;;  %v3402_v28 = vld [vmem:[%s5046_s5] ss:$0 sm:$0xff] }
0x15e2   :  { %v1853_v30 = vpop.permute.xlu1 %1852 }
0x15e3   :  { %v1855_v31 = vmul.f32 %v4273_v29, %v1853_v30  ;;  %v3403_v30 = vld [vmem:[%s5047_s14] ss:$0 sm:$0xff] }
0x15e5   :  { %1857 = vrot.lane.b32.xlu1 %v1855_v31, %s4356_s2 }
0x1653   :  { %v1882_v33 = vpop.permute.xlu0 %1881 }
0x1654   :  { %v1884_v34 = vadd.f32 %v1882_v33, %v1874_v32 }
0x1656   :  { %4274 = vtanh.f32 %v1884_v34  ;;  %v3400_v34 = vld [vmem:[%s5002_s7] ss:$0 sm:$0xff] }
0x1657   :  { %v1858_v35 = vpop.permute.xlu1 %1857 }
0x1658   :  { %v1860_v37 = vadd.f32 %v1858_v35, %v1850_v36 }
0x165a   :  { %4276 = vtanh.f32 %v1860_v37 }
0x1660   :  { %v4275_v39 = vpop.eup %4274 }
0x1661   :  { %1887 = vrot.lane.b32.xlu0 %v4275_v39, %s4355_s10 }
0x1664   :  { %v4277_v40 = vpop.eup %4276 }
0x1665   :  { %1863 = vrot.lane.b32.xlu1 %v4277_v40, %s4355_s10  ;;  %v3401_v40 = vld [vmem:[%s5003_s8] ss:$0 sm:$0xff] }
0x16d3   :  { %v1888_v41 = vpop.permute.xlu0 %1887 }
0x16d4   :  { %v1890_v42 = vmul.f32 %v4271_v26, %v1888_v41 }
0x16d6   :  { %1897 = vrot.lane.b32.xlu0 %v1890_v42, %s4356_s2 }
0x16d7   :  { %v1864_v43 = vpop.permute.xlu1 %1863 }
0x16d8   :  { %v1866_v19 = vmul.f32 %v4273_v29, %v1864_v43 }
0x16da   :  { %1892 = vrot.lane.b32.xlu1 %v1866_v19, %s4356_s2  ;;  %v3498_v19 = vld [vmem:[%s5044_s28 + $0x8] sm:$0xff]  }
0x16f5   :  { %1906 = vadd.xlane.f32.xlu0 %v1905_v44 }
0x1748   :  { %v1898_v45 = vpop.permute.xlu0 %1897 }
0x1749   :  { %1900 = vst.msk [vmem:[#allocation5] sm:$0x3] %vm452_vm2, %v1898_v45  ;;  %v2253_v45 = vpop.f32.mrb[20].mxu0 }
0x174c   :  { %v1893_v46 = vpop.permute.xlu1 %1892 }
0x174d   :  { %1895 = vst.msk [vmem:[#allocation4 + $0xe] sm:$0x3] %vm452_vm2, %v1893_v46  ;;  %v3856_v46 = vpop.f32.mrb[21].mxu0 }
0x1750   :  { %v1903_v20 = vld [vmem:[#allocation5] sm:$0xff] }
0x1751   :  { %v1911_v47 = vsel %vm253_vm3, %v1903_v20, 0.0 }
0x1752   :  { %1912 = vadd.xlane.f32.xlu1 %v1911_v47 }
0x1754   :  { %v1902_v48 = vld [vmem:[#allocation4 + $0x8] sm:$0xff] }
0x1755   :  { %v1908_v49 = vsel %vm253_vm3, %v1902_v48, 0.0 }
0x1756   :  { %1909 = vadd.xlane.f32.xlu0 %v1908_v49 }
0x175a   :  { %1915 = vadd.xlane.f32.xlu0 %v1914_v51 }
0x1782   :  { %v1907_v52 = vpop.xlane.xlu0 %1906 }
0x17df   :  { %v1913_v53 = vpop.xlane.xlu1 %1912 }
0x17e0   :  { %v1917_v54 = vadd.f32 %v1913_v53, %v1907_v52 }
0x17e2   :  { %v1919_v55 = vmul.f32 0.015625, %v1917_v54 }
0x17e3   :  { %v1910_v56 = vpop.xlane.xlu0 %1909 }
0x17e4   :  { %v4791_v57 = vsub.f32 %v1901_v38, %v1919_v55  ;;  %v1923_v58 = vsub.f32 %v1903_v20, %v1919_v55  ;;  %v3408_v20 = vld [vmem:[%s5004_s13] ss:$0 sm:$0xff] }
0x17e6   :  { %v1933_v59 = vmul.f32 %v1923_v58, %v1923_v58  ;;  %v1925_v60 = vmul.f32 %v4791_v57, %v4791_v57 }
0x17e7   :  { %v1916_v61 = vpop.xlane.xlu0 %1915 }
0x17e8   :  { %v1918_v62 = vadd.f32 %v1916_v61, %v1910_v56  ;;  %v1935_v63 = vsel %vm253_vm3, %v1933_v59, 0.0  ;;  %v1927_v0 = vsel %vm253_vm3, %v1925_v60, 0.0 }
0x17e9   :  { %1936 = vadd.xlane.f32.xlu1 %v1935_v63  ;;  %1928 = vadd.xlane.f32.xlu0 %v1927_v0 }
0x17ea   :  { %v1920_v1 = vmul.f32 0.015625, %v1918_v62 }
0x17ec   :  { %v1922_v2 = vsub.f32 %v1902_v48, %v1920_v1  ;;  %v1924_v3 = vsub.f32 %v1904_v50, %v1920_v1 }
0x17ee   :  { %v1934_v4 = vmul.f32 %v1924_v3, %v1924_v3  ;;  %v1926_v5 = vmul.f32 %v1922_v2, %v1922_v2 }
0x17f0   :  { %v1938_v6 = vsel %vm253_vm3, %v1934_v4, 0.0  ;;  %v1930_v7 = vsel %vm253_vm3, %v1926_v5, 0.0 }
0x17f1   :  { %1939 = vadd.xlane.f32.xlu1 %v1938_v6  ;;  %1931 = vadd.xlane.f32.xlu0 %v1930_v7 }
0x1876   :  { %v1937_v13 = vpop.xlane.xlu1 %1936  ;;  %v1929_v14 = vpop.xlane.xlu0 %1928 }
0x1877   :  { %v1941_v16 = vadd.f32 %v1937_v13, %v1929_v14 }
0x1879   :  { %v1943_v17 = vmul.f32 0.015625, %v1941_v16 }
0x187b   :  { %v1945_v21 = vadd.f32 1e-05, %v1943_v17 }
0x187d   :  { %4278 = vrsqrt.f32 %v1945_v21 }
0x187e   :  { %v1940_v22 = vpop.xlane.xlu1 %1939  ;;  %v1932_v23 = vpop.xlane.xlu0 %1931 }
0x187f   :  { %v1942_v24 = vadd.f32 %v1940_v22, %v1932_v23 }
0x1881   :  { %v1944_v25 = vmul.f32 0.015625, %v1942_v24 }
0x1883   :  { %v1946_v26 = vadd.f32 1e-05, %v1944_v25 }
0x1885   :  { %4280 = vrsqrt.f32 %v1946_v26 }
0x1887   :  { %v4279_v27 = vpop.eup %4278 }
0x1888   :  { %v1969_v29 = vmul.f32 %v4279_v27, %v1923_v58  ;;  %v1949_v33 = vmul.f32 %v4279_v27, %v4791_v57 }
0x188a   :  { %v1978_v31 = vmul.f32 %v3402_v28, %v1969_v29  ;;  %v1958_v37 = vmul.f32 %v3400_v34, %v1949_v33 }
0x188c   :  { %v1987_v32 = vadd.f32 %v3403_v30, %v1978_v31  ;;  %v1967_v43 = vadd.f32 %v3401_v40, %v1958_v37 }
0x188e   :  { %3832 = vmatprep.mubr.msk.f32.mxu1 %vm253_vm3, %v1987_v32 }
0x188f   :  { %v4281_v36 = vpop.eup %4280 }
0x1890   :  { %v1970_v35 = vmul.f32 %v4281_v36, %v1924_v3  ;;  %v1950_v41 = vmul.f32 %v4281_v36, %v1922_v2 }
0x1892   :  { %v1979_v39 = vmul.f32 %v3402_v28, %v1970_v35  ;;  %v1959_v38 = vmul.f32 %v3400_v34, %v1950_v41 }
0x1894   :  { %v1988_v42 = vadd.f32 %v3403_v30, %v1979_v39  ;;  %v1968_v44 = vadd.f32 %v3401_v40, %v1959_v38 }
0x1896   :  { %3833 = vmatmul.mubr.msk.f32.vlgmr.msra.gmra.mrb[16].mxu1 %vm253_vm3, %v1988_v42 }
0x1897   :  { %4070 = vmatpush3.bf16.msra.mxu1 %v3453_v10  ;;  %3843 = vmatprep.mubr.msk.f32.mxu1 %vm253_vm3, %v1967_v43 }
0x1898   :  { %4072 = vmatprep.subr.bf16.mxu1 %v3498_v19 }
0x189b   :  { %4074 = vmatpush3.bf16.msra.mxu1 %v3498_v19 }
0x189c   :  { %4087 = vmatprep.subr.bf16.mxu1 %v4353_v18 }
0x189e   :  { %3844 = vmatmul.mubr.msk.f32.vlgmr.msra.gmra.mrb[16].mxu1 %vm253_vm3, %v1968_v44 }
0x189f   :  { %4089 = vmatpush3.bf16.msra.mxu1 %v4811_v11  ;;  %3876 = vmatprep.mubr.msk.f32.mxu1 %vm4354_vm1, %v4352_v15 }
0x18a0   :  { %4090 = vmatprep.subr.bf16.mxu1 %v4353_v18 }
0x18a3   :  { %4092 = vmatpush3.bf16.msra.mxu1 %v4818_v12 }
0x18a4   :  { %4099 = vmatprep.subr.bf16.mxu1 %v4353_v18 }
0x1971   :  { %v3845_v47 = vpop.f32.mrb[16].mxu1 }
0x1972   :  { %v2175_v48 = vadd.f32 %v3845_v47, %v3408_v20  ;;  %v2158_v49 = vpop.f32.mrb[17].mxu1 }
0x1973   :  { %v2174_v50 = vadd.f32 %v3408_v20, %v2158_v49 }
0x1974   :  { %2177 = vst [vmem:[#allocation6 + $0x8] sm:$0xff] %v2175_v48 }
0x1975   :  { %2176 = vst [vmem:[#allocation6] sm:$0xff] %v2174_v50 }
0x197c   :  { %v2186_v51 = vld [vmem:[#allocation6] sm:$0x3]  ;;  %v2282_v3 = vld [vmem:[#allocation6 + $0x2] sm:$0x3]  ;;  %v2383_v27 = vld [vmem:[#allocation6 + $0x4] sm:$0x3] }
0x197d   :  { %v2257_v52 = vadd.f32 %v2253_v45, %v2186_v51  ;;  %v2484_v44 = vld [vmem:[#allocation6 + $0x6] sm:$0x3] }
0x197f   :  { %4282 = vtanh.f32 %v2257_v52  ;;  %v3409_v54 = vmul.f32 -1.442695, %v2257_v52 }
0x1981   :  { %4284 = vpow2.f32 %v3409_v54 }
0x1989   :  { %v4283_v53 = vpop.eup %4282 }
0x198a   :  { %2267 = vrot.lane.b32.xlu0 %v4283_v53, %s4355_s10 }
0x198b   :  { %v4285_v55 = vpop.eup %4284 }
0x198c   :  { %v2261_v56 = vadd.f32 1.0, %v4285_v55 }
0x198e   :  { %4286 = vrcp.f32 %v2261_v56 }
0x1998   :  { %v4287_v57 = vpop.eup %4286 }
0x1999   :  { %v2265_v60 = vmul.f32 0.0, %v4287_v57 }
0x19fc   :  { %v2268_v58 = vpop.permute.xlu0 %2267 }
0x19fd   :  { %v2270_v59 = vmul.f32 %v4287_v57, %v2268_v58 }
0x19ff   :  { %2272 = vrot.lane.b32.xlu1 %v2270_v59, %s4356_s2 }
0x1a71   :  { %v2273_v61 = vpop.permute.xlu1 %2272 }
0x1a72   :  { %v2275_v62 = vadd.f32 %v2273_v61, %v2265_v60  ;;  %v2585_v61 = vld [vmem:[#allocation6 + $0x8] sm:$0x3] }
0x1a74   :  { %4288 = vtanh.f32 %v2275_v62 }
0x1a7e   :  { %v4289_v63 = vpop.eup %4288 }
0x1a7f   :  { %2278 = vrot.lane.b32.xlu1 %v4289_v63, %s4355_s10 }
0x1af1   :  { %v2279_v0 = vpop.permute.xlu1 %2278 }
0x1af2   :  { %v2281_v1 = vmul.f32 %v4287_v57, %v2279_v0 }
0x1af4   :  { %2284 = vrot.lane.b32.xlu1 %v2281_v1, %s4356_s2 }
0x1b66   :  { %v2285_v2 = vpop.permute.xlu1 %2284 }
0x1b67   :  { %3866 = vmatmul.mubr.msk.f32.vlgmr.msra.gmra.mrb[22].mxu0 %vm253_vm3, %v2285_v2 }
0x1b68   :  { %4095 = vmatpush3.bf16.msra.mxu0 %v4811_v11  ;;  %3887 = vmatprep.mubr.msk.f32.mxu0 %vm4354_vm1, %v4352_v15 }
0x1b69   :  { %4096 = vmatprep.subr.bf16.mxu0 %v4353_v18 }
0x1b6c   :  { %4098 = vmatpush3.bf16.msra.mxu0 %v4818_v12 }
0x1b6d   :  { %4105 = vmatprep.subr.bf16.mxu0 %v4353_v18 }
0x1c3a   :  { %v2354_v4 = vpop.f32.mrb[22].mxu0 }
0x1c3b   :  { %v2358_v5 = vadd.f32 %v2354_v4, %v2282_v3  ;;  %v3867_v6 = vpop.f32.mrb[23].mxu0 }
0x1c3d   :  { %4290 = vtanh.f32 %v2358_v5  ;;  %v3411_v8 = vmul.f32 -1.442695, %v2358_v5 }
0x1c3f   :  { %4292 = vpow2.f32 %v3411_v8 }
0x1c47   :  { %v4291_v7 = vpop.eup %4290 }
0x1c48   :  { %2368 = vrot.lane.b32.xlu0 %v4291_v7, %s4355_s10 }
0x1c49   :  { %v4293_v9 = vpop.eup %4292 }
0x1c4a   :  { %v2362_v10 = vadd.f32 1.0, %v4293_v9 }
0x1c4c   :  { %4294 = vrcp.f32 %v2362_v10 }
0x1c56   :  { %v4295_v13 = vpop.eup %4294 }
0x1c57   :  { %v2366_v17 = vmul.f32 %v4295_v13, %v2275_v62 }
0x1cba   :  { %v2369_v14 = vpop.permute.xlu0 %2368 }
0x1cbb   :  { %v2371_v16 = vmul.f32 %v4295_v13, %v2369_v14 }
0x1cbd   :  { %2373 = vrot.lane.b32.xlu1 %v2371_v16, %s4356_s2 }
0x1d2f   :  { %v2374_v21 = vpop.permute.xlu1 %2373 }
0x1d30   :  { %v2376_v22 = vadd.f32 %v2374_v21, %v2366_v17  ;;  %v2686_v21 = vld [vmem:[#allocation6 + $0xa] sm:$0x3] }
0x1d32   :  { %4296 = vtanh.f32 %v2376_v22 }
0x1d3c   :  { %v4297_v23 = vpop.eup %4296 }
0x1d3d   :  { %2379 = vrot.lane.b32.xlu0 %v4297_v23, %s4355_s10 }
0x1daf   :  { %v2380_v24 = vpop.permute.xlu0 %2379 }
0x1db0   :  { %v2382_v25 = vmul.f32 %v4295_v13, %v2380_v24 }
0x1db2   :  { %2385 = vrot.lane.b32.xlu1 %v2382_v25, %s4356_s2 }
0x1e24   :  { %v2386_v26 = vpop.permute.xlu1 %2385 }
0x1e25   :  { %3877 = vmatmul.mubr.msk.f32.vlgmr.msra.gmra.mrb[18].mxu1 %vm253_vm3, %v2386_v26 }
0x1e26   :  { %4101 = vmatpush3.bf16.msra.mxu1 %v4811_v11  ;;  %3898 = vmatprep.mubr.msk.f32.mxu1 %vm4354_vm1, %v4352_v15 }
0x1e27   :  { %4102 = vmatprep.subr.bf16.mxu1 %v4353_v18 }
0x1e2a   :  { %4104 = vmatpush3.bf16.msra.mxu1 %v4818_v12 }
0x1e2b   :  { %4111 = vmatprep.subr.bf16.mxu1 %v4353_v18 }
0x1ef8   :  { %v2455_v28 = vpop.f32.mrb[18].mxu1 }
0x1ef9   :  { %v2459_v29 = vadd.f32 %v2455_v28, %v2383_v27  ;;  %v3878_v30 = vpop.f32.mrb[19].mxu1 }
0x1efb   :  { %4298 = vtanh.f32 %v2459_v29  ;;  %v3413_v32 = vmul.f32 -1.442695, %v2459_v29 }
0x1efd   :  { %4300 = vpow2.f32 %v3413_v32 }
0x1f05   :  { %v4299_v31 = vpop.eup %4298 }
0x1f06   :  { %2469 = vrot.lane.b32.xlu0 %v4299_v31, %s4355_s10 }
0x1f07   :  { %v4301_v33 = vpop.eup %4300 }
0x1f08   :  { %v2463_v34 = vadd.f32 1.0, %v4301_v33 }
0x1f0a   :  { %4302 = vrcp.f32 %v2463_v34 }
0x1f14   :  { %v4303_v36 = vpop.eup %4302 }
0x1f15   :  { %v2467_v39 = vmul.f32 %v4303_v36, %v2376_v22 }
0x1f78   :  { %v2470_v35 = vpop.permute.xlu0 %2469 }
0x1f79   :  { %v2472_v37 = vmul.f32 %v4303_v36, %v2470_v35 }
0x1f7b   :  { %2474 = vrot.lane.b32.xlu1 %v2472_v37, %s4356_s2  ;;  %v2787_v37 = vld [vmem:[#allocation6 + $0xc] sm:$0x3] }
0x1fed   :  { %v2475_v40 = vpop.permute.xlu1 %2474 }
0x1fee   :  { %v2477_v41 = vadd.f32 %v2475_v40, %v2467_v39 }
0x1ff0   :  { %4304 = vtanh.f32 %v2477_v41 }
0x1ffa   :  { %v4305_v42 = vpop.eup %4304 }
0x1ffb   :  { %2480 = vrot.lane.b32.xlu0 %v4305_v42, %s4355_s10 }
0x206d   :  { %v2481_v43 = vpop.permute.xlu0 %2480 }
0x206e   :  { %v2483_v19 = vmul.f32 %v4303_v36, %v2481_v43 }
0x2070   :  { %2486 = vrot.lane.b32.xlu1 %v2483_v19, %s4356_s2 }
0x20e2   :  { %v2487_v38 = vpop.permute.xlu1 %2486 }
0x20e3   :  { %3888 = vmatmul.mubr.msk.f32.vlgmr.msra.gmra.mrb[24].mxu0 %vm253_vm3, %v2487_v38 }
0x20e4   :  { %4107 = vmatpush3.bf16.msra.mxu0 %v4811_v11  ;;  %3909 = vmatprep.mubr.msk.f32.mxu0 %vm4354_vm1, %v4352_v15 }
0x20e5   :  { %4108 = vmatprep.subr.bf16.mxu0 %v4353_v18 }
0x20e8   :  { %4110 = vmatpush3.bf16.msra.mxu0 %v4818_v12 }
0x20e9   :  { %4117 = vmatprep.subr.bf16.mxu0 %v4353_v18 }
0x21b6   :  { %v2556_v45 = vpop.f32.mrb[24].mxu0 }
0x21b7   :  { %v2560_v46 = vadd.f32 %v2556_v45, %v2484_v44  ;;  %v3889_v20 = vpop.f32.mrb[25].mxu0 }
0x21b9   :  { %4306 = vtanh.f32 %v2560_v46  ;;  %v3415_v48 = vmul.f32 -1.442695, %v2560_v46 }
0x21bb   :  { %4308 = vpow2.f32 %v3415_v48 }
0x21c3   :  { %v4307_v47 = vpop.eup %4306 }
0x21c4   :  { %2570 = vrot.lane.b32.xlu0 %v4307_v47, %s4355_s10 }
0x21c5   :  { %v4309_v49 = vpop.eup %4308 }
0x21c6   :  { %v2564_v50 = vadd.f32 1.0, %v4309_v49 }
0x21c8   :  { %4310 = vrcp.f32 %v2564_v50 }
0x21d2   :  { %v4311_v51 = vpop.eup %4310 }
0x21d3   :  { %v2568_v54 = vmul.f32 %v4311_v51, %v2477_v41 }
0x2236   :  { %v2571_v52 = vpop.permute.xlu0 %2570 }
0x2237   :  { %v2573_v53 = vmul.f32 %v4311_v51, %v2571_v52 }
0x2239   :  { %2575 = vrot.lane.b32.xlu1 %v2573_v53, %s4356_s2  ;;  %v2888_v53 = vld [vmem:[#allocation6 + $0xe] sm:$0x3] }
0x22ab   :  { %v2576_v55 = vpop.permute.xlu1 %2575 }
0x22ac   :  { %v2578_v56 = vadd.f32 %v2576_v55, %v2568_v54 }
0x22ae   :  { %4312 = vtanh.f32 %v2578_v56 }
0x22b8   :  { %v4313_v57 = vpop.eup %4312 }
0x22b9   :  { %2581 = vrot.lane.b32.xlu0 %v4313_v57, %s4355_s10 }
0x232b   :  { %v2582_v58 = vpop.permute.xlu0 %2581 }
0x232c   :  { %v2584_v59 = vmul.f32 %v4311_v51, %v2582_v58 }
0x232e   :  { %2587 = vrot.lane.b32.xlu1 %v2584_v59, %s4356_s2 }
0x23a0   :  { %v2588_v60 = vpop.permute.xlu1 %2587 }
0x23a1   :  { %3899 = vmatmul.mubr.msk.f32.vlgmr.msra.gmra.mrb[20].mxu1 %vm253_vm3, %v2588_v60 }
0x23a2   :  { %4113 = vmatpush3.bf16.msra.mxu1 %v4811_v11  ;;  %3920 = vmatprep.mubr.msk.f32.mxu1 %vm4354_vm1, %v4352_v15 }
0x23a3   :  { %4114 = vmatprep.subr.bf16.mxu1 %v4353_v18 }
0x23a6   :  { %4116 = vmatpush3.bf16.msra.mxu1 %v4818_v12 }
0x23a7   :  { %4123 = vmatprep.subr.bf16.mxu1 %v4353_v18 }
0x2474   :  { %v2657_v62 = vpop.f32.mrb[20].mxu1 }
0x2475   :  { %v2661_v63 = vadd.f32 %v2657_v62, %v2585_v61  ;;  %v3900_v0 = vpop.f32.mrb[21].mxu1 }
0x2477   :  { %4314 = vtanh.f32 %v2661_v63  ;;  %v3417_v2 = vmul.f32 -1.442695, %v2661_v63 }
0x2479   :  { %4316 = vpow2.f32 %v3417_v2 }
0x2481   :  { %v4315_v1 = vpop.eup %4314 }
0x2482   :  { %2671 = vrot.lane.b32.xlu0 %v4315_v1, %s4355_s10 }
0x2483   :  { %v4317_v3 = vpop.eup %4316 }
0x2484   :  { %v2665_v4 = vadd.f32 1.0, %v4317_v3 }
0x2486   :  { %4318 = vrcp.f32 %v2665_v4 }
0x2490   :  { %v4319_v5 = vpop.eup %4318 }
0x2491   :  { %v2669_v8 = vmul.f32 %v4319_v5, %v2578_v56 }
0x24f4   :  { %v2672_v6 = vpop.permute.xlu0 %2671 }
0x24f5   :  { %v2674_v7 = vmul.f32 %v4319_v5, %v2672_v6 }
0x24f7   :  { %2676 = vrot.lane.b32.xlu1 %v2674_v7, %s4356_s2 }
0x2569   :  { %v2677_v9 = vpop.permute.xlu1 %2676 }
0x256a   :  { %v2679_v10 = vadd.f32 %v2677_v9, %v2669_v8  ;;  %v3424_v8 = vld [vmem:[%s5005_s15] ss:$0 sm:$0xff] }
0x256c   :  { %4320 = vtanh.f32 %v2679_v10 }
0x2576   :  { %v4321_v13 = vpop.eup %4320 }
0x2577   :  { %2682 = vrot.lane.b32.xlu0 %v4321_v13, %s4355_s10 }
0x25e9   :  { %v2683_v14 = vpop.permute.xlu0 %2682 }
0x25ea   :  { %v2685_v16 = vmul.f32 %v4319_v5, %v2683_v14 }
0x25ec   :  { %2688 = vrot.lane.b32.xlu1 %v2685_v16, %s4356_s2 }
0x265e   :  { %v2689_v17 = vpop.permute.xlu1 %2688 }
0x265f   :  { %3910 = vmatmul.mubr.msk.f32.vlgmr.msra.gmra.mrb[26].mxu0 %vm253_vm3, %v2689_v17 }
0x2660   :  { %4119 = vmatpush3.bf16.msra.mxu0 %v4811_v11  ;;  %3931 = vmatprep.mubr.msk.f32.mxu0 %vm4354_vm1, %v4352_v15 }
0x2661   :  { %4120 = vmatprep.subr.bf16.mxu0 %v4353_v18 }
0x2664   :  { %4122 = vmatpush3.bf16.msra.mxu0 %v4818_v12 }
0x2665   :  { %4129 = vmatprep.subr.bf16.mxu0 %v4353_v18 }
0x2732   :  { %v2758_v22 = vpop.f32.mrb[26].mxu0 }
0x2733   :  { %v2762_v23 = vadd.f32 %v2758_v22, %v2686_v21  ;;  %v3911_v24 = vpop.f32.mrb[27].mxu0  ;;  %v3425_v21 = vld [vmem:[%s5006_s16] ss:$0 sm:$0xff] }
0x2734   :  { %v3477_v22 = vld [vmem:[%s5007_s17] sm:$0xff]  }
0x2735   :  { %4322 = vtanh.f32 %v2762_v23  ;;  %v3419_v26 = vmul.f32 -1.442695, %v2762_v23  ;;  %v3501_v23 = vld [vmem:[%s5007_s17 + $0x8] sm:$0xff]  }
0x2737   :  { %4324 = vpow2.f32 %v3419_v26 }
0x273f   :  { %v4323_v25 = vpop.eup %4322 }
0x2740   :  { %2772 = vrot.lane.b32.xlu0 %v4323_v25, %s4355_s10 }
0x2741   :  { %v4325_v11 = vpop.eup %4324 }
0x2742   :  { %v2766_v27 = vadd.f32 1.0, %v4325_v11 }
0x2744   :  { %4326 = vrcp.f32 %v2766_v27 }
0x274e   :  { %v4327_v28 = vpop.eup %4326 }
0x274f   :  { %v2770_v12 = vmul.f32 %v4327_v28, %v2679_v10 }
0x27b2   :  { %v2773_v29 = vpop.permute.xlu0 %2772 }
0x27b3   :  { %v2775_v30 = vmul.f32 %v4327_v28, %v2773_v29 }
0x27b5   :  { %2777 = vrot.lane.b32.xlu1 %v2775_v30, %s4356_s2 }
0x2827   :  { %v2778_v31 = vpop.permute.xlu1 %2777 }
0x2828   :  { %v2780_v32 = vadd.f32 %v2778_v31, %v2770_v12 }
0x282a   :  { %4328 = vtanh.f32 %v2780_v32 }
0x2834   :  { %v4329_v33 = vpop.eup %4328 }
0x2835   :  { %2783 = vrot.lane.b32.xlu0 %v4329_v33, %s4355_s10 }
0x28a7   :  { %v2784_v34 = vpop.permute.xlu0 %2783 }
0x28a8   :  { %v2786_v36 = vmul.f32 %v4327_v28, %v2784_v34 }
0x28aa   :  { %2789 = vrot.lane.b32.xlu1 %v2786_v36, %s4356_s2 }
0x291c   :  { %v2790_v35 = vpop.permute.xlu1 %2789 }
0x291d   :  { %3921 = vmatmul.mubr.msk.f32.vlgmr.msra.gmra.mrb[22].mxu1 %vm253_vm3, %v2790_v35 }
0x291e   :  { %3942 = vmatprep.mubr.msk.f32.mxu1 %vm4354_vm1, %v4352_v15  ;;  %4125 = vmatpush3.bf16.msra.mxu1 %v3477_v22 }
0x291f   :  { %4126 = vmatprep.subr.bf16.mxu1 %v4353_v18 }
0x2922   :  { %4128 = vmatpush3.bf16.msra.mxu1 %v3501_v23 }
0x2923   :  { %4135 = vmatprep.subr.bf16.mxu1 %v4353_v18 }
0x29f0   :  { %v2859_v39 = vpop.f32.mrb[22].mxu1 }
0x29f1   :  { %v2863_v40 = vadd.f32 %v2859_v39, %v2787_v37  ;;  %v3922_v41 = vpop.f32.mrb[23].mxu1 }
0x29f3   :  { %4330 = vtanh.f32 %v2863_v40  ;;  %v3421_v43 = vmul.f32 -1.442695, %v2863_v40 }
0x29f5   :  { %4332 = vpow2.f32 %v3421_v43  ;;  %v3502_v43 = vld [vmem:[%s5009_s21 + $0x8] sm:$0xff]  }
0x29fd   :  { %v4331_v42 = vpop.eup %4330 }
0x29fe   :  { %2873 = vrot.lane.b32.xlu0 %v4331_v42, %s4355_s10 }
0x29ff   :  { %v4333_v19 = vpop.eup %4332 }
0x2a00   :  { %v2867_v38 = vadd.f32 1.0, %v4333_v19 }
0x2a02   :  { %4334 = vrcp.f32 %v2867_v38 }
0x2a0c   :  { %v4335_v44 = vpop.eup %4334 }
0x2a0d   :  { %v2871_v20 = vmul.f32 %v4335_v44, %v2780_v32  ;;  %v3426_v32 = vld [vmem:[%s5008_s18] ss:$0 sm:$0xff] }
0x2a70   :  { %v2874_v45 = vpop.permute.xlu0 %2873 }
0x2a71   :  { %v2876_v46 = vmul.f32 %v4335_v44, %v2874_v45 }
0x2a73   :  { %2878 = vrot.lane.b32.xlu1 %v2876_v46, %s4356_s2  ;;  %v3428_v46 = vld [vmem:[%s5010_s19] ss:$0 sm:$0xff] }
0x2ae5   :  { %v2879_v47 = vpop.permute.xlu1 %2878 }
0x2ae6   :  { %v2881_v48 = vadd.f32 %v2879_v47, %v2871_v20  ;;  %v3429_v47 = vld [vmem:[%s5011_s20] ss:$0 sm:$0xff] }
0x2ae8   :  { %4336 = vtanh.f32 %v2881_v48 }
0x2af2   :  { %v4337_v49 = vpop.eup %4336 }
0x2af3   :  { %2884 = vrot.lane.b32.xlu0 %v4337_v49, %s4355_s10 }
0x2b65   :  { %v2885_v50 = vpop.permute.xlu0 %2884 }
0x2b66   :  { %v2887_v51 = vmul.f32 %v4335_v44, %v2885_v50 }
0x2b68   :  { %2890 = vrot.lane.b32.xlu1 %v2887_v51, %s4356_s2  ;;  %v3430_v51 = vld [vmem:[%s5012_s22] ss:$0 sm:$0xff] }
0x2bda   :  { %v2891_v52 = vpop.permute.xlu1 %2890 }
0x2bdb   :  { %3932 = vmatmul.mubr.msk.f32.vlgmr.msra.gmra.mrb[28].mxu0 %vm253_vm3, %v2891_v52 }
0x2bdc   :  { %3953 = vmatprep.mubr.msk.f32.mxu0 %vm4354_vm1, %v4352_v15 }
0x2cae   :  { %v2960_v54 = vpop.f32.mrb[28].mxu0 }
0x2caf   :  { %v2964_v55 = vadd.f32 %v2960_v54, %v2888_v53  ;;  %v3933_v56 = vpop.f32.mrb[29].mxu0 }
0x2cb1   :  { %4338 = vtanh.f32 %v2964_v55  ;;  %v3423_v58 = vmul.f32 -1.442695, %v2964_v55 }
0x2cb3   :  { %4340 = vpow2.f32 %v3423_v58 }
0x2cbb   :  { %v4339_v57 = vpop.eup %4338 }
0x2cbc   :  { %2974 = vrot.lane.b32.xlu0 %v4339_v57, %s4355_s10 }
0x2cbd   :  { %v4341_v59 = vpop.eup %4340 }
0x2cbe   :  { %v2968_v60 = vadd.f32 1.0, %v4341_v59 }
0x2cc0   :  { %4342 = vrcp.f32 %v2968_v60 }
0x2cca   :  { %v4343_v61 = vpop.eup %4342 }
0x2ccb   :  { %v2972_v0 = vmul.f32 %v4343_v61, %v2881_v48 }
0x2d2e   :  { %v2975_v62 = vpop.permute.xlu0 %2974 }
0x2d2f   :  { %v2977_v63 = vmul.f32 %v4343_v61, %v2975_v62 }
0x2d31   :  { %2979 = vrot.lane.b32.xlu1 %v2977_v63, %s4356_s2 }
0x2da3   :  { %v2980_v1 = vpop.permute.xlu1 %2979 }
0x2da4   :  { %v2982_v2 = vadd.f32 %v2980_v1, %v2972_v0 }
0x2da6   :  { %4344 = vtanh.f32 %v2982_v2  ;;  %v3432_v2 = vld [vmem:[%s5014_s23] ss:$0 sm:$0xff] }
0x2db0   :  { %v4345_v3 = vpop.eup %4344 }
0x2db1   :  { %2985 = vrot.lane.b32.xlu0 %v4345_v3, %s4355_s10 }
0x2e23   :  { %v2986_v4 = vpop.permute.xlu0 %2985 }
0x2e24   :  { %v2988_v5 = vmul.f32 %v4343_v61, %v2986_v4  ;;  %v3493_v61 = vld [vmem:[%s5013_s25] sm:$0xff]  }
0x2e25   :  { %v3433_v4 = vld [vmem:[%s5015_s24] ss:$0 sm:$0xff] }
0x2e26   :  { %2992 = vrot.lane.b32.xlu1 %v2988_v5, %s4356_s2 }
0x2e98   :  { %v2993_v6 = vpop.permute.xlu1 %2992 }
0x2e99   :  { %v2995_v7 = vsel %vm452_vm2, %v2993_v6, 0.0 }
0x2e9a   :  { %2996 = vadd.xlane.f32.xlu0 %v2995_v7 }
0x2eb0   :  { %3018 = vrot.lane.b32.xlu0 %v3424_v8, %s4357_s3 }
0x2f27   :  { %v2997_v9 = vpop.xlane.xlu0 %2996 }
0x2f28   :  { %v2999_v10 = vmul.f32 0.03125, %v2997_v9  ;;  %v3434_v9 = vld [vmem:[%s5016_s26] ss:$0 sm:$0xff] }
0x2f2a   :  { %v3000_v13 = vsub.f32 %v2988_v5, %v2999_v10 }
0x2f2b   :  { %v3019_v27 = vpop.permute.xlu0 %3018 }
0x2f2c   :  { %v3001_v14 = vmul.f32 %v3000_v13, %v3000_v13 }
0x2f2e   :  { %3003 = vrot.lane.b32.xlu1 %v3001_v14, %s4356_s2 }
0x2fa0   :  { %v3004_v16 = vpop.permute.xlu1 %3003 }
0x2fa1   :  { %v3006_v17 = vsel %vm452_vm2, %v3004_v16, 0.0 }
0x2fa2   :  { %3007 = vadd.xlane.f32.xlu1 %v3006_v17 }
0x2fb3   :  { %3027 = vrot.lane.b32.xlu1 %v3425_v21, %s4357_s3 }
0x302f   :  { %v3008_v24 = vpop.xlane.xlu1 %3007 }
0x3030   :  { %v3009_v25 = vmul.f32 0.03125, %v3008_v24 }
0x3032   :  { %v3010_v26 = vadd.f32 1e-05, %v3009_v25 }
0x3033   :  { %v3028_v29 = vpop.permute.xlu1 %3027 }
0x3034   :  { %4346 = vrsqrt.f32 %v3010_v26 }
0x303e   :  { %v4347_v11 = vpop.eup %4346 }
0x303f   :  { %v3012_v28 = vmul.f32 %v4347_v11, %v3000_v13 }
0x3041   :  { %v3021_v30 = vmul.f32 %v3019_v27, %v3012_v28 }
0x3043   :  { %v3030_v12 = vadd.f32 %v3028_v29, %v3021_v30 }
0x3045   :  { %3047 = vrot.lane.b32.xlu0 %v3030_v12, %s4356_s2 }
0x30b7   :  { %v3048_v31 = vpop.permute.xlu0 %3047 }
0x30b8   :  { %3943 = vmatmul.mubr.msk.f32.vlgmr.msra.gmra.mrb[24].mxu1 %vm253_vm3, %v3048_v31 }
0x30b9   :  { %3960 = vmatprep.mubr.msk.f32.mxu1 %vm4354_vm1, %v4352_v15  ;;  %v3485_v15 = vld [vmem:[%s5009_s21] sm:$0xff]   ;;  %4137 = vmatpush3.bf16.msra.mxu1 %v3493_v61 }
0x30ba   :  { %4131 = vmatpush3.bf16.msra.mxu0 %v3485_v15 }
0x30bb   :  { %4132 = vmatprep.subr.bf16.mxu0 %v4353_v18 }
0x30be   :  { %4134 = vmatpush3.bf16.msra.mxu0 %v3502_v43 }
0x318b   :  { %v3117_v33 = vpop.f32.mrb[24].mxu1 }
0x318c   :  { %v3118_v34 = vadd.f32 %v3426_v32, %v3117_v33  ;;  %v3944_v36 = vpop.f32.mrb[25].mxu1 }
0x318e   :  { %v3123_v35 = vsel %vm452_vm2, %v3118_v34, 0.0 }
0x318f   :  { %3124 = vadd.xlane.f32.xlu0 %v3123_v35 }
0x321c   :  { %v3125_v37 = vpop.xlane.xlu0 %3124 }
0x321d   :  { %v3126_v39 = vmul.f32 0.03125, %v3125_v37 }
0x321f   :  { %v3127_v40 = vsub.f32 %v3118_v34, %v3126_v39 }
0x3221   :  { %v3128_v41 = vmul.f32 %v3127_v40, %v3127_v40 }
0x3223   :  { %v3129_v42 = vsel %vm452_vm2, %v3128_v41, 0.0 }
0x3224   :  { %3130 = vadd.xlane.f32.xlu1 %v3129_v42 }
0x32b1   :  { %v3131_v19 = vpop.xlane.xlu1 %3130 }
0x32b2   :  { %v3132_v38 = vmul.f32 0.03125, %v3131_v19 }
0x32b4   :  { %v3133_v44 = vadd.f32 1e-05, %v3132_v38 }
0x32b6   :  { %4348 = vrsqrt.f32 %v3133_v44 }
0x32c0   :  { %v4349_v45 = vpop.eup %4348 }
0x32c1   :  { %v3135_v20 = vmul.f32 %v4349_v45, %v3127_v40 }
0x32c3   :  { %v3142_v18 = vmul.f32 %v3428_v46, %v3135_v20 }
0x32c5   :  { %v3149_v48 = vadd.f32 %v3429_v47, %v3142_v18 }
0x32c7   :  { %vm3150_vm4 = vcmp.ge.f32.partialorder %v3149_v48, 0.0  ;;  %v3151_v49 = vmul.f32 0.01, %v3149_v48 }
0x32c9   :  { %v3152_v50 = vsel %vm3150_vm4, %v3149_v48, %v3151_v49 }
0x32ca   :  { %3954 = vmatmul.mubr.msk.f32.vlgmr.msra.gmra.mrb[30].mxu0 %vm253_vm3, %v3152_v50 }
0x339d   :  { %v3237_v52 = vpop.f32.mrb[30].mxu0 }
0x339e   :  { %v3238_v53 = vadd.f32 %v3430_v51, %v3237_v52  ;;  %v3955_v54 = vpop.f32.mrb[31].mxu0 }
0x33a0   :  { %v3244_v55 = vsel %vm3243_vm5, %v3238_v53, 0.0 }
0x33a1   :  { %3245 = vadd.xlane.f32.xlu0 %v3244_v55 }
0x342e   :  { %v3246_v56 = vpop.xlane.xlu0 %3245 }
0x342f   :  { %v3248_v57 = vmul.f32 0.0625, %v3246_v56 }
0x3431   :  { %v3249_v58 = vsub.f32 %v3238_v53, %v3248_v57 }
0x3433   :  { %v3250_v59 = vmul.f32 %v3249_v58, %v3249_v58 }
0x3435   :  { %v3251_v60 = vsel %vm3243_vm5, %v3250_v59, 0.0 }
0x3436   :  { %3252 = vadd.xlane.f32.xlu0 %v3251_v60 }
0x34c3   :  { %v3253_v62 = vpop.xlane.xlu0 %3252 }
0x34c4   :  { %v3254_v63 = vmul.f32 0.0625, %v3253_v62 }
0x34c6   :  { %v3255_v0 = vadd.f32 1e-05, %v3254_v63 }
0x34c8   :  { %4350 = vrsqrt.f32 %v3255_v0 }
0x34d2   :  { %v4351_v1 = vpop.eup %4350 }
0x34d3   :  { %v3257_v3 = vmul.f32 %v4351_v1, %v3249_v58 }
0x34d5   :  { %v3264_v5 = vmul.f32 %v3432_v2, %v3257_v3 }
0x34d7   :  { %v3271_v6 = vadd.f32 %v3433_v4, %v3264_v5 }
0x34d9   :  { %vm3272_vm6 = vcmp.ge.f32.partialorder %v3271_v6, 0.0  ;;  %v3273_v7 = vmul.f32 0.01, %v3271_v6 }
0x34db   :  { %v3274_v8 = vsel %vm3272_vm6, %v3271_v6, %v3273_v7 }
0x34dc   :  { %3961 = vmatmul.mubr.msk.f32.vlgmr.msra.gmra.mrb[26].mxu1 %vm3286_vm7, %v3274_v8 }
0x35af   :  { %v3356_v10 = vpop.f32.mrb[26].mxu1 }
0x35b0   :  { %v3357_v13 = vadd.f32 %v3434_v9, %v3356_v10  ;;  %v3962_v14 = vpop.f32.mrb[27].mxu1 }
0x35b2   :  { %3361 = vst.msk [vmem:[%s5017_s27] sm:$0x3] %vm3360_vm8, %v3357_v13 }

</bundles_post_ra>
